<compile_context>
chip_gen: v6e
topology: v6e:2x2x1
jax: 0.10.0
libtpu: 0.0.40
codegen_flags: <defaults>
</compile_context>

<pallas_src>
import jax
import jax.numpy as jnp
from jax.experimental import pallas as pl
from jax.experimental.pallas import tpu as pltpu

IN_FEATURES = 3 * 40 * 40   # 4800
HIDDEN = 1024
NUM_CLASSES = 10
TN = 512                    # tile along the hidden (1024) dimension


def _pick_batch_tile(batch):
    """Largest batch tile that satisfies the (8, 128) sublane constraint."""
    for tb in (512, 256, 128, 64, 32, 16, 8):
        if batch % tb == 0:
            return tb
    return batch            # small batch: use the full batch as one block


def _fashion_kernel(x_ref, w1_ref, b1_ref, w2_ref, b2_ref, out_ref):
    j = pl.program_id(1)    # reduction axis over HIDDEN slabs (innermost)

    @pl.when(j == 0)
    def _():
        out_ref[...] = jnp.zeros_like(out_ref)

    # fc1 slab: (TB, 4800) bf16 @ (4800, TN) bf16 -> fp32, + bias, ReLU
    h = jnp.dot(x_ref[...], w1_ref[...], preferred_element_type=jnp.float32)
    h = jnp.maximum(h + b1_ref[...], 0.0)      # b1_ref is (1, TN), broadcasts

    # partial fc2: (TB, TN) fp32 @ (TN, 10) fp32 -> (TB, 10), accumulate in out
    out_ref[...] += jnp.dot(h, w2_ref[...], preferred_element_type=jnp.float32)

    @pl.when(j == pl.num_programs(1) - 1)
    def _():
        logits = out_ref[...] + b2_ref[...]    # b2_ref is (1, 10)
        m = jnp.max(logits, axis=1, keepdims=True)
        z = logits - m
        lse = jnp.log(jnp.sum(jnp.exp(z), axis=1, keepdims=True))
        out_ref[...] = z - lse


def fashion_model_forward(x_nchw, w1, b1, w2, b2):
    """x_nchw: (B, 3, 40, 40) float32.  w1: (4800, 1024), b1: (1024,),
    w2: (1024, 10), b2: (10,).  Returns log-probabilities (B, 10) fp32."""
    B = x_nchw.shape[0]

    # Wrapper-side dtype prep: stream x / W1 as bf16, keep everything else fp32.
    x = x_nchw.reshape(B, IN_FEATURES).astype(jnp.bfloat16)   # == torch.flatten(x, 1)
    w1_bf16 = w1.astype(jnp.bfloat16)
    b1_2d = b1.reshape(1, HIDDEN).astype(jnp.float32)
    w2_f32 = w2.astype(jnp.float32)
    b2_2d = b2.reshape(1, NUM_CLASSES).astype(jnp.float32)

    TB = _pick_batch_tile(B)
    grid = (B // TB, HIDDEN // TN)   # (parallel batch axis, hidden reduction axis)

    cost = pl.CostEstimate(
        flops=2 * B * IN_FEATURES * HIDDEN + 2 * B * HIDDEN * NUM_CLASSES,
        transcendentals=B * NUM_CLASSES,
        bytes_accessed=(x.size * 2 + w1_bf16.size * 2 + b1_2d.size * 4
                        + w2_f32.size * 4 + b2_2d.size * 4
                        + B * NUM_CLASSES * 4),
    )

    return pl.pallas_call(
        _fashion_kernel,
        out_shape=jax.ShapeDtypeStruct((B, NUM_CLASSES), jnp.float32),
        grid_spec=pltpu.PrefetchScalarGridSpec(
            num_scalar_prefetch=0,
            grid=grid,
            in_specs=[
                pl.BlockSpec((TB, IN_FEATURES), lambda bi, j: (bi, 0)),      # x tile
                pl.BlockSpec((IN_FEATURES, TN), lambda bi, j: (0, j)),       # W1 slab
                pl.BlockSpec((1, TN), lambda bi, j: (0, j)),                 # b1 slab
                pl.BlockSpec((TN, NUM_CLASSES), lambda bi, j: (j, 0)),       # W2 slab
                pl.BlockSpec((1, NUM_CLASSES), lambda bi, j: (0, 0)),        # b2 (full)
            ],
            out_specs=pl.BlockSpec((TB, NUM_CLASSES), lambda bi, j: (bi, 0)),
        ),
        compiler_params=pltpu.CompilerParams(
            dimension_semantics=("parallel", "arbitrary"),
            vmem_limit_bytes=32 * 1024 * 1024,
        ),
        cost_estimate=cost,
    )(x, w1_bf16, b1_2d, w2_f32, b2_2d)


def _reference_forward_bf16(x_nchw, w1, b1, w2, b2):
    """Matches the kernel's arithmetic (bf16 fc1 inputs, fp32 accumulation)."""
    x = x_nchw.reshape(x_nchw.shape[0], IN_FEATURES).astype(jnp.bfloat16)
    h = jnp.dot(x, w1.astype(jnp.bfloat16),
                preferred_element_type=jnp.float32) + b1
    h = jnp.maximum(h, 0.0)
    logits = jnp.dot(h, w2, preferred_element_type=jnp.float32) + b2
    return jax.nn.log_softmax(logits, axis=1)


def _reference_forward_f32(x_nchw, w1, b1, w2, b2):
    x = x_nchw.reshape(x_nchw.shape[0], IN_FEATURES)
    h = jnp.maximum(x @ w1 + b1, 0.0)
    logits = h @ w2 + b2
    return jax.nn.log_softmax(logits, axis=1)


if __name__ == "__main__":
    key = jax.random.PRNGKey(0)
    k_x, k_w1, k_b1, k_w2, k_b2 = jax.random.split(key, 5)

    B = 2
    # Input consistent with the module: NCHW (B, 3, 40, 40).
    x = jax.random.normal(k_x, (B, 3, 40, 40), dtype=jnp.float32)

    # Deterministic synthetic parameters (shapes from nn.Linear in __init__),
    # stored as (in_features, out_features).
    w1 = jax.random.normal(k_w1, (IN_FEATURES, HIDDEN), dtype=jnp.float32) * 0.02
    b1 = jax.random.normal(k_b1, (HIDDEN,), dtype=jnp.float32) * 0.02
    w2 = jax.random.normal(k_w2, (HIDDEN, NUM_CLASSES), dtype=jnp.float32) * 0.02
    b2 = jax.random.normal(k_b2, (NUM_CLASSES,), dtype=jnp.float32) * 0.02

    out = fashion_model_forward(x, w1, b1, w2, b2)
    out = jax.block_until_ready(out)
    assert out.shape == (B, NUM_CLASSES)

    # Tight check against a reference with matching bf16 fc1 arithmetic.
    ref_bf16 = _reference_forward_bf16(x, w1, b1, w2, b2)
    assert jnp.allclose(out, ref_bf16, atol=1e-3, rtol=1e-3), \
        "mismatch vs bf16-matched JAX reference"

    # Loose sanity check against the full fp32 reference (bf16 weight cast).
    ref_f32 = _reference_forward_f32(x, w1, b1, w2, b2)
    assert jnp.allclose(out, ref_f32, atol=5e-2, rtol=5e-2), \
        "mismatch vs fp32 JAX reference"

    print("KERNEL_OK")
</pallas_src>

<mosaic_0001>
module attributes {stable_mosaic.version = 11 : i64} {
  func.func @_fashion_kernel(%arg0: i32, %arg1: i32, %arg2: memref<2x4800xbf16, #tpu.memory_space<vmem>>, %arg3: memref<4800x512xbf16, #tpu.memory_space<vmem>>, %arg4: memref<1x512xf32, #tpu.memory_space<vmem>>, %arg5: memref<512x10xf32, #tpu.memory_space<vmem>>, %arg6: memref<1x10xf32, #tpu.memory_space<vmem>>, %arg7: memref<2x10xf32, #tpu.memory_space<vmem>>) attributes {dimension_semantics = [#tpu.dimension_semantics<parallel>, #tpu.dimension_semantics<arbitrary>], iteration_bounds = array<i64: 1, 2>, scalar_prefetch = 0 : i64, scratch_operands = 0 : i64, tpu.core_type = #tpu.core_type<tc>, window_params = [{transform_indices = @transform_0, window_bounds = array<i64: 2, 4800>}, {transform_indices = @transform_1, window_bounds = array<i64: 4800, 512>}, {transform_indices = @transform_2, window_bounds = array<i64: 1, 512>}, {transform_indices = @transform_3, window_bounds = array<i64: 512, 10>}, {pipeline_mode = #tpu.pipeline_mode<synchronous>, transform_indices = @transform_4, window_bounds = array<i64: 1, 10>}, {transform_indices = @transform_5, window_bounds = array<i64: 2, 10>}]} {
    %c0_i32 = arith.constant 0 : i32
    %0 = arith.cmpi eq, %arg1, %c0_i32 : i32
    %1 = arith.extui %0 : i1 to i32
    %c0_i32_0 = arith.constant 0 : i32
    %2 = arith.cmpi ne, %1, %c0_i32_0 : i32
    scf.if %2 {
      %cst_15 = arith.constant 0.000000e+00 : f32
      %19 = vector.broadcast %cst_15 : f32 to vector<2x10xf32>
      %c0_16 = arith.constant 0 : index
      %c0_17 = arith.constant 0 : index
      %20 = vector.load %arg7[%c0_16, %c0_17] : memref<2x10xf32, #tpu.memory_space<vmem>>, vector<2x10xf32>
      tpu.vector_store %arg7[%c0_16, %c0_17], %19 {strides = array<i32>} : memref<2x10xf32, #tpu.memory_space<vmem>>, vector<2x10xf32>,
    } else {
    }
    %c0 = arith.constant 0 : index
    %c0_1 = arith.constant 0 : index
    %3 = vector.load %arg2[%c0, %c0_1] : memref<2x4800xbf16, #tpu.memory_space<vmem>>, vector<2x4800xbf16>
    %c0_2 = arith.constant 0 : index
    %c0_3 = arith.constant 0 : index
    %4 = vector.load %arg3[%c0_2, %c0_3] : memref<4800x512xbf16, #tpu.memory_space<vmem>>, vector<4800x512xbf16>
    %cst = arith.constant dense<0.000000e+00> : vector<2x512xf32>
    %5 = tpu.matmul %3, %4, %cst {dimension_numbers = #tpu.dot_dimension_numbers<[1], [0], [0], [1], [0, 0, 1, 1], [], []>} : vector<2x4800xbf16>, vector<4800x512xbf16>, vector<2x512xf32> -> vector<2x512xf32>
    %c0_4 = arith.constant 0 : index
    %c0_5 = arith.constant 0 : index
    %6 = vector.load %arg4[%c0_4, %c0_5] : memref<1x512xf32, #tpu.memory_space<vmem>>, vector<1x512xf32>
    %7 = vector.broadcast %6 : vector<1x512xf32> to vector<2x512xf32>
    %8 = arith.addf %5, %7 : vector<2x512xf32>
    %cst_6 = arith.constant 0.000000e+00 : f32
    %9 = vector.broadcast %cst_6 : f32 to vector<2x512xf32>
    %10 = arith.maximumf %8, %9 : vector<2x512xf32>
    %c0_7 = arith.constant 0 : index
    %c0_8 = arith.constant 0 : index
    %11 = vector.load %arg7[%c0_7, %c0_8] : memref<2x10xf32, #tpu.memory_space<vmem>>, vector<2x10xf32>
    %c0_9 = arith.constant 0 : index
    %c0_10 = arith.constant 0 : index
    %12 = vector.load %arg5[%c0_9, %c0_10] : memref<512x10xf32, #tpu.memory_space<vmem>>, vector<512x10xf32>
    %cst_11 = arith.constant dense<0.000000e+00> : vector<2x10xf32>
    %13 = tpu.matmul %10, %12, %cst_11 {dimension_numbers = #tpu.dot_dimension_numbers<[1], [0], [0], [1], [0, 0, 1, 1], [], []>} : vector<2x512xf32>, vector<512x10xf32>, vector<2x10xf32> -> vector<2x10xf32>
    %14 = arith.addf %11, %13 : vector<2x10xf32>
    %c0_12 = arith.constant 0 : index
    %c0_13 = arith.constant 0 : index
    %15 = vector.load %arg7[%c0_12, %c0_13] : memref<2x10xf32, #tpu.memory_space<vmem>>, vector<2x10xf32>
    tpu.vector_store %arg7[%c0_12, %c0_13], %14 {strides = array<i32>} : memref<2x10xf32, #tpu.memory_space<vmem>>, vector<2x10xf32>,
    %c1_i32 = arith.constant 1 : i32
    %16 = arith.cmpi eq, %arg1, %c1_i32 : i32
    %17 = arith.extui %16 : i1 to i32
    %c0_i32_14 = arith.constant 0 : i32
    %18 = arith.cmpi ne, %17, %c0_i32_14 : i32
    scf.if %18 {
      %c0_15 = arith.constant 0 : index
      %c0_16 = arith.constant 0 : index
      %19 = vector.load %arg7[%c0_15, %c0_16] : memref<2x10xf32, #tpu.memory_space<vmem>>, vector<2x10xf32>
      %c0_17 = arith.constant 0 : index
      %c0_18 = arith.constant 0 : index
      %20 = vector.load %arg6[%c0_17, %c0_18] : memref<1x10xf32, #tpu.memory_space<vmem>>, vector<1x10xf32>
      %21 = vector.broadcast %20 : vector<1x10xf32> to vector<2x10xf32>
      %22 = arith.addf %19, %21 : vector<2x10xf32>
      %cst_19 = arith.constant dense<0xFF800000> : vector<2xf32>
      %23 = vector.multi_reduction <maximumf>, %22, %cst_19 [1] : vector<2x10xf32> to vector<2xf32>
      %24 = vector.shape_cast %23 : vector<2xf32> to vector<2x1xf32>
      %25 = vector.broadcast %24 : vector<2x1xf32> to vector<2x10xf32>
      %26 = arith.subf %22, %25 : vector<2x10xf32>
      %27 = math.exp %26 : vector<2x10xf32>
      %cst_20 = arith.constant dense<0.000000e+00> : vector<2xf32>
      %28 = vector.multi_reduction <add>, %27, %cst_20 [1] : vector<2x10xf32> to vector<2xf32>
      %29 = vector.shape_cast %28 : vector<2xf32> to vector<2x1xf32>
      %30 = math.log %29 : vector<2x1xf32>
      %31 = vector.broadcast %30 : vector<2x1xf32> to vector<2x10xf32>
      %32 = arith.subf %26, %31 : vector<2x10xf32>
      %c0_21 = arith.constant 0 : index
      %c0_22 = arith.constant 0 : index
      %33 = vector.load %arg7[%c0_21, %c0_22] : memref<2x10xf32, #tpu.memory_space<vmem>>, vector<2x10xf32>
      tpu.vector_store %arg7[%c0_21, %c0_22], %32 {strides = array<i32>} : memref<2x10xf32, #tpu.memory_space<vmem>>, vector<2x10xf32>,
    } else {
    }
    return
  }
  func.func @transform_0(%arg0: i32, %arg1: i32) -> (i32, i32) {
    %c0_i32 = arith.constant 0 : i32
    %c0_i32_0 = arith.constant 0 : i32
    return %arg0, %c0_i32 : i32, i32
  }
  func.func @transform_1(%arg0: i32, %arg1: i32) -> (i32, i32) {
    %c0_i32 = arith.constant 0 : i32
    %c0_i32_0 = arith.constant 0 : i32
    return %c0_i32, %arg1 : i32, i32
  }
  func.func @transform_2(%arg0: i32, %arg1: i32) -> (i32, i32) {
    %c0_i32 = arith.constant 0 : i32
    %c0_i32_0 = arith.constant 0 : i32
    return %c0_i32, %arg1 : i32, i32
  }
  func.func @transform_3(%arg0: i32, %arg1: i32) -> (i32, i32) {
    %c0_i32 = arith.constant 0 : i32
    %c0_i32_0 = arith.constant 0 : i32
    return %arg1, %c0_i32 : i32, i32
  }
  func.func @transform_4(%arg0: i32, %arg1: i32) -> (i32, i32) {
    %c0_i32 = arith.constant 0 : i32
    %c0_i32_0 = arith.constant 0 : i32
    %c0_i32_1 = arith.constant 0 : i32
    return %c0_i32, %c0_i32_0 : i32, i32
  }
  func.func @transform_5(%arg0: i32, %arg1: i32) -> (i32, i32) {
    %c0_i32 = arith.constant 0 : i32
    %c0_i32_0 = arith.constant 0 : i32
    return %arg0, %c0_i32 : i32, i32
  }
}

</mosaic_0001>

<bundles_post_ra>
// kernel: tpu_custom_call.1
= control target key start
LH: loop header
LB: loop body
LE: loop exit
PB: predicated region body
PF: predicated region fallthrough
CT: control target
= control target key end

     0   :  { %10 = vsyncpa [#allocation3], 0  ;;  %s15075_s0 = inlined_call_operand.hbm [shape: bf16[2,4800], index: 0, kind: input, shape index: {}]   ;;  %s15076_s1 = inlined_call_operand.hbm [shape: bf16[4800,1024], index: 1, kind: input, shape index: {}]   ;;  %s15077_s2 = inlined_call_operand.hbm [shape: f32[1,1024], index: 2, kind: input, shape index: {}]   ;;  %s15078_s3 = inlined_call_operand.vmem [shape: f32[1024,10], index: 3, kind: input, shape index: {}]   ;;  %s15079_s4 = inlined_call_operand.hbm [shape: f32[1,10], index: 4, kind: input, shape index: {}]   ;;  %s15080_s5 = inlined_call_operand.hbm [shape: f32[2,10], index: 5, kind: output, shape index: {}]  }
   0x1   :  { %11 = vsyncpa [#allocation6], 0 }
   0x2   :  { %13 = vsyncpa [#allocation6 + $0x1], 0 }
   0x3   :  { %14 = vsyncpa [#allocation9], 0 }
   0x4   :  { %15 = vsyncpa [#allocation4], 0  ;;  %s13224_s18 = smov 0   ;;  %s13226_s19 = smov 0  }
   0x5   :  { %s13228_s20 = smov 0   ;;  %s13230_s21 = smov 0  }
   0x6   :  { %s13232_s22 = smov 0   ;;  %s13234_s23 = smov 0  }
   0x7 LB: > { %s30_s24 = sadd.s32 1, %s13178_s22  ;;  %s66_s25 = sadd.s32 1, %s13170_s20  ;;  %s13182_s23 = sphi %s13234_s23, %s21_s23   ;;  %s13178_s22 = sphi %s13232_s22, %s15100_s22   ;;  %s13174_s21 = sphi %s13230_s21, %s15099_s21   ;;  %s13170_s20 = sphi %s13228_s20, %s15098_s20   ;;  %s13166_s19 = sphi %s13226_s19, %s15097_s19   ;;  %s13162_s18 = sphi %s13224_s18, %s15096_s18  }
   0x8   : > { %p31_p0 = scmp.ge.s32.totalorder %s30_s24, 2  ;;  %p73_p1 = scmp.ne.s32.totalorder %s13170_s20, %s13166_s19 }
   0x9   : > { %p74_p2 = scmp.eq.s32.totalorder %s13182_s23, 0  ;;  %p11117_p4 = scmp.lt.s32.totalorder %s13182_s23, 2 }
   0xa   : > { %s15102_s24 = smov (%p31_p0, %s30_s24), 0  ;;  %s227_s27 = sand.u32 1, %s13182_s23  }
   0xb   : > { %p75_p3 = por %p74_p2, %p73_p1  ;;  %s63_s26 = ssub.s32 %s13178_s22, %s15102_s24 }
   0xc   : > { %p64_p5 = scmp.eq.s32.totalorder %s63_s26, 0  ;;  %s229_s28 = sand.u32 1, %s13170_s20  }
   0xd   : > { %s11011_s29 = sshll.u32 %s13178_s22, 8  ;;  %s11083_s6 = smul.u32 9600, %s229_s28 }
   0xe   : > { %s13268_s30 = scalar_select %p64_p5, %s13170_s20, %s66_s25  }
   0xf   : > { %s237_s9 = scalar_lea.hbm %s15076_s1, %s11011_s29  ;;  %p13275_p6 = pnand %p11117_p4, %p75_p3 }
  0x10   : > { %s231_s11 = scalar_lea.vmem [#allocation5], %s11083_s6  ;;  %s13279_s13 = scalar_lea.sflag [#allocation6], %s227_s27 }
  0x11   : > { %s238_s12 = sshll.u32 %s231_s11, 4  ;;  %p15082_p7 = pneg %p13275_p6  ;;  %s239_s12 = int_to_ptr.vmem [resolvable:$true] %s238_s12 }
  0x12   : > { %s13001_s14 = scalar_lea.vmem %s239_s12, 153600  ;;  %s13184_s15 = smov [#allocation5]  }
  0x13   : > { %p13002_p8 = scmp.ne.s32.totalorder %s239_s12, %s13001_s14  ;;  %s13006_s16 = sshll.u32 %s13184_s15, 4  ;;  %s13007_s16 = int_to_ptr.vmem [resolvable:$false] %s13006_s16 }
  0x14   : > { %s13008_s17 = scalar_lea.vmem %s13007_s16, 307200  ;;  %p13009_p11 = scmp.lt.s32.totalorder %s239_s12, %s13007_s16 }
  0x15   : > { %p13004_p9 = pnand %p13002_p8, %p15082_p7  ;;  %p13010_p12 = scmp.lt.s32.totalorder %s13008_s17, %s13001_s14 }
  0x17   : > { %p13005_p10 = pneg %p13004_p9  ;;  %p13011_p13 = por %p13010_p12, %p13009_p11 }
  0x19   : > { %p13012_p0 = pnand %p13011_p13, %p13005_p10 }
  0x1b   : > { %13015 = shalt.err (!%p13012_p0)
}
  0x1c   : > { %s13185_s25 = smov 512   ;;  %s13186_s26 = smov 256  }
  0x1d   : > { %s13187_s27 = smov 16   ;;  %s13290_s29 = sadd.s32 4294967295, %s13182_s23  }
  0x1e   : > { %11111 = dma.hbm_to_vmem [thread:$0]  (!%p13275_p6), %s237_s9, 153600, %s239_s12, %s13279_s13, %s13185_s25, %s13186_s26, %s13187_s27  }
  0x1f   : > { %p79_p1 = scmp.ne.s32.totalorder %s13166_s19, %s13162_s18  ;;  %p15081_p2 = scmp.eq.s32.totalorder %s13290_s29, 0 }
  0x20   : > { %p9787_p3 = scmp.ge.s32.totalorder %s13182_s23, 1  ;;  %p189_p4 = scmp.lt.s32.totalorder %s13182_s23, 3 }
  0x21   : > { %p13299_p5 = por %p15081_p2, %p79_p1  ;;  %s13188_s8 = smov [#allocation2]  }
  0x22   : > { %p13303_p8 = pnand %p9787_p3, %p189_p4  ;;  %s205_s9 = sshll.u32 %s13188_s8, 4  ;;  %s206_s9 = int_to_ptr.vmem [resolvable:$true] %s205_s9 }
  0x23   : > { %s15086_s6 = scalar_select %p13299_p5, 1, 0 }
  0x24   : > { %s15087_s7 = scalar_select %p13303_p8, 1, 0 }
  0x25   : > { %p11101_p9 = pneg %p13303_p8  ;;  %s13189_s11 = smov [#allocation8]  }
  0x26   : > { %s216_s18 = sshll.u32 %s13189_s11, 4  ;;  %s9793_s12 = sshll.u32 %s229_s28, 2  ;;  %s217_s18 = int_to_ptr.vmem [resolvable:$true] %s216_s18 }
  0x27   : > { %p13313_p10 = pnand %p11101_p9, %p15081_p2  ;;  %s11012_s15 = sshll.u32 %s13178_s22, 6 }
  0x28   : > { %s252_s16 = scalar_lea.vmem [#allocation7], %s9793_s12  ;;  %s13321_s27 = scalar_lea.hbm %s15077_s2, %s11012_s15 }
  0x29   : > { %s260_s17 = sshll.u32 %s252_s16, 4  ;;  %p13018_p11 = pneg %p13313_p10  ;;  %s261_s17 = int_to_ptr.vmem [resolvable:$true] %s260_s17 }
  0x2a   : > { %s13027_s8 = scalar_lea.vmem %s206_s9, 608  ;;  %p13035_p1 = scmp.lt.s32.totalorder %s206_s9, %s206_s9 }
  0x2b   : > { %p13028_p12 = scmp.ne.s32.totalorder %s206_s9, %s13027_s8  ;;  %p13036_p3 = scmp.lt.s32.totalorder %s13027_s8, %s13027_s8 }
  0x2d   : > { %p13030_p13 = pnand %p13028_p12, %p13018_p11  ;;  %p13037_p4 = por %p13036_p3, %p13035_p1 }
  0x2f   : > { %p13031_p0 = pneg %p13030_p13 }
  0x31   : > { %p13038_p9 = pnand %p13037_p4, %p13031_p0 }
  0x33   : > { %13041 = shalt.err (!%p13038_p9)
}
  0x34   : > { %11104 = dma.hbm_to_vmem [thread:$0]  (!%p13313_p10), %s15075_s0, 608, %s206_s9, [#allocation3]  }
  0x35   : > { %s13053_s12 = scalar_lea.vmem %s217_s18, 16  ;;  %s13060_s15 = scalar_lea.vmem %s217_s18, 32 }
  0x36   : > { %p13054_p2 = scmp.ne.s32.totalorder %s217_s18, %s13053_s12  ;;  %p13061_p12 = scmp.lt.s32.totalorder %s217_s18, %s217_s18 }
  0x37   : > { %p13062_p13 = scmp.lt.s32.totalorder %s13060_s15, %s13053_s12 }
  0x38   : > { %p13056_p7 = pnand %p13054_p2, %p13018_p11 }
  0x39   : > { %p13063_p8 = por %p13062_p13, %p13061_p12 }
  0x3a   : > { %p13057_p5 = pneg %p13056_p7 }
  0x3c   : > { %p13064_p1 = pnand %p13063_p8, %p13057_p5 }
  0x3e   : > { %13067 = shalt.err (!%p13064_p1)
}
  0x3f   : > { %11107 = dma.hbm_to_vmem [thread:$0]  (!%p13313_p10), %s15079_s4, 16, %s217_s18, [#allocation9]  }
  0x40   : > { %s13081_s9 = scalar_lea.vmem %s261_s17, 64  ;;  %p15089_p3 = pneg %p13275_p6 }
  0x41   : > { %p13082_p0 = scmp.ne.s32.totalorder %s261_s17, %s13081_s9  ;;  %s13190_s26 = smov [#allocation7]  }
  0x42   : > { %s13086_s8 = sshll.u32 %s13190_s26, 4  ;;  %s13087_s8 = int_to_ptr.vmem [resolvable:$false] %s13086_s8 }
  0x43   : > { %p13084_p2 = pnand %p13082_p0, %p15089_p3  ;;  %s13088_s28 = scalar_lea.vmem %s13087_s8, 128 }
  0x44   : > { %p13089_p5 = scmp.lt.s32.totalorder %s261_s17, %s13087_s8  ;;  %p13090_p8 = scmp.lt.s32.totalorder %s13088_s28, %s13081_s9 }
  0x45   : > { %p13085_p7 = pneg %p13084_p2 }
  0x46   : > { %p13091_p11 = por %p13090_p8, %p13089_p5 }
  0x48   : > { %p13092_p4 = pnand %p13091_p11, %p13085_p7 }
  0x4a   : > { %13095 = shalt.err (!%p13092_p4)
}
  0x4b   : > { %11114 = dma.hbm_to_vmem [thread:$0]  (!%p13275_p6), %s13321_s27, 64, %s261_s17, %s13279_s13  }
  0x4c   : > { %p15090_p10 = scmp.ne.s32.totalorder %s15087_s7, 0 }
  0x4d   : > { %p15091_p9 = scmp.eq.s32.totalorder (!%p15090_p10), %s13290_s29, 0 }
  0x4e   : > { %278 = sbr.rel (%p15090_p10) target bundleno = 2045 (0x7fd), region = 40 }
  0x53   : > { %13145 = dma.done.wait (%p15091_p9), [#allocation3], 608   ;;  %p15092_p12 = pmov %p15091_p9 }
  0x54   : > { %s284_s18 = sand.u32 1, %s13290_s29   ;;  %s286_s14 = sand.u32 1, %s13166_s19  }
  0x55   : > { %13147 = vsyncadd (%p15092_p12), [#allocation3], 4294966688  ;;  %s11084_s11 = smul.u32 9600, %s286_s14  ;;  %s285_s12 = scalar_lea.sflag [#allocation6], %s284_s18 }
  0x56   : > { %p15093_p13 = scmp.ne.s32.totalorder %s15086_s6, 0 }
  0x57   : > { %s13356_s10 = scalar_lea.vmem [#allocation5], %s11084_s11 }
  0x58   : > { %13149 = dma.done.wait (%p15093_p13), %s285_s12, 153664  }
  0x59   : > { %13151 = vsyncadd (%p15093_p13), %s285_s12, 4294813632  ;;  %s13362_s13 = sshll.u32 %s286_s14, 2  ;;  %p15094_p6 = pmov %p15091_p9 }
  0x5a   : > { %s297_s7 = scalar_lea.vmem [#allocation7], %s13362_s13 }
  0x5b   : > { %13153 = dma.done.wait (%p15094_p6), [#allocation9], 16   ;;  %p15095_p1 = pmov %p15094_p6 }
  0x5c   : > { %s9800_s17 = sshll.u32 %s13174_s21, 6  ;;  %p9802_p3 = scmp.ne.s32.totalorder %s13174_s21, 0 }
  0x5d   : > { %13155 = vsyncadd (%p15095_p1), [#allocation9], 4294967280  ;;  %p336_p0 = scmp.lt.s32.totalorder %s9800_s17, 127 }
  0x5e   : > { %345 = sbr.rel (%p9802_p3) target bundleno = 101 (0x65), region = 60 }
  0x5f   : > { %s15104_s17 = smov (!%p336_p0, %s9800_s17), 127 }
  0x60   : > { %s9801_s27 = sshll.u32 %s15104_s17, 3 }
  0x61   : > { %s13373_s6 = scalar_lea.vmem %s15078_s3, %s9801_s27 }
  0x63   : > { %vm346_vm0 = vcmask 74752   ;;  %v13191_v0 = vmov 0.0  }
  0x64   : > { %347 = vst.msk [vmem:[#allocation10] sm:$0x3] %vm346_vm0, %v13191_v0 }
  0x65 PF: > { %v11178_v1 = vld [vmem:[%s13356_s10 + $0xe4] ss:$16 sps:$4 sm:$0xff]   ;;  %v11182_v3 = vld [vmem:[%s13356_s10 + $0xe0] ss:$16 sps:$4 sm:$0xff]   ;;  %v1555_v37 = vlaneseq  ;;  %v13192_v38 = vmov 1966171168  }
  0x66   : > { %v11180_v2 = vld [vmem:[%s13356_s10 + $0x2e4] ss:$16 sps:$4 sm:$0xff]   ;;  %7864 = vmatprep.subr.bf16.mxu0 %v11178_v1  ;;  %v11183_v4 = vld [vmem:[%s13356_s10 + $0x2e0] ss:$16 sps:$4 sm:$0xff]   ;;  %v1582_v39 = vunpack.c.l.s4 %v13192_v38  ;;  %vm7860_vm1 = vcmask 523264   ;;  %vm9632_vm2 = vcmask 74752  }
  0x67   : > { %7905 = vmatprep.subr.bf16.mxu1 %v11180_v2  ;;  %v11184_v5 = vld [vmem:[%s13356_s10 + $0xc4] ss:$16 sps:$4 sm:$0xff]   ;;  %7865 = vmatpush1.bf16.msra.mxu0 %v11182_v3  ;;  %v11188_v7 = vld [vmem:[%s13356_s10 + $0xc0] ss:$16 sps:$4 sm:$0xff]   ;;  %v13415_v43 = vshrl.u32 %v1555_v37, 7  ;;  %p11005_p2 = scmp.ne.s32.totalorder %s13174_s21, 1 }
  0x68   : > { %7906 = vmatpush1.bf16.msra.mxu1 %v11183_v4  ;;  %v11186_v6 = vld [vmem:[%s13356_s10 + $0x2c4] ss:$16 sps:$4 sm:$0xff]   ;;  %7866 = vmatprep.subr.bf16.mxu0 %v11184_v5  ;;  %v11189_v8 = vld [vmem:[%s13356_s10 + $0x2c0] ss:$16 sps:$4 sm:$0xff]   ;;  %v1583_v44 = vunpack.c.0.s8 %v1582_v39 }
  0x69   : > { %7907 = vmatprep.subr.bf16.mxu1 %v11186_v6  ;;  %v11190_v9 = vld [vmem:[%s13356_s10 + $0xa4] ss:$16 sps:$4 sm:$0xff]   ;;  %v11194_v11 = vld [vmem:[%s13356_s10 + $0xa0] ss:$16 sps:$4 sm:$0xff]  }
  0x6a   : > { %v11192_v10 = vld [vmem:[%s13356_s10 + $0x2a4] ss:$16 sps:$4 sm:$0xff]   ;;  %v11195_v12 = vld [vmem:[%s13356_s10 + $0x2a0] ss:$16 sps:$4 sm:$0xff]   ;;  %v13423_v50 = vsub.s32 %v1583_v44, %v13415_v43 }
  0x6b   : > { %7867 = vmatpush1.bf16.msra.mxu0 %v11188_v7  ;;  %v11196_v13 = vld [vmem:[%s13356_s10 + $0x84] ss:$16 sps:$4 sm:$0xff]   ;;  %v11200_v15 = vld [vmem:[%s13356_s10 + $0x80] ss:$16 sps:$4 sm:$0xff]  }
  0x6c   : > { %7908 = vmatpush1.bf16.msra.mxu1 %v11189_v8  ;;  %7868 = vmatprep.subr.bf16.mxu0 %v11190_v9  ;;  %v11198_v14 = vld [vmem:[%s13356_s10 + $0x284] ss:$16 sps:$4 sm:$0xff]   ;;  %v11201_v16 = vld [vmem:[%s13356_s10 + $0x280] ss:$16 sps:$4 sm:$0xff]  }
  0x6d   : > { %7909 = vmatprep.subr.bf16.mxu1 %v11192_v10  ;;  %v11202_v17 = vld [vmem:[%s13356_s10 + $0x64] ss:$16 sps:$4 sm:$0xff]   ;;  %v11206_v19 = vld [vmem:[%s13356_s10 + $0x60] ss:$16 sps:$4 sm:$0xff]  }
  0x6e   : > { %v11204_v18 = vld [vmem:[%s13356_s10 + $0x264] ss:$16 sps:$4 sm:$0xff]   ;;  %v11207_v20 = vld [vmem:[%s13356_s10 + $0x260] ss:$16 sps:$4 sm:$0xff]  }
  0x6f   : > { %7869 = vmatpush1.bf16.msra.mxu0 %v11194_v11  ;;  %v11208_v21 = vld [vmem:[%s13356_s10 + $0x44] ss:$16 sps:$4 sm:$0xff]   ;;  %v11212_v23 = vld [vmem:[%s13356_s10 + $0x40] ss:$16 sps:$4 sm:$0xff]  }
  0x70   : > { %7910 = vmatpush1.bf16.msra.mxu1 %v11195_v12  ;;  %7870 = vmatprep.subr.bf16.mxu0 %v11196_v13  ;;  %v11210_v22 = vld [vmem:[%s13356_s10 + $0x244] ss:$16 sps:$4 sm:$0xff]   ;;  %v11213_v24 = vld [vmem:[%s13356_s10 + $0x240] ss:$16 sps:$4 sm:$0xff]  }
  0x71   : > { %7911 = vmatprep.subr.bf16.mxu1 %v11198_v14  ;;  %v11214_v25 = vld [vmem:[%s13356_s10 + $0x24] ss:$16 sps:$4 sm:$0xff]   ;;  %v11218_v27 = vld [vmem:[%s13356_s10 + $0x20] ss:$16 sps:$4 sm:$0xff]  }
  0x72   : > { %v11216_v26 = vld [vmem:[%s13356_s10 + $0x224] ss:$16 sps:$4 sm:$0xff]   ;;  %v11219_v28 = vld [vmem:[%s13356_s10 + $0x220] ss:$16 sps:$4 sm:$0xff]  }
  0x73   : > { %7871 = vmatpush1.bf16.msra.mxu0 %v11200_v15  ;;  %v11220_v29 = vld [vmem:[%s13356_s10 + $0x4] ss:$16 sps:$4 sm:$0xff]   ;;  %v11224_v31 = vld [vmem:[%s13356_s10] ss:$16 sps:$4 sm:$0xff]  }
  0x74   : > { %7912 = vmatpush1.bf16.msra.mxu1 %v11201_v16  ;;  %7872 = vmatprep.subr.bf16.mxu0 %v11202_v17  ;;  %v11222_v30 = vld [vmem:[%s13356_s10 + $0x204] ss:$16 sps:$4 sm:$0xff]   ;;  %v11225_v32 = vld [vmem:[%s13356_s10 + $0x200] ss:$16 sps:$4 sm:$0xff]  }
  0x75   : > { %7913 = vmatprep.subr.bf16.mxu1 %v11204_v18  ;;  %v11226_v33 = vld [vmem:[%s13356_s10 + $0x1e4] ss:$16 sps:$4 sm:$0xff]   ;;  %v11230_v35 = vld [vmem:[%s13356_s10 + $0x1e0] ss:$16 sps:$4 sm:$0xff]  }
  0x76   : > { %v11228_v34 = vld [vmem:[%s13356_s10 + $0x3e4] ss:$16 sps:$4 sm:$0xff]   ;;  %v11231_v36 = vld [vmem:[%s13356_s10 + $0x3e0] ss:$16 sps:$4 sm:$0xff]  }
  0x77   : > { %7873 = vmatpush1.bf16.msra.mxu0 %v11206_v19  ;;  %v11232_v40 = vld [vmem:[%s13356_s10 + $0x1c4] ss:$16 sps:$4 sm:$0xff]   ;;  %v11236_v42 = vld [vmem:[%s13356_s10 + $0x1c0] ss:$16 sps:$4 sm:$0xff]  }
  0x78   : > { %7914 = vmatpush1.bf16.msra.mxu1 %v11207_v20  ;;  %7874 = vmatprep.subr.bf16.mxu0 %v11208_v21  ;;  %v11234_v41 = vld [vmem:[%s13356_s10 + $0x3c4] ss:$16 sps:$4 sm:$0xff]   ;;  %v11237_v45 = vld [vmem:[%s13356_s10 + $0x3c0] ss:$16 sps:$4 sm:$0xff]  }
  0x79   : > { %7915 = vmatprep.subr.bf16.mxu1 %v11210_v22  ;;  %v11238_v46 = vld [vmem:[%s13356_s10 + $0x1a4] ss:$16 sps:$4 sm:$0xff]   ;;  %v11242_v48 = vld [vmem:[%s13356_s10 + $0x1a0] ss:$16 sps:$4 sm:$0xff]  }
  0x7a   : > { %v11240_v47 = vld [vmem:[%s13356_s10 + $0x3a4] ss:$16 sps:$4 sm:$0xff]   ;;  %v11243_v49 = vld [vmem:[%s13356_s10 + $0x3a0] ss:$16 sps:$4 sm:$0xff]  }
  0x7b   : > { %7875 = vmatpush1.bf16.msra.mxu0 %v11212_v23  ;;  %v11244_v51 = vld [vmem:[%s13356_s10 + $0x184] ss:$16 sps:$4 sm:$0xff]   ;;  %v348_v53 = vld [vmem:[#allocation2] sm:$0xff] }
  0x7c   : > { %7916 = vmatpush1.bf16.msra.mxu1 %v11213_v24  ;;  %7876 = vmatprep.subr.bf16.mxu0 %v11214_v25  ;;  %v11246_v52 = vld [vmem:[%s13356_s10 + $0x384] ss:$16 sps:$4 sm:$0xff]   ;;  %v11248_v54 = vld [vmem:[%s13356_s10 + $0x180] ss:$16 sps:$4 sm:$0xff]   ;;  %v1587_v55 = vrot.slane %v348_v53, %v13423_v50  ;;  %v1580_v2 = vcombine.high %v348_v53, %v348_v53 }
  0x7d   : > { %7917 = vmatprep.subr.bf16.mxu1 %v11216_v26  ;;  %v11249_v56 = vld [vmem:[%s13356_s10 + $0x380] ss:$16 sps:$4 sm:$0xff]   ;;  %v11250_v57 = vld [vmem:[%s13356_s10 + $0x164] ss:$16 sps:$4 sm:$0xff]  }
  0x7e   : > { %v11252_v58 = vld [vmem:[%s13356_s10 + $0x364] ss:$16 sps:$4 sm:$0xff]   ;;  %v1595_v59 = vcombine.high %v1587_v55, %v1587_v55  ;;  %v11254_v60 = vld [vmem:[%s13356_s10 + $0x160] ss:$16 sps:$4 sm:$0xff]   ;;  %v13450_v7 = vrot.slane %v1580_v2, %v13423_v50  ;;  %v13460_v14 = vrot.slane %v1587_v55, %v13423_v50 }
  0x7f   : > { %7877 = vmatpush1.bf16.msra.mxu0 %v11218_v27  ;;  %v11255_v62 = vld [vmem:[%s13356_s10 + $0x360] ss:$16 sps:$4 sm:$0xff]   ;;  %v11256_v63 = vld [vmem:[%s13356_s10 + $0x144] ss:$16 sps:$4 sm:$0xff]  }
  0x80   : > { %7918 = vmatpush1.bf16.msra.mxu1 %v11219_v28  ;;  %7878 = vmatprep.subr.bf16.mxu0 %v11220_v29  ;;  %v13434_v61 = vrot.slane %v1595_v59, %v13423_v50  ;;  %v11258_v0 = vld [vmem:[%s13356_s10 + $0x344] ss:$16 sps:$4 sm:$0xff]   ;;  %v11260_v3 = vld [vmem:[%s13356_s10 + $0x140] ss:$16 sps:$4 sm:$0xff]   ;;  %v1596_v12 = vcombine.high %v13450_v7, %v13450_v7  ;;  %v13470_v19 = vcombine.high %v13460_v14, %v13460_v14 }
  0x81   : > { %7919 = vmatprep.subr.bf16.mxu1 %v11222_v30  ;;  %v11261_v4 = vld [vmem:[%s13356_s10 + $0x340] ss:$16 sps:$4 sm:$0xff]   ;;  %v11262_v5 = vld [vmem:[%s13356_s10 + $0x124] ss:$16 sps:$4 sm:$0xff]  }
  0x82   : > { %v13441_v1 = vcombine.high %v13434_v61, %v13434_v61  ;;  %7896 = vmatprep.mubr.bf16.mxu0 %v13434_v61  ;;  %v11264_v6 = vld [vmem:[%s13356_s10 + $0x324] ss:$16 sps:$4 sm:$0xff]   ;;  %v11266_v8 = vld [vmem:[%s13356_s10 + $0x120] ss:$16 sps:$4 sm:$0xff]   ;;  %v13466_v18 = vrot.slane %v1596_v12, %v13423_v50 }
  0x83   : > { %7879 = vmatpush1.bf16.msra.mxu0 %v11224_v31  ;;  %v11267_v9 = vld [vmem:[%s13356_s10 + $0x320] ss:$16 sps:$4 sm:$0xff]   ;;  %v11268_v10 = vld [vmem:[%s13356_s10 + $0x104] ss:$16 sps:$4 sm:$0xff]  }
  0x84   : > { %7920 = vmatpush1.bf16.msra.mxu1 %v11225_v32  ;;  %7880 = vmatprep.subr.bf16.mxu0 %v11226_v33  ;;  %v11270_v11 = vld [vmem:[%s13356_s10 + $0x304] ss:$16 sps:$4 sm:$0xff]   ;;  %v11272_v13 = vld [vmem:[%s13356_s10 + $0x100] ss:$16 sps:$4 sm:$0xff]   ;;  %v13478_v24 = vcombine.high %v13466_v18, %v13466_v18 }
  0x85   : > { %7921 = vmatprep.subr.bf16.mxu1 %v11228_v34  ;;  %7937 = vmatprep.mubr.bf16.mxu1 %v13441_v1  ;;  %v11273_v15 = vld [vmem:[%s13356_s10 + $0x300] ss:$16 sps:$4 sm:$0xff]   ;;  %v11276_v16 = vld [vmem:[%s13356_s10 + $0x4e4] ss:$16 sps:$4 sm:$0xff]  }
  0x86   : > { %v11279_v17 = vld [vmem:[%s13356_s10 + $0x6e4] ss:$16 sps:$4 sm:$0xff]   ;;  %v11274_v20 = vld [vmem:[%s13356_s10 + $0x4e0] ss:$16 sps:$4 sm:$0xff]  }
  0x87   : > { %7881 = vmatpush2.bf16.msra.mxu0 %v11230_v35  ;;  %v11277_v21 = vld [vmem:[%s13356_s10 + $0x6e0] ss:$16 sps:$4 sm:$0xff]   ;;  %v11282_v22 = vld [vmem:[%s13356_s10 + $0x4c4] ss:$16 sps:$4 sm:$0xff]  }
  0x88   : > { %7922 = vmatpush2.bf16.msra.mxu1 %v11231_v36  ;;  %7882 = vmatprep.subr.bf16.mxu0 %v11232_v40  ;;  %v11285_v23 = vld [vmem:[%s13356_s10 + $0x6c4] ss:$16 sps:$4 sm:$0xff]   ;;  %v11280_v25 = vld [vmem:[%s13356_s10 + $0x4c0] ss:$16 sps:$4 sm:$0xff]  }
  0x89   : > { %7923 = vmatprep.subr.bf16.mxu1 %v11234_v41  ;;  %v11283_v26 = vld [vmem:[%s13356_s10 + $0x6c0] ss:$16 sps:$4 sm:$0xff]   ;;  %v11288_v27 = vld [vmem:[%s13356_s10 + $0x4a4] ss:$16 sps:$4 sm:$0xff]  }
  0x8a   : > { %v11291_v28 = vld [vmem:[%s13356_s10 + $0x6a4] ss:$16 sps:$4 sm:$0xff]   ;;  %v11286_v29 = vld [vmem:[%s13356_s10 + $0x4a0] ss:$16 sps:$4 sm:$0xff]  }
  0x8b   : > { %7883 = vmatpush2.bf16.msra.mxu0 %v11236_v42  ;;  %v11289_v30 = vld [vmem:[%s13356_s10 + $0x6a0] ss:$16 sps:$4 sm:$0xff]   ;;  %v11294_v31 = vld [vmem:[%s13356_s10 + $0x484] ss:$16 sps:$4 sm:$0xff]  }
  0x8c   : > { %7924 = vmatpush2.bf16.msra.mxu1 %v11237_v45  ;;  %7884 = vmatprep.subr.bf16.mxu0 %v11238_v46  ;;  %v11297_v32 = vld [vmem:[%s13356_s10 + $0x684] ss:$16 sps:$4 sm:$0xff]   ;;  %v11292_v33 = vld [vmem:[%s13356_s10 + $0x480] ss:$16 sps:$4 sm:$0xff]  }
  0x8d   : > { %7925 = vmatprep.subr.bf16.mxu1 %v11240_v47  ;;  %v11295_v34 = vld [vmem:[%s13356_s10 + $0x680] ss:$16 sps:$4 sm:$0xff]   ;;  %v11300_v35 = vld [vmem:[%s13356_s10 + $0x464] ss:$16 sps:$4 sm:$0xff]  }
  0x8e   : > { %v11303_v36 = vld [vmem:[%s13356_s10 + $0x664] ss:$16 sps:$4 sm:$0xff]   ;;  %v11298_v37 = vld [vmem:[%s13356_s10 + $0x460] ss:$16 sps:$4 sm:$0xff]  }
  0x8f   : > { %7885 = vmatpush2.bf16.msra.mxu0 %v11242_v48  ;;  %v11301_v38 = vld [vmem:[%s13356_s10 + $0x660] ss:$16 sps:$4 sm:$0xff]   ;;  %v11306_v39 = vld [vmem:[%s13356_s10 + $0x444] ss:$16 sps:$4 sm:$0xff]  }
  0x90   : > { %7926 = vmatpush2.bf16.msra.mxu1 %v11243_v49  ;;  %7886 = vmatprep.subr.bf16.mxu0 %v11244_v51  ;;  %v11309_v40 = vld [vmem:[%s13356_s10 + $0x644] ss:$16 sps:$4 sm:$0xff]   ;;  %v11304_v41 = vld [vmem:[%s13356_s10 + $0x440] ss:$16 sps:$4 sm:$0xff]  }
  0x91   : > { %7927 = vmatprep.subr.bf16.mxu1 %v11246_v52  ;;  %v11307_v42 = vld [vmem:[%s13356_s10 + $0x640] ss:$16 sps:$4 sm:$0xff]   ;;  %v11312_v44 = vld [vmem:[%s13356_s10 + $0x424] ss:$16 sps:$4 sm:$0xff]  }
  0x92   : > { %v11315_v45 = vld [vmem:[%s13356_s10 + $0x624] ss:$16 sps:$4 sm:$0xff]   ;;  %v11310_v46 = vld [vmem:[%s13356_s10 + $0x420] ss:$16 sps:$4 sm:$0xff]  }
  0x93   : > { %7887 = vmatpush2.bf16.msra.mxu0 %v11248_v54  ;;  %v11313_v47 = vld [vmem:[%s13356_s10 + $0x620] ss:$16 sps:$4 sm:$0xff]   ;;  %v11318_v48 = vld [vmem:[%s13356_s10 + $0x404] ss:$16 sps:$4 sm:$0xff]  }
  0x94   : > { %7928 = vmatpush2.bf16.msra.mxu1 %v11249_v56  ;;  %7888 = vmatprep.subr.bf16.mxu0 %v11250_v57  ;;  %v11321_v49 = vld [vmem:[%s13356_s10 + $0x604] ss:$16 sps:$4 sm:$0xff]   ;;  %v11316_v51 = vld [vmem:[%s13356_s10 + $0x400] ss:$16 sps:$4 sm:$0xff]  }
  0x95   : > { %7929 = vmatprep.subr.bf16.mxu1 %v11252_v58  ;;  %v11319_v52 = vld [vmem:[%s13356_s10 + $0x600] ss:$16 sps:$4 sm:$0xff]   ;;  %v11324_v53 = vld [vmem:[%s13356_s10 + $0x5e4] ss:$16 sps:$4 sm:$0xff]  }
  0x96   : > { %v11327_v54 = vld [vmem:[%s13356_s10 + $0x7e4] ss:$16 sps:$4 sm:$0xff]   ;;  %v11322_v55 = vld [vmem:[%s13356_s10 + $0x5e0] ss:$16 sps:$4 sm:$0xff]  }
  0x97   : > { %7889 = vmatpush2.bf16.msra.mxu0 %v11254_v60  ;;  %v11325_v56 = vld [vmem:[%s13356_s10 + $0x7e0] ss:$16 sps:$4 sm:$0xff]   ;;  %v11330_v57 = vld [vmem:[%s13356_s10 + $0x5c4] ss:$16 sps:$4 sm:$0xff]  }
  0x98   : > { %7930 = vmatpush2.bf16.msra.mxu1 %v11255_v62  ;;  %7890 = vmatprep.subr.bf16.mxu0 %v11256_v63  ;;  %v11333_v58 = vld [vmem:[%s13356_s10 + $0x7c4] ss:$16 sps:$4 sm:$0xff]   ;;  %v11328_v59 = vld [vmem:[%s13356_s10 + $0x5c0] ss:$16 sps:$4 sm:$0xff]  }
  0x99   : > { %7931 = vmatprep.subr.bf16.mxu1 %v11258_v0  ;;  %v11331_v60 = vld [vmem:[%s13356_s10 + $0x7c0] ss:$16 sps:$4 sm:$0xff]   ;;  %v11336_v62 = vld [vmem:[%s13356_s10 + $0x5a4] ss:$16 sps:$4 sm:$0xff]  }
  0x9a   : > { %v11339_v63 = vld [vmem:[%s13356_s10 + $0x7a4] ss:$16 sps:$4 sm:$0xff]   ;;  %v11334_v0 = vld [vmem:[%s13356_s10 + $0x5a0] ss:$16 sps:$4 sm:$0xff]  }
  0x9b   : > { %7891 = vmatpush2.bf16.msra.mxu0 %v11260_v3  ;;  %v11337_v2 = vld [vmem:[%s13356_s10 + $0x7a0] ss:$16 sps:$4 sm:$0xff]   ;;  %v11342_v3 = vld [vmem:[%s13356_s10 + $0x584] ss:$16 sps:$4 sm:$0xff]  }
  0x9c   : > { %7932 = vmatpush2.bf16.msra.mxu1 %v11261_v4  ;;  %7892 = vmatprep.subr.bf16.mxu0 %v11262_v5  ;;  %v11345_v4 = vld [vmem:[%s13356_s10 + $0x784] ss:$16 sps:$4 sm:$0xff]   ;;  %v11340_v5 = vld [vmem:[%s13356_s10 + $0x580] ss:$16 sps:$4 sm:$0xff]  }
  0x9d   : > { %7933 = vmatprep.subr.bf16.mxu1 %v11264_v6  ;;  %v11343_v6 = vld [vmem:[%s13356_s10 + $0x780] ss:$16 sps:$4 sm:$0xff]   ;;  %v11354_v12 = vld [vmem:[%s13356_s10 + $0x544] ss:$16 sps:$4 sm:$0xff]  }
  0x9f   : > { %7893 = vmatpush2.bf16.msra.mxu0 %v11266_v8  ;;  %v11348_v8 = vld [vmem:[%s13356_s10 + $0x564] ss:$16 sps:$4 sm:$0xff]  }
  0xa0   : > { %7934 = vmatpush2.bf16.msra.mxu1 %v11267_v9  ;;  %7894 = vmatprep.subr.bf16.mxu0 %v11268_v10  ;;  %v11351_v9 = vld [vmem:[%s13356_s10 + $0x764] ss:$16 sps:$4 sm:$0xff]   ;;  %v11346_v10 = vld [vmem:[%s13356_s10 + $0x560] ss:$16 sps:$4 sm:$0xff]  }
  0xa1   : > { %7935 = vmatprep.subr.bf16.mxu1 %v11270_v11  ;;  %v11349_v11 = vld [vmem:[%s13356_s10 + $0x760] ss:$16 sps:$4 sm:$0xff]  }
  0xa3   : > { %7895 = vmatpush2.bf16.msra.mxu0 %v11272_v13  ;;  %v11357_v13 = vld [vmem:[%s13356_s10 + $0x744] ss:$16 sps:$4 sm:$0xff]  }
  0xa4   : > { %7936 = vmatpush2.bf16.msra.mxu1 %v11273_v15  ;;  %7946 = vmatprep.subr.bf16.mxu0 %v11276_v16  ;;  %v11352_v15 = vld [vmem:[%s13356_s10 + $0x540] ss:$16 sps:$4 sm:$0xff]  }
  0xa5   : > { %7987 = vmatprep.subr.bf16.mxu1 %v11279_v17  ;;  %v11355_v16 = vld [vmem:[%s13356_s10 + $0x740] ss:$16 sps:$4 sm:$0xff]   ;;  %v11360_v17 = vld [vmem:[%s13356_s10 + $0x524] ss:$16 sps:$4 sm:$0xff]  }
  0xa6   : > { %7897 = vmatmul.mubr.bf16.vlgmr.msra.gmra.mxu0 %v13460_v14 }
  0xa7   : > { %7938 = vmatmul.mubr.bf16.vlgmr.msra.gmra.mxu1 %v13470_v19  ;;  %7947 = vmatpush1.bf16.msra.mxu0 %v11274_v20  ;;  %v11363_v20 = vld [vmem:[%s13356_s10 + $0x724] ss:$16 sps:$4 sm:$0xff]  }
  0xa8   : > { %7988 = vmatpush1.bf16.msra.mxu1 %v11277_v21  ;;  %7948 = vmatprep.subr.bf16.mxu0 %v11282_v22  ;;  %v11358_v21 = vld [vmem:[%s13356_s10 + $0x520] ss:$16 sps:$4 sm:$0xff]  }
  0xa9   : > { %7989 = vmatprep.subr.bf16.mxu1 %v11285_v23  ;;  %7978 = vmatprep.mubr.bf16.mxu0 %v13466_v18  ;;  %v11361_v22 = vld [vmem:[%s13356_s10 + $0x720] ss:$16 sps:$4 sm:$0xff]   ;;  %v11366_v23 = vld [vmem:[%s13356_s10 + $0x504] ss:$16 sps:$4 sm:$0xff]  }
  0xaa   : > { %8019 = vmatprep.mubr.bf16.mxu1 %v13478_v24 }
  0xab   : > { %7949 = vmatpush1.bf16.msra.mxu0 %v11280_v25  ;;  %v11369_v25 = vld [vmem:[%s13356_s10 + $0x704] ss:$16 sps:$4 sm:$0xff]  }
  0xac   : > { %7990 = vmatpush1.bf16.msra.mxu1 %v11283_v26  ;;  %7950 = vmatprep.subr.bf16.mxu0 %v11288_v27  ;;  %v11364_v26 = vld [vmem:[%s13356_s10 + $0x500] ss:$16 sps:$4 sm:$0xff]   ;;  %v13543_v27 = vrot.slane %v13450_v7, %v13423_v50 }
  0xad   : > { %7991 = vmatprep.subr.bf16.mxu1 %v11291_v28  ;;  %v11367_v28 = vld [vmem:[%s13356_s10 + $0x700] ss:$16 sps:$4 sm:$0xff]  }
  0xae   : > { %v11374_v7 = vld [vmem:[%s13356_s10 + $0xae0] ss:$16 sps:$4 sm:$0xff]  }
  0xaf   : > { %7951 = vmatpush1.bf16.msra.mxu0 %v11286_v29  ;;  %v11373_v29 = vld [vmem:[%s13356_s10 + $0x8e4] ss:$16 sps:$4 sm:$0xff]  }
  0xb0   : > { %7992 = vmatpush1.bf16.msra.mxu1 %v11289_v30  ;;  %7952 = vmatprep.subr.bf16.mxu0 %v11294_v31  ;;  %v11376_v30 = vld [vmem:[%s13356_s10 + $0xae4] ss:$16 sps:$4 sm:$0xff]   ;;  %v13550_v31 = vcombine.high %v13543_v27, %v13543_v27 }
  0xb1   : > { %7993 = vmatprep.subr.bf16.mxu1 %v11297_v32  ;;  %v11371_v32 = vld [vmem:[%s13356_s10 + $0x8e0] ss:$16 sps:$4 sm:$0xff]  }
  0xb3   : > { %7953 = vmatpush1.bf16.msra.mxu0 %v11292_v33  ;;  %v13554_v33 = vld [vmem:[#allocation2 + $0x8] sm:$0xff] }
  0xb4   : > { %7994 = vmatpush1.bf16.msra.mxu1 %v11295_v34  ;;  %7954 = vmatprep.subr.bf16.mxu0 %v11300_v35  ;;  %v11379_v34 = vld [vmem:[%s13356_s10 + $0x8c4] ss:$16 sps:$4 sm:$0xff]  }
  0xb5   : > { %7995 = vmatprep.subr.bf16.mxu1 %v11303_v36  ;;  %v11382_v35 = vld [vmem:[%s13356_s10 + $0xac4] ss:$16 sps:$4 sm:$0xff]   ;;  %v13560_v36 = vrot.slane %v13554_v33, %v13423_v50 }
  0xb7   : > { %7955 = vmatpush1.bf16.msra.mxu0 %v11298_v37  ;;  %v1644_v37 = vcombine.high %v13560_v36, %v13560_v36 }
  0xb8   : > { %7996 = vmatpush1.bf16.msra.mxu1 %v11301_v38  ;;  %7956 = vmatprep.subr.bf16.mxu0 %v11306_v39  ;;  %v11377_v38 = vld [vmem:[%s13356_s10 + $0x8c0] ss:$16 sps:$4 sm:$0xff]  }
  0xb9   : > { %7997 = vmatprep.subr.bf16.mxu1 %v11309_v40  ;;  %v11380_v39 = vld [vmem:[%s13356_s10 + $0xac0] ss:$16 sps:$4 sm:$0xff]   ;;  %v11385_v40 = vld [vmem:[%s13356_s10 + $0x8a4] ss:$16 sps:$4 sm:$0xff]  }
  0xbb   : > { %7957 = vmatpush1.bf16.msra.mxu0 %v11304_v41  ;;  %v11388_v41 = vld [vmem:[%s13356_s10 + $0xaa4] ss:$16 sps:$4 sm:$0xff]  }
  0xbc   : > { %7998 = vmatpush1.bf16.msra.mxu1 %v11307_v42  ;;  %7958 = vmatprep.subr.bf16.mxu0 %v11312_v44  ;;  %v13571_v42 = vrot.slane %v1644_v37, %v13423_v50  ;;  %v11449_v37 = vld [vmem:[%s13356_s10 + $0x940] ss:$16 sps:$4 sm:$0xff]  }
  0xbd   : > { %7999 = vmatprep.subr.bf16.mxu1 %v11315_v45  ;;  %v11383_v45 = vld [vmem:[%s13356_s10 + $0x8a0] ss:$16 sps:$4 sm:$0xff]  }
  0xbe   : > { %v13576_v44 = vcombine.high %v13571_v42, %v13571_v42 }
  0xbf   : > { %7959 = vmatpush1.bf16.msra.mxu0 %v11310_v46  ;;  %v11386_v46 = vld [vmem:[%s13356_s10 + $0xaa0] ss:$16 sps:$4 sm:$0xff]  }
  0xc0   : > { %8000 = vmatpush1.bf16.msra.mxu1 %v11313_v47  ;;  %7960 = vmatprep.subr.bf16.mxu0 %v11318_v48  ;;  %v11391_v47 = vld [vmem:[%s13356_s10 + $0x884] ss:$16 sps:$4 sm:$0xff]  }
  0xc1   : > { %8001 = vmatprep.subr.bf16.mxu1 %v11321_v49  ;;  %v11394_v48 = vld [vmem:[%s13356_s10 + $0xa84] ss:$16 sps:$4 sm:$0xff]   ;;  %v11389_v49 = vld [vmem:[%s13356_s10 + $0x880] ss:$16 sps:$4 sm:$0xff]  }
  0xc3   : > { %7961 = vmatpush1.bf16.msra.mxu0 %v11316_v51  ;;  %v11392_v51 = vld [vmem:[%s13356_s10 + $0xa80] ss:$16 sps:$4 sm:$0xff]  }
  0xc4   : > { %8002 = vmatpush1.bf16.msra.mxu1 %v11319_v52  ;;  %7962 = vmatprep.subr.bf16.mxu0 %v11324_v53  ;;  %v11397_v52 = vld [vmem:[%s13356_s10 + $0x864] ss:$16 sps:$4 sm:$0xff]  }
  0xc5   : > { %8003 = vmatprep.subr.bf16.mxu1 %v11327_v54  ;;  %v11400_v53 = vld [vmem:[%s13356_s10 + $0xa64] ss:$16 sps:$4 sm:$0xff]   ;;  %v11395_v54 = vld [vmem:[%s13356_s10 + $0x860] ss:$16 sps:$4 sm:$0xff]  }
  0xc7   : > { %7963 = vmatpush2.bf16.msra.mxu0 %v11322_v55  ;;  %v11398_v55 = vld [vmem:[%s13356_s10 + $0xa60] ss:$16 sps:$4 sm:$0xff]  }
  0xc8   : > { %8004 = vmatpush2.bf16.msra.mxu1 %v11325_v56  ;;  %7964 = vmatprep.subr.bf16.mxu0 %v11330_v57  ;;  %v11403_v56 = vld [vmem:[%s13356_s10 + $0x844] ss:$16 sps:$4 sm:$0xff]  }
  0xc9   : > { %8005 = vmatprep.subr.bf16.mxu1 %v11333_v58  ;;  %v11406_v57 = vld [vmem:[%s13356_s10 + $0xa44] ss:$16 sps:$4 sm:$0xff]   ;;  %v11401_v58 = vld [vmem:[%s13356_s10 + $0x840] ss:$16 sps:$4 sm:$0xff]  }
  0xcb   : > { %7965 = vmatpush2.bf16.msra.mxu0 %v11328_v59  ;;  %v11404_v59 = vld [vmem:[%s13356_s10 + $0xa40] ss:$16 sps:$4 sm:$0xff]  }
  0xcc   : > { %8006 = vmatpush2.bf16.msra.mxu1 %v11331_v60  ;;  %7966 = vmatprep.subr.bf16.mxu0 %v11336_v62  ;;  %v11409_v60 = vld [vmem:[%s13356_s10 + $0x824] ss:$16 sps:$4 sm:$0xff]  }
  0xcd   : > { %8007 = vmatprep.subr.bf16.mxu1 %v11339_v63  ;;  %v11412_v62 = vld [vmem:[%s13356_s10 + $0xa24] ss:$16 sps:$4 sm:$0xff]   ;;  %v11407_v63 = vld [vmem:[%s13356_s10 + $0x820] ss:$16 sps:$4 sm:$0xff]  }
  0xcf   : > { %7967 = vmatpush2.bf16.msra.mxu0 %v11334_v0  ;;  %v11410_v0 = vld [vmem:[%s13356_s10 + $0xa20] ss:$16 sps:$4 sm:$0xff]  }
  0xd0   : > { %8008 = vmatpush2.bf16.msra.mxu1 %v11337_v2  ;;  %7968 = vmatprep.subr.bf16.mxu0 %v11342_v3  ;;  %v11415_v2 = vld [vmem:[%s13356_s10 + $0x804] ss:$16 sps:$4 sm:$0xff]  }
  0xd1   : > { %8009 = vmatprep.subr.bf16.mxu1 %v11345_v4  ;;  %v11418_v3 = vld [vmem:[%s13356_s10 + $0xa04] ss:$16 sps:$4 sm:$0xff]   ;;  %v11413_v4 = vld [vmem:[%s13356_s10 + $0x800] ss:$16 sps:$4 sm:$0xff]  }
  0xd3   : > { %7969 = vmatpush2.bf16.msra.mxu0 %v11340_v5  ;;  %v11416_v5 = vld [vmem:[%s13356_s10 + $0xa00] ss:$16 sps:$4 sm:$0xff]  }
  0xd4   : > { %8010 = vmatpush2.bf16.msra.mxu1 %v11343_v6  ;;  %7970 = vmatprep.subr.bf16.mxu0 %v11348_v8  ;;  %v11421_v6 = vld [vmem:[%s13356_s10 + $0x9e4] ss:$16 sps:$4 sm:$0xff]  }
  0xd5   : > { %8011 = vmatprep.subr.bf16.mxu1 %v11351_v9  ;;  %v11424_v8 = vld [vmem:[%s13356_s10 + $0xbe4] ss:$16 sps:$4 sm:$0xff]   ;;  %v11419_v9 = vld [vmem:[%s13356_s10 + $0x9e0] ss:$16 sps:$4 sm:$0xff]  }
  0xd7   : > { %7971 = vmatpush2.bf16.msra.mxu0 %v11346_v10  ;;  %v11422_v10 = vld [vmem:[%s13356_s10 + $0xbe0] ss:$16 sps:$4 sm:$0xff]  }
  0xd8   : > { %8012 = vmatpush2.bf16.msra.mxu1 %v11349_v11  ;;  %7972 = vmatprep.subr.bf16.mxu0 %v11354_v12  ;;  %v11427_v11 = vld [vmem:[%s13356_s10 + $0x9c4] ss:$16 sps:$4 sm:$0xff]  }
  0xd9   : > { %8013 = vmatprep.subr.bf16.mxu1 %v11357_v13  ;;  %v11430_v12 = vld [vmem:[%s13356_s10 + $0xbc4] ss:$16 sps:$4 sm:$0xff]   ;;  %v11425_v13 = vld [vmem:[%s13356_s10 + $0x9c0] ss:$16 sps:$4 sm:$0xff]  }
  0xdb   : > { %7973 = vmatpush2.bf16.msra.mxu0 %v11352_v15  ;;  %v11428_v15 = vld [vmem:[%s13356_s10 + $0xbc0] ss:$16 sps:$4 sm:$0xff]  }
  0xdc   : > { %8014 = vmatpush2.bf16.msra.mxu1 %v11355_v16  ;;  %7974 = vmatprep.subr.bf16.mxu0 %v11360_v17  ;;  %v11433_v16 = vld [vmem:[%s13356_s10 + $0x9a4] ss:$16 sps:$4 sm:$0xff]  }
  0xdd   : > { %8015 = vmatprep.subr.bf16.mxu1 %v11363_v20  ;;  %v11436_v17 = vld [vmem:[%s13356_s10 + $0xba4] ss:$16 sps:$4 sm:$0xff]   ;;  %v11431_v20 = vld [vmem:[%s13356_s10 + $0x9a0] ss:$16 sps:$4 sm:$0xff]  }
  0xdf   : > { %7975 = vmatpush2.bf16.msra.mxu0 %v11358_v21  ;;  %v11434_v21 = vld [vmem:[%s13356_s10 + $0xba0] ss:$16 sps:$4 sm:$0xff]  }
  0xe0   : > { %8016 = vmatpush2.bf16.msra.mxu1 %v11361_v22  ;;  %7976 = vmatprep.subr.bf16.mxu0 %v11366_v23  ;;  %v11439_v22 = vld [vmem:[%s13356_s10 + $0x984] ss:$16 sps:$4 sm:$0xff]  }
  0xe1   : > { %8017 = vmatprep.subr.bf16.mxu1 %v11369_v25  ;;  %v11442_v23 = vld [vmem:[%s13356_s10 + $0xb84] ss:$16 sps:$4 sm:$0xff]   ;;  %v11437_v25 = vld [vmem:[%s13356_s10 + $0x980] ss:$16 sps:$4 sm:$0xff]  }
  0xe3   : > { %7977 = vmatpush2.bf16.msra.mxu0 %v11364_v26  ;;  %v11440_v26 = vld [vmem:[%s13356_s10 + $0xb80] ss:$16 sps:$4 sm:$0xff]  }
  0xe4   : > { %8018 = vmatpush2.bf16.msra.mxu1 %v11367_v28  ;;  %8028 = vmatprep.subr.bf16.mxu0 %v11373_v29  ;;  %v11445_v28 = vld [vmem:[%s13356_s10 + $0x964] ss:$16 sps:$4 sm:$0xff]  }
  0xe5   : > { %8069 = vmatprep.subr.bf16.mxu1 %v11376_v30  ;;  %v11448_v29 = vld [vmem:[%s13356_s10 + $0xb64] ss:$16 sps:$4 sm:$0xff]   ;;  %v11443_v30 = vld [vmem:[%s13356_s10 + $0x960] ss:$16 sps:$4 sm:$0xff]  }
  0xe6   : > { %7979 = vmatmul.mubr.bf16.vlgmr.msra.gmra.mxu0 %v13543_v27 }
  0xe7   : > { %8020 = vmatmul.mubr.bf16.vlgmr.msra.gmra.mxu1 %v13550_v31  ;;  %8029 = vmatpush1.bf16.msra.mxu0 %v11371_v32  ;;  %v11446_v32 = vld [vmem:[%s13356_s10 + $0xb60] ss:$16 sps:$4 sm:$0xff]  }
  0xe8   : > { %8070 = vmatpush1.bf16.msra.mxu1 %v11374_v7  ;;  %8030 = vmatprep.subr.bf16.mxu0 %v11379_v34  ;;  %v11451_v7 = vld [vmem:[%s13356_s10 + $0x944] ss:$16 sps:$4 sm:$0xff]  }
  0xe9   : > { %8071 = vmatprep.subr.bf16.mxu1 %v11382_v35  ;;  %8060 = vmatprep.mubr.bf16.mxu0 %v13571_v42  ;;  %v11454_v34 = vld [vmem:[%s13356_s10 + $0xb44] ss:$16 sps:$4 sm:$0xff]   ;;  %v1629_v35 = vcombine.high %v13554_v33, %v13554_v33  ;;  %v11458_v33 = vld [vmem:[%s13356_s10 + $0xb20] ss:$16 sps:$4 sm:$0xff]  }
  0xea   : > { %8101 = vmatprep.mubr.bf16.mxu1 %v13576_v44 }
  0xeb   : > { %8031 = vmatpush1.bf16.msra.mxu0 %v11377_v38  ;;  %v11452_v38 = vld [vmem:[%s13356_s10 + $0xb40] ss:$16 sps:$4 sm:$0xff]  }
  0xec   : > { %8072 = vmatpush1.bf16.msra.mxu1 %v11380_v39  ;;  %8032 = vmatprep.subr.bf16.mxu0 %v11385_v40  ;;  %v11457_v39 = vld [vmem:[%s13356_s10 + $0x924] ss:$16 sps:$4 sm:$0xff]  }
  0xed   : > { %8073 = vmatprep.subr.bf16.mxu1 %v11388_v41  ;;  %v11460_v40 = vld [vmem:[%s13356_s10 + $0xb24] ss:$16 sps:$4 sm:$0xff]   ;;  %v13630_v41 = vrot.slane %v1629_v35, %v13423_v50  ;;  %v11518_v35 = vld [vmem:[%s13356_s10 + $0xfe0] ss:$16 sps:$4 sm:$0xff]  }
  0xef   : > { %8033 = vmatpush1.bf16.msra.mxu0 %v11383_v45  ;;  %v11455_v45 = vld [vmem:[%s13356_s10 + $0x920] ss:$16 sps:$4 sm:$0xff]  }
  0xf0   : > { %8074 = vmatpush1.bf16.msra.mxu1 %v11386_v46  ;;  %8034 = vmatprep.subr.bf16.mxu0 %v11391_v47  ;;  %v11463_v46 = vld [vmem:[%s13356_s10 + $0x904] ss:$16 sps:$4 sm:$0xff]  }
  0xf1   : > { %8075 = vmatprep.subr.bf16.mxu1 %v11394_v48  ;;  %v11466_v47 = vld [vmem:[%s13356_s10 + $0xb04] ss:$16 sps:$4 sm:$0xff]   ;;  %v1645_v48 = vcombine.high %v13630_v41, %v13630_v41 }
  0xf3   : > { %8035 = vmatpush1.bf16.msra.mxu0 %v11389_v49  ;;  %v11461_v49 = vld [vmem:[%s13356_s10 + $0x900] ss:$16 sps:$4 sm:$0xff]  }
  0xf4   : > { %8076 = vmatpush1.bf16.msra.mxu1 %v11392_v51  ;;  %8036 = vmatprep.subr.bf16.mxu0 %v11397_v52  ;;  %v13641_v51 = vrot.slane %v13560_v36, %v13423_v50  ;;  %v11464_v52 = vld [vmem:[%s13356_s10 + $0xb00] ss:$16 sps:$4 sm:$0xff]  }
  0xf5   : > { %8077 = vmatprep.subr.bf16.mxu1 %v11400_v53  ;;  %v11469_v53 = vld [vmem:[%s13356_s10 + $0xce4] ss:$16 sps:$4 sm:$0xff]   ;;  %v11467_v36 = vld [vmem:[%s13356_s10 + $0xce0] ss:$16 sps:$4 sm:$0xff]  }
  0xf7   : > { %8037 = vmatpush1.bf16.msra.mxu0 %v11395_v54  ;;  %v11472_v54 = vld [vmem:[%s13356_s10 + $0xee4] ss:$16 sps:$4 sm:$0xff]  }
  0xf8   : > { %8078 = vmatpush1.bf16.msra.mxu1 %v11398_v55  ;;  %8038 = vmatprep.subr.bf16.mxu0 %v11403_v56  ;;  %v13647_v55 = vrot.slane %v1645_v48, %v13423_v50  ;;  %v13651_v56 = vcombine.high %v13641_v51, %v13641_v51  ;;  %v11535_v48 = vld [vmem:[%s13356_s10 + $0xd84] ss:$16 sps:$4 sm:$0xff]  }
  0xf9   : > { %8079 = vmatprep.subr.bf16.mxu1 %v11406_v57  ;;  %v11470_v57 = vld [vmem:[%s13356_s10 + $0xee0] ss:$16 sps:$4 sm:$0xff]  }
  0xfb   : > { %8039 = vmatpush1.bf16.msra.mxu0 %v11401_v58  ;;  %v11475_v58 = vld [vmem:[%s13356_s10 + $0xcc4] ss:$16 sps:$4 sm:$0xff]  }
  0xfc   : > { %8080 = vmatpush1.bf16.msra.mxu1 %v11404_v59  ;;  %8040 = vmatprep.subr.bf16.mxu0 %v11409_v60  ;;  %v11478_v59 = vld [vmem:[%s13356_s10 + $0xec4] ss:$16 sps:$4 sm:$0xff]   ;;  %v13659_v60 = vcombine.high %v13647_v55, %v13647_v55 }
  0xfd   : > { %8081 = vmatprep.subr.bf16.mxu1 %v11412_v62  ;;  %v11473_v62 = vld [vmem:[%s13356_s10 + $0xcc0] ss:$16 sps:$4 sm:$0xff]  }
  0xff   : > { %8041 = vmatpush1.bf16.msra.mxu0 %v11407_v63  ;;  %v11476_v63 = vld [vmem:[%s13356_s10 + $0xec0] ss:$16 sps:$4 sm:$0xff]  }
 0x100   : > { %8082 = vmatpush1.bf16.msra.mxu1 %v11410_v0  ;;  %8042 = vmatprep.subr.bf16.mxu0 %v11415_v2  ;;  %v11481_v0 = vld [vmem:[%s13356_s10 + $0xca4] ss:$16 sps:$4 sm:$0xff]  }
 0x101   : > { %8083 = vmatprep.subr.bf16.mxu1 %v11418_v3  ;;  %v11484_v2 = vld [vmem:[%s13356_s10 + $0xea4] ss:$16 sps:$4 sm:$0xff]   ;;  %v11479_v3 = vld [vmem:[%s13356_s10 + $0xca0] ss:$16 sps:$4 sm:$0xff]  }
 0x103   : > { %8043 = vmatpush1.bf16.msra.mxu0 %v11413_v4  ;;  %v11482_v4 = vld [vmem:[%s13356_s10 + $0xea0] ss:$16 sps:$4 sm:$0xff]  }
 0x104   : > { %8084 = vmatpush1.bf16.msra.mxu1 %v11416_v5  ;;  %8044 = vmatprep.subr.bf16.mxu0 %v11421_v6  ;;  %v11487_v5 = vld [vmem:[%s13356_s10 + $0xc84] ss:$16 sps:$4 sm:$0xff]  }
 0x105   : > { %8085 = vmatprep.subr.bf16.mxu1 %v11424_v8  ;;  %v11490_v6 = vld [vmem:[%s13356_s10 + $0xe84] ss:$16 sps:$4 sm:$0xff]   ;;  %v11485_v8 = vld [vmem:[%s13356_s10 + $0xc80] ss:$16 sps:$4 sm:$0xff]  }
 0x107   : > { %8045 = vmatpush2.bf16.msra.mxu0 %v11419_v9  ;;  %v11488_v9 = vld [vmem:[%s13356_s10 + $0xe80] ss:$16 sps:$4 sm:$0xff]  }
 0x108   : > { %8086 = vmatpush2.bf16.msra.mxu1 %v11422_v10  ;;  %8046 = vmatprep.subr.bf16.mxu0 %v11427_v11  ;;  %v11493_v10 = vld [vmem:[%s13356_s10 + $0xc64] ss:$16 sps:$4 sm:$0xff]  }
 0x109   : > { %8087 = vmatprep.subr.bf16.mxu1 %v11430_v12  ;;  %v11496_v11 = vld [vmem:[%s13356_s10 + $0xe64] ss:$16 sps:$4 sm:$0xff]   ;;  %v11491_v12 = vld [vmem:[%s13356_s10 + $0xc60] ss:$16 sps:$4 sm:$0xff]  }
 0x10b   : > { %8047 = vmatpush2.bf16.msra.mxu0 %v11425_v13  ;;  %v11494_v13 = vld [vmem:[%s13356_s10 + $0xe60] ss:$16 sps:$4 sm:$0xff]  }
 0x10c   : > { %8088 = vmatpush2.bf16.msra.mxu1 %v11428_v15  ;;  %8048 = vmatprep.subr.bf16.mxu0 %v11433_v16  ;;  %v11499_v15 = vld [vmem:[%s13356_s10 + $0xc44] ss:$16 sps:$4 sm:$0xff]  }
 0x10d   : > { %8089 = vmatprep.subr.bf16.mxu1 %v11436_v17  ;;  %v11502_v16 = vld [vmem:[%s13356_s10 + $0xe44] ss:$16 sps:$4 sm:$0xff]   ;;  %v11497_v17 = vld [vmem:[%s13356_s10 + $0xc40] ss:$16 sps:$4 sm:$0xff]  }
 0x10f   : > { %8049 = vmatpush2.bf16.msra.mxu0 %v11431_v20  ;;  %v11500_v20 = vld [vmem:[%s13356_s10 + $0xe40] ss:$16 sps:$4 sm:$0xff]  }
 0x110   : > { %8090 = vmatpush2.bf16.msra.mxu1 %v11434_v21  ;;  %8050 = vmatprep.subr.bf16.mxu0 %v11439_v22  ;;  %v11505_v21 = vld [vmem:[%s13356_s10 + $0xc24] ss:$16 sps:$4 sm:$0xff]  }
 0x111   : > { %8091 = vmatprep.subr.bf16.mxu1 %v11442_v23  ;;  %v11508_v22 = vld [vmem:[%s13356_s10 + $0xe24] ss:$16 sps:$4 sm:$0xff]   ;;  %v11503_v23 = vld [vmem:[%s13356_s10 + $0xc20] ss:$16 sps:$4 sm:$0xff]  }
 0x113   : > { %8051 = vmatpush2.bf16.msra.mxu0 %v11437_v25  ;;  %v11506_v25 = vld [vmem:[%s13356_s10 + $0xe20] ss:$16 sps:$4 sm:$0xff]  }
 0x114   : > { %8092 = vmatpush2.bf16.msra.mxu1 %v11440_v26  ;;  %8052 = vmatprep.subr.bf16.mxu0 %v11445_v28  ;;  %v11511_v26 = vld [vmem:[%s13356_s10 + $0xc04] ss:$16 sps:$4 sm:$0xff]  }
 0x115   : > { %8093 = vmatprep.subr.bf16.mxu1 %v11448_v29  ;;  %v11514_v28 = vld [vmem:[%s13356_s10 + $0xe04] ss:$16 sps:$4 sm:$0xff]   ;;  %v11509_v29 = vld [vmem:[%s13356_s10 + $0xc00] ss:$16 sps:$4 sm:$0xff]  }
 0x117   : > { %8053 = vmatpush2.bf16.msra.mxu0 %v11443_v30  ;;  %v11512_v30 = vld [vmem:[%s13356_s10 + $0xe00] ss:$16 sps:$4 sm:$0xff]  }
 0x118   : > { %8094 = vmatpush2.bf16.msra.mxu1 %v11446_v32  ;;  %8054 = vmatprep.subr.bf16.mxu0 %v11451_v7  ;;  %v11517_v32 = vld [vmem:[%s13356_s10 + $0xde4] ss:$16 sps:$4 sm:$0xff]  }
 0x119   : > { %8095 = vmatprep.subr.bf16.mxu1 %v11454_v34  ;;  %v11520_v7 = vld [vmem:[%s13356_s10 + $0xfe4] ss:$16 sps:$4 sm:$0xff]   ;;  %v11515_v34 = vld [vmem:[%s13356_s10 + $0xde0] ss:$16 sps:$4 sm:$0xff]  }
 0x11b   : > { %8055 = vmatpush2.bf16.msra.mxu0 %v11449_v37  ;;  %v11523_v37 = vld [vmem:[%s13356_s10 + $0xdc4] ss:$16 sps:$4 sm:$0xff]  }
 0x11c   : > { %8096 = vmatpush2.bf16.msra.mxu1 %v11452_v38  ;;  %8056 = vmatprep.subr.bf16.mxu0 %v11457_v39  ;;  %v11526_v38 = vld [vmem:[%s13356_s10 + $0xfc4] ss:$16 sps:$4 sm:$0xff]   ;;  %v11521_v39 = vld [vmem:[%s13356_s10 + $0xdc0] ss:$16 sps:$4 sm:$0xff]  }
 0x11d   : > { %8097 = vmatprep.subr.bf16.mxu1 %v11460_v40  ;;  %v11524_v40 = vld [vmem:[%s13356_s10 + $0xfc0] ss:$16 sps:$4 sm:$0xff]  }
 0x11f   : > { %8057 = vmatpush2.bf16.msra.mxu0 %v11455_v45  ;;  %v11529_v45 = vld [vmem:[%s13356_s10 + $0xda4] ss:$16 sps:$4 sm:$0xff]  }
 0x120   : > { %8098 = vmatpush2.bf16.msra.mxu1 %v11458_v33  ;;  %8058 = vmatprep.subr.bf16.mxu0 %v11463_v46  ;;  %v11532_v33 = vld [vmem:[%s13356_s10 + $0xfa4] ss:$16 sps:$4 sm:$0xff]   ;;  %v11527_v46 = vld [vmem:[%s13356_s10 + $0xda0] ss:$16 sps:$4 sm:$0xff]  }
 0x121   : > { %8099 = vmatprep.subr.bf16.mxu1 %v11466_v47  ;;  %v11530_v47 = vld [vmem:[%s13356_s10 + $0xfa0] ss:$16 sps:$4 sm:$0xff]  }
 0x123   : > { %8059 = vmatpush2.bf16.msra.mxu0 %v11461_v49  ;;  %v11538_v49 = vld [vmem:[%s13356_s10 + $0xf84] ss:$16 sps:$4 sm:$0xff]  }
 0x124   : > { %8100 = vmatpush2.bf16.msra.mxu1 %v11464_v52  ;;  %8110 = vmatprep.subr.bf16.mxu0 %v11469_v53  ;;  %v11533_v52 = vld [vmem:[%s13356_s10 + $0xd80] ss:$16 sps:$4 sm:$0xff]  }
 0x125   : > { %8151 = vmatprep.subr.bf16.mxu1 %v11472_v54  ;;  %v11536_v53 = vld [vmem:[%s13356_s10 + $0xf80] ss:$16 sps:$4 sm:$0xff]   ;;  %v11541_v54 = vld [vmem:[%s13356_s10 + $0xd64] ss:$16 sps:$4 sm:$0xff]  }
 0x126   : > { %8061 = vmatmul.mubr.bf16.vlgmr.msra.gmra.mxu0 %v13641_v51 }
 0x127   : > { %8102 = vmatmul.mubr.bf16.vlgmr.msra.gmra.mxu1 %v13651_v56  ;;  %8111 = vmatpush1.bf16.msra.mxu0 %v11467_v36  ;;  %v11544_v36 = vld [vmem:[%s13356_s10 + $0xf64] ss:$16 sps:$4 sm:$0xff]  }
 0x128   : > { %8152 = vmatpush1.bf16.msra.mxu1 %v11470_v57  ;;  %8112 = vmatprep.subr.bf16.mxu0 %v11475_v58  ;;  %v11539_v57 = vld [vmem:[%s13356_s10 + $0xd60] ss:$16 sps:$4 sm:$0xff]  }
 0x129   : > { %8153 = vmatprep.subr.bf16.mxu1 %v11478_v59  ;;  %8142 = vmatprep.mubr.bf16.mxu0 %v13647_v55  ;;  %v11542_v58 = vld [vmem:[%s13356_s10 + $0xf60] ss:$16 sps:$4 sm:$0xff]   ;;  %v11547_v59 = vld [vmem:[%s13356_s10 + $0xd44] ss:$16 sps:$4 sm:$0xff]  }
 0x12a   : > { %8183 = vmatprep.mubr.bf16.mxu1 %v13659_v60 }
 0x12b   : > { %8113 = vmatpush1.bf16.msra.mxu0 %v11473_v62  ;;  %v11550_v62 = vld [vmem:[%s13356_s10 + $0xf44] ss:$16 sps:$4 sm:$0xff]  }
 0x12c   : > { %8154 = vmatpush1.bf16.msra.mxu1 %v11476_v63  ;;  %8114 = vmatprep.subr.bf16.mxu0 %v11481_v0  ;;  %v11545_v63 = vld [vmem:[%s13356_s10 + $0xd40] ss:$16 sps:$4 sm:$0xff]  }
 0x12d   : > { %8155 = vmatprep.subr.bf16.mxu1 %v11484_v2  ;;  %v11548_v0 = vld [vmem:[%s13356_s10 + $0xf40] ss:$16 sps:$4 sm:$0xff]  }
 0x12e   : > { %v13715_v2 = vld [vmem:[#allocation2 + $0x10] sm:$0xff] }
 0x12f   : > { %8115 = vmatpush1.bf16.msra.mxu0 %v11479_v3  ;;  %v11553_v3 = vld [vmem:[%s13356_s10 + $0xd24] ss:$16 sps:$4 sm:$0xff]  }
 0x130   : > { %8156 = vmatpush1.bf16.msra.mxu1 %v11482_v4  ;;  %8116 = vmatprep.subr.bf16.mxu0 %v11487_v5  ;;  %v11556_v4 = vld [vmem:[%s13356_s10 + $0xf24] ss:$16 sps:$4 sm:$0xff]   ;;  %v13721_v5 = vrot.slane %v13715_v2, %v13423_v50 }
 0x131   : > { %8157 = vmatprep.subr.bf16.mxu1 %v11490_v6  ;;  %v11551_v6 = vld [vmem:[%s13356_s10 + $0xd20] ss:$16 sps:$4 sm:$0xff]  }
 0x133   : > { %8117 = vmatpush1.bf16.msra.mxu0 %v11485_v8  ;;  %v11554_v8 = vld [vmem:[%s13356_s10 + $0xf20] ss:$16 sps:$4 sm:$0xff]  }
 0x134   : > { %8158 = vmatpush1.bf16.msra.mxu1 %v11488_v9  ;;  %8118 = vmatprep.subr.bf16.mxu0 %v11493_v10  ;;  %v11559_v9 = vld [vmem:[%s13356_s10 + $0xd04] ss:$16 sps:$4 sm:$0xff]  }
 0x135   : > { %8159 = vmatprep.subr.bf16.mxu1 %v11496_v11  ;;  %v11562_v10 = vld [vmem:[%s13356_s10 + $0xf04] ss:$16 sps:$4 sm:$0xff]   ;;  %v11557_v11 = vld [vmem:[%s13356_s10 + $0xd00] ss:$16 sps:$4 sm:$0xff]  }
 0x137   : > { %8119 = vmatpush1.bf16.msra.mxu0 %v11491_v12  ;;  %v1693_v12 = vcombine.high %v13721_v5, %v13721_v5 }
 0x138   : > { %8160 = vmatpush1.bf16.msra.mxu1 %v11494_v13  ;;  %8120 = vmatprep.subr.bf16.mxu0 %v11499_v15  ;;  %v11560_v13 = vld [vmem:[%s13356_s10 + $0xf00] ss:$16 sps:$4 sm:$0xff]  }
 0x139   : > { %8161 = vmatprep.subr.bf16.mxu1 %v11502_v16  ;;  %v1553_v15 = vld [vmem:[%s297_s7] sm:$0xf]  ;;  %v13735_v16 = vrot.slane %v13630_v41, %v13423_v50 }
 0x13a   : > { %v11564_v41 = vld [vmem:[%s13356_s10 + $0x10e0] ss:$16 sps:$4 sm:$0xff]  }
 0x13b   : > { %8121 = vmatpush1.bf16.msra.mxu0 %v11497_v17  ;;  %v1557_v17 = vsub.s32 0, %v13415_v43 }
 0x13c   : > { %8162 = vmatpush1.bf16.msra.mxu1 %v11500_v20  ;;  %8122 = vmatprep.subr.bf16.mxu0 %v11505_v21  ;;  %v11566_v20 = vld [vmem:[%s13356_s10 + $0x10e4] ss:$16 sps:$4 sm:$0xff]  }
 0x13d   : > { %8163 = vmatprep.subr.bf16.mxu1 %v11508_v22  ;;  %v11569_v21 = vld [vmem:[%s13356_s10 + $0x12e4] ss:$16 sps:$4 sm:$0xff]   ;;  %v1561_v22 = vsub.s32 1, %v13415_v43 }
 0x13f   : > { %8123 = vmatpush1.bf16.msra.mxu0 %v11503_v23  ;;  %v13742_v23 = vrot.slane %v1693_v12, %v13423_v50  ;;  %v11597_v12 = vld [vmem:[%s13356_s10 + $0x1240] ss:$16 sps:$4 sm:$0xff]  }
 0x140   : > { %8164 = vmatpush1.bf16.msra.mxu1 %v11506_v25  ;;  %8124 = vmatprep.subr.bf16.mxu0 %v11511_v26  ;;  %v13746_v25 = vcombine.high %v13735_v16, %v13735_v16  ;;  %v11567_v26 = vld [vmem:[%s13356_s10 + $0x12e0] ss:$16 sps:$4 sm:$0xff]  }
 0x141   : > { %8165 = vmatprep.subr.bf16.mxu1 %v11514_v28  ;;  %v1558_v28 = vrot.slane %v1553_v15, %v1557_v17  ;;  %v11600_v17 = vld [vmem:[%s13356_s10 + $0x1020] ss:$16 sps:$4 sm:$0xff]  }
 0x143   : > { %8125 = vmatpush1.bf16.msra.mxu0 %v11509_v29  ;;  %v11572_v29 = vld [vmem:[%s13356_s10 + $0x10c4] ss:$16 sps:$4 sm:$0xff]  }
 0x144   : > { %8166 = vmatpush1.bf16.msra.mxu1 %v11512_v30  ;;  %8126 = vmatprep.subr.bf16.mxu0 %v11517_v32  ;;  %v11575_v30 = vld [vmem:[%s13356_s10 + $0x12c4] ss:$16 sps:$4 sm:$0xff]   ;;  %v1562_v32 = vrot.slane %v1553_v15, %v1561_v22 }
 0x145   : > { %8167 = vmatprep.subr.bf16.mxu1 %v11520_v7  ;;  %v13754_v7 = vcombine.high %v13742_v23, %v13742_v23  ;;  %v11605_v15 = vld [vmem:[%s13356_s10 + $0x1224] ss:$16 sps:$4 sm:$0xff]  }
 0x146   : > { %v11611_v22 = vld [vmem:[%s13356_s10 + $0x1204] ss:$16 sps:$4 sm:$0xff]  }
 0x147   : > { %8127 = vmatpush2.bf16.msra.mxu0 %v11515_v34 }
 0x148   : > { %8168 = vmatpush2.bf16.msra.mxu1 %v11518_v35  ;;  %8128 = vmatprep.subr.bf16.mxu0 %v11523_v37  ;;  %v11570_v37 = vld [vmem:[%s13356_s10 + $0x10c0] ss:$16 sps:$4 sm:$0xff]  }
 0x149   : > { %8169 = vmatprep.subr.bf16.mxu1 %v11526_v38  ;;  %v11573_v38 = vld [vmem:[%s13356_s10 + $0x12c0] ss:$16 sps:$4 sm:$0xff]  }
 0x14b   : > { %8129 = vmatpush2.bf16.msra.mxu0 %v11521_v39 }
 0x14c   : > { %8170 = vmatpush2.bf16.msra.mxu1 %v11524_v40  ;;  %8130 = vmatprep.subr.bf16.mxu0 %v11529_v45 }
 0x14d   : > { %8171 = vmatprep.subr.bf16.mxu1 %v11532_v33  ;;  %v11578_v33 = vld [vmem:[%s13356_s10 + $0x10a4] ss:$16 sps:$4 sm:$0xff]  }
 0x14f   : > { %8131 = vmatpush2.bf16.msra.mxu0 %v11527_v46  ;;  %v11581_v46 = vld [vmem:[%s13356_s10 + $0x12a4] ss:$16 sps:$4 sm:$0xff]  }
 0x150   : > { %8172 = vmatpush2.bf16.msra.mxu1 %v11530_v47  ;;  %8132 = vmatprep.subr.bf16.mxu0 %v11535_v48 }
 0x151   : > { %8173 = vmatprep.subr.bf16.mxu1 %v11538_v49  ;;  %v11576_v49 = vld [vmem:[%s13356_s10 + $0x10a0] ss:$16 sps:$4 sm:$0xff]  }
 0x153   : > { %8133 = vmatpush2.bf16.msra.mxu0 %v11533_v52  ;;  %v11579_v52 = vld [vmem:[%s13356_s10 + $0x12a0] ss:$16 sps:$4 sm:$0xff]  }
 0x154   : > { %8174 = vmatpush2.bf16.msra.mxu1 %v11536_v53  ;;  %8134 = vmatprep.subr.bf16.mxu0 %v11541_v54 }
 0x155   : > { %8175 = vmatprep.subr.bf16.mxu1 %v11544_v36 }
 0x157   : > { %8135 = vmatpush2.bf16.msra.mxu0 %v11539_v57 }
 0x158   : > { %8176 = vmatpush2.bf16.msra.mxu1 %v11542_v58  ;;  %8136 = vmatprep.subr.bf16.mxu0 %v11547_v59  ;;  %v11584_v59 = vld [vmem:[%s13356_s10 + $0x1084] ss:$16 sps:$4 sm:$0xff]  }
 0x159   : > { %8177 = vmatprep.subr.bf16.mxu1 %v11550_v62  ;;  %v11587_v62 = vld [vmem:[%s13356_s10 + $0x1284] ss:$16 sps:$4 sm:$0xff]  }
 0x15b   : > { %8137 = vmatpush2.bf16.msra.mxu0 %v11545_v63  ;;  %v11582_v63 = vld [vmem:[%s13356_s10 + $0x1080] ss:$16 sps:$4 sm:$0xff]  }
 0x15c   : > { %8178 = vmatpush2.bf16.msra.mxu1 %v11548_v0  ;;  %8138 = vmatprep.subr.bf16.mxu0 %v11553_v3  ;;  %v11585_v0 = vld [vmem:[%s13356_s10 + $0x1280] ss:$16 sps:$4 sm:$0xff]   ;;  %v11590_v3 = vld [vmem:[%s13356_s10 + $0x1064] ss:$16 sps:$4 sm:$0xff]  }
 0x15d   : > { %8179 = vmatprep.subr.bf16.mxu1 %v11556_v4  ;;  %v11593_v4 = vld [vmem:[%s13356_s10 + $0x1264] ss:$16 sps:$4 sm:$0xff]  }
 0x15f   : > { %8139 = vmatpush2.bf16.msra.mxu0 %v11551_v6  ;;  %v11588_v6 = vld [vmem:[%s13356_s10 + $0x1060] ss:$16 sps:$4 sm:$0xff]  }
 0x160   : > { %8180 = vmatpush2.bf16.msra.mxu1 %v11554_v8  ;;  %8140 = vmatprep.subr.bf16.mxu0 %v11559_v9  ;;  %v11591_v8 = vld [vmem:[%s13356_s10 + $0x1260] ss:$16 sps:$4 sm:$0xff]   ;;  %v11596_v9 = vld [vmem:[%s13356_s10 + $0x1044] ss:$16 sps:$4 sm:$0xff]  }
 0x161   : > { %8181 = vmatprep.subr.bf16.mxu1 %v11562_v10  ;;  %v11599_v10 = vld [vmem:[%s13356_s10 + $0x1244] ss:$16 sps:$4 sm:$0xff]  }
 0x163   : > { %8141 = vmatpush2.bf16.msra.mxu0 %v11557_v11  ;;  %v11594_v11 = vld [vmem:[%s13356_s10 + $0x1040] ss:$16 sps:$4 sm:$0xff]  }
 0x164   : > { %8182 = vmatpush2.bf16.msra.mxu1 %v11560_v13  ;;  %8192 = vmatprep.subr.bf16.mxu0 %v11566_v20  ;;  %v11602_v13 = vld [vmem:[%s13356_s10 + $0x1024] ss:$16 sps:$4 sm:$0xff]   ;;  %v11603_v20 = vld [vmem:[%s13356_s10 + $0x1220] ss:$16 sps:$4 sm:$0xff]  }
 0x165   : > { %8233 = vmatprep.subr.bf16.mxu1 %v11569_v21  ;;  %v11608_v21 = vld [vmem:[%s13356_s10 + $0x1004] ss:$16 sps:$4 sm:$0xff]  }
 0x166   : > { %v7898_v34 = vpop.f32.mrf.mxu0  ;;  %8143 = vmatmul.mubr.bf16.vlgmr.msra.gmra.mxu0 %v13735_v16 }
 0x167   : > { %v7939_v35 = vpop.f32.mrf.mxu1  ;;  %8184 = vmatmul.mubr.bf16.vlgmr.msra.gmra.mxu1 %v13746_v25  ;;  %v7899_v39 = vadd.f32 %v7898_v34, %v1558_v28  ;;  %8193 = vmatpush1.bf16.msra.mxu0 %v11564_v41  ;;  %v11606_v41 = vld [vmem:[%s13356_s10 + $0x1000] ss:$16 sps:$4 sm:$0xff]   ;;  %v11614_v28 = vld [vmem:[%s13356_s10 + $0x11e4] ss:$16 sps:$4 sm:$0xff]  }
 0x168   : > { %8234 = vmatpush1.bf16.msra.mxu1 %v11567_v26  ;;  %v7900_v40 = vpop.f32.mrf.mxu0  ;;  %8194 = vmatprep.subr.bf16.mxu0 %v11572_v29  ;;  %v11609_v26 = vld [vmem:[%s13356_s10 + $0x1200] ss:$16 sps:$4 sm:$0xff]   ;;  %v11617_v29 = vld [vmem:[%s13356_s10 + $0x13e4] ss:$16 sps:$4 sm:$0xff]  }
 0x169   : > { %v7941_v45 = vpop.f32.mrf.mxu1  ;;  %8235 = vmatprep.subr.bf16.mxu1 %v11575_v30  ;;  %v13762_v47 = vadd.f32 %v7939_v35, %v7899_v39  ;;  %v7901_v48 = vadd.f32 %v7900_v40, %v1562_v32  ;;  %8224 = vmatprep.mubr.bf16.mxu0 %v13742_v23  ;;  %v11612_v30 = vld [vmem:[%s13356_s10 + $0x11e0] ss:$16 sps:$4 sm:$0xff]   ;;  %v11620_v34 = vld [vmem:[%s13356_s10 + $0x11c4] ss:$16 sps:$4 sm:$0xff]  }
 0x16a   : > { %8265 = vmatprep.mubr.bf16.mxu1 %v13754_v7  ;;  %v7902_v53 = vpop.f32.mrf.mxu0  ;;  %v11615_v32 = vld [vmem:[%s13356_s10 + $0x13e0] ss:$16 sps:$4 sm:$0xff]   ;;  %v11623_v35 = vld [vmem:[%s13356_s10 + $0x13c4] ss:$16 sps:$4 sm:$0xff]  }
 0x16b   : > { %v7943_v54 = vpop.f32.mrf.mxu1  ;;  %v13768_v36 = vadd.f32 %v7941_v45, %v7901_v48  ;;  %8195 = vmatpush1.bf16.msra.mxu0 %v11570_v37  ;;  %v11618_v37 = vld [vmem:[%s13356_s10 + $0x11c0] ss:$16 sps:$4 sm:$0xff]   ;;  %v11626_v39 = vld [vmem:[%s13356_s10 + $0x11a4] ss:$16 sps:$4 sm:$0xff]  }
 0x16c   : > { %8236 = vmatpush1.bf16.msra.mxu1 %v11573_v38  ;;  %v7903_v57 = vpop.f32.mrf.mxu0  ;;  %8196 = vmatprep.subr.bf16.mxu0 %v11578_v33  ;;  %v11621_v38 = vld [vmem:[%s13356_s10 + $0x13c0] ss:$16 sps:$4 sm:$0xff]   ;;  %v11629_v40 = vld [vmem:[%s13356_s10 + $0x13a4] ss:$16 sps:$4 sm:$0xff]  }
 0x16d   : > { %v7944_v58 = vpop.f32.mrf.mxu1  ;;  %8237 = vmatprep.subr.bf16.mxu1 %v11581_v46  ;;  %v11624_v45 = vld [vmem:[%s13356_s10 + $0x11a0] ss:$16 sps:$4 sm:$0xff]   ;;  %v11632_v46 = vld [vmem:[%s13356_s10 + $0x1184] ss:$16 sps:$4 sm:$0xff]  }
 0x16e   : > { %v11627_v33 = vld [vmem:[%s13356_s10 + $0x13a0] ss:$16 sps:$4 sm:$0xff]   ;;  %v11635_v48 = vld [vmem:[%s13356_s10 + $0x1384] ss:$16 sps:$4 sm:$0xff]  }
 0x16f   : > { %8197 = vmatpush1.bf16.msra.mxu0 %v11576_v49  ;;  %v11630_v49 = vld [vmem:[%s13356_s10 + $0x1180] ss:$16 sps:$4 sm:$0xff]   ;;  %v11638_v53 = vld [vmem:[%s13356_s10 + $0x1164] ss:$16 sps:$4 sm:$0xff]  }
 0x170   : > { %8238 = vmatpush1.bf16.msra.mxu1 %v11579_v52  ;;  %8198 = vmatprep.subr.bf16.mxu0 %v11584_v59  ;;  %v11633_v52 = vld [vmem:[%s13356_s10 + $0x1380] ss:$16 sps:$4 sm:$0xff]   ;;  %v11641_v54 = vld [vmem:[%s13356_s10 + $0x1364] ss:$16 sps:$4 sm:$0xff]  }
 0x171   : > { %8239 = vmatprep.subr.bf16.mxu1 %v11587_v62  ;;  %v11636_v57 = vld [vmem:[%s13356_s10 + $0x1160] ss:$16 sps:$4 sm:$0xff]   ;;  %v11644_v59 = vld [vmem:[%s13356_s10 + $0x1144] ss:$16 sps:$4 sm:$0xff]  }
 0x172   : > { %v11639_v58 = vld [vmem:[%s13356_s10 + $0x1360] ss:$16 sps:$4 sm:$0xff]   ;;  %v11647_v62 = vld [vmem:[%s13356_s10 + $0x1344] ss:$16 sps:$4 sm:$0xff]  }
 0x173   : > { %8199 = vmatpush1.bf16.msra.mxu0 %v11582_v63  ;;  %v1678_v63 = vcombine.high %v13715_v2, %v13715_v2  ;;  %v11648_v2 = vld [vmem:[%s13356_s10 + $0x1120] ss:$16 sps:$4 sm:$0xff]  }
 0x174   : > { %8240 = vmatpush1.bf16.msra.mxu1 %v11585_v0  ;;  %8200 = vmatprep.subr.bf16.mxu0 %v11590_v3  ;;  %v11642_v0 = vld [vmem:[%s13356_s10 + $0x1140] ss:$16 sps:$4 sm:$0xff]  }
 0x175   : > { %8241 = vmatprep.subr.bf16.mxu1 %v11593_v4  ;;  %v11645_v3 = vld [vmem:[%s13356_s10 + $0x1340] ss:$16 sps:$4 sm:$0xff]   ;;  %v11650_v4 = vld [vmem:[%s13356_s10 + $0x1124] ss:$16 sps:$4 sm:$0xff]  }
 0x177   : > { %8201 = vmatpush1.bf16.msra.mxu0 %v11588_v6  ;;  %v11653_v6 = vld [vmem:[%s13356_s10 + $0x1324] ss:$16 sps:$4 sm:$0xff]  }
 0x178   : > { %8242 = vmatpush1.bf16.msra.mxu1 %v11591_v8  ;;  %8202 = vmatprep.subr.bf16.mxu0 %v11596_v9  ;;  %v13819_v8 = vrot.slane %v1678_v63, %v13423_v50  ;;  %v11651_v9 = vld [vmem:[%s13356_s10 + $0x1320] ss:$16 sps:$4 sm:$0xff]  }
 0x179   : > { %8243 = vmatprep.subr.bf16.mxu1 %v11599_v10  ;;  %v11656_v10 = vld [vmem:[%s13356_s10 + $0x1104] ss:$16 sps:$4 sm:$0xff]   ;;  %v11681_v63 = vld [vmem:[%s13356_s10 + $0x1680] ss:$16 sps:$4 sm:$0xff]  }
 0x17b   : > { %8203 = vmatpush1.bf16.msra.mxu0 %v11594_v11  ;;  %v11659_v11 = vld [vmem:[%s13356_s10 + $0x1304] ss:$16 sps:$4 sm:$0xff]  }
 0x17c   : > { %8244 = vmatpush1.bf16.msra.mxu1 %v11597_v12  ;;  %8204 = vmatprep.subr.bf16.mxu0 %v11602_v13  ;;  %v1694_v12 = vcombine.high %v13819_v8, %v13819_v8  ;;  %v13829_v13 = vrot.slane %v13721_v5, %v13423_v50 }
 0x17d   : > { %8245 = vmatprep.subr.bf16.mxu1 %v11605_v15  ;;  %v11654_v15 = vld [vmem:[%s13356_s10 + $0x1100] ss:$16 sps:$4 sm:$0xff]  }
 0x17e   : > { %v13842_v5 = vcombine.high %v13829_v13, %v13829_v13 }
 0x17f   : > { %8205 = vmatpush1.bf16.msra.mxu0 %v11600_v17  ;;  %v11657_v17 = vld [vmem:[%s13356_s10 + $0x1300] ss:$16 sps:$4 sm:$0xff]  }
 0x180   : > { %8246 = vmatpush1.bf16.msra.mxu1 %v11603_v20  ;;  %8206 = vmatprep.subr.bf16.mxu0 %v11608_v21  ;;  %v11662_v20 = vld [vmem:[%s13356_s10 + $0x14e4] ss:$16 sps:$4 sm:$0xff]  }
 0x181   : > { %8247 = vmatprep.subr.bf16.mxu1 %v11611_v22  ;;  %v11665_v21 = vld [vmem:[%s13356_s10 + $0x16e4] ss:$16 sps:$4 sm:$0xff]   ;;  %v11660_v22 = vld [vmem:[%s13356_s10 + $0x14e0] ss:$16 sps:$4 sm:$0xff]  }
 0x183   : > { %8207 = vmatpush1.bf16.msra.mxu0 %v11606_v41  ;;  %v11663_v41 = vld [vmem:[%s13356_s10 + $0x16e0] ss:$16 sps:$4 sm:$0xff]  }
 0x184   : > { %8248 = vmatpush1.bf16.msra.mxu1 %v11609_v26  ;;  %8208 = vmatprep.subr.bf16.mxu0 %v11614_v28  ;;  %v13838_v26 = vrot.slane %v1694_v12, %v13423_v50  ;;  %v11668_v28 = vld [vmem:[%s13356_s10 + $0x14c4] ss:$16 sps:$4 sm:$0xff]  }
 0x185   : > { %8249 = vmatprep.subr.bf16.mxu1 %v11617_v29  ;;  %v11671_v29 = vld [vmem:[%s13356_s10 + $0x16c4] ss:$16 sps:$4 sm:$0xff]  }
 0x186   : > { %v11698_v12 = vld [vmem:[%s13356_s10 + $0x1424] ss:$16 sps:$4 sm:$0xff]  }
 0x187   : > { %8209 = vmatpush2.bf16.msra.mxu0 %v11612_v30  ;;  %v11666_v30 = vld [vmem:[%s13356_s10 + $0x14c0] ss:$16 sps:$4 sm:$0xff]  }
 0x188   : > { %8250 = vmatpush2.bf16.msra.mxu1 %v11615_v32  ;;  %8210 = vmatprep.subr.bf16.mxu0 %v11620_v34  ;;  %v11669_v32 = vld [vmem:[%s13356_s10 + $0x16c0] ss:$16 sps:$4 sm:$0xff]   ;;  %v13850_v34 = vcombine.high %v13838_v26, %v13838_v26 }
 0x189   : > { %8251 = vmatprep.subr.bf16.mxu1 %v11623_v35 }
 0x18b   : > { %8211 = vmatpush2.bf16.msra.mxu0 %v11618_v37 }
 0x18c   : > { %8252 = vmatpush2.bf16.msra.mxu1 %v11621_v38  ;;  %8212 = vmatprep.subr.bf16.mxu0 %v11626_v39 }
 0x18d   : > { %8253 = vmatprep.subr.bf16.mxu1 %v11629_v40 }
 0x18f   : > { %8213 = vmatpush2.bf16.msra.mxu0 %v11624_v45  ;;  %v11674_v45 = vld [vmem:[%s13356_s10 + $0x14a4] ss:$16 sps:$4 sm:$0xff]  }
 0x190   : > { %8254 = vmatpush2.bf16.msra.mxu1 %v11627_v33  ;;  %8214 = vmatprep.subr.bf16.mxu0 %v11632_v46  ;;  %v11677_v33 = vld [vmem:[%s13356_s10 + $0x16a4] ss:$16 sps:$4 sm:$0xff]  }
 0x191   : > { %8255 = vmatprep.subr.bf16.mxu1 %v11635_v48 }
 0x193   : > { %8215 = vmatpush2.bf16.msra.mxu0 %v11630_v49  ;;  %v11672_v49 = vld [vmem:[%s13356_s10 + $0x14a0] ss:$16 sps:$4 sm:$0xff]  }
 0x194   : > { %8256 = vmatpush2.bf16.msra.mxu1 %v11633_v52  ;;  %8216 = vmatprep.subr.bf16.mxu0 %v11638_v53  ;;  %v11675_v52 = vld [vmem:[%s13356_s10 + $0x16a0] ss:$16 sps:$4 sm:$0xff]  }
 0x195   : > { %8257 = vmatprep.subr.bf16.mxu1 %v11641_v54 }
 0x197   : > { %8217 = vmatpush2.bf16.msra.mxu0 %v11636_v57 }
 0x198   : > { %8258 = vmatpush2.bf16.msra.mxu1 %v11639_v58  ;;  %8218 = vmatprep.subr.bf16.mxu0 %v11644_v59  ;;  %v11683_v59 = vld [vmem:[%s13356_s10 + $0x1684] ss:$16 sps:$4 sm:$0xff]  }
 0x199   : > { %8259 = vmatprep.subr.bf16.mxu1 %v11647_v62  ;;  %v11678_v62 = vld [vmem:[%s13356_s10 + $0x1480] ss:$16 sps:$4 sm:$0xff]  }
 0x19b   : > { %8219 = vmatpush2.bf16.msra.mxu0 %v11642_v0  ;;  %v11686_v0 = vld [vmem:[%s13356_s10 + $0x1464] ss:$16 sps:$4 sm:$0xff]  }
 0x19c   : > { %8260 = vmatpush2.bf16.msra.mxu1 %v11645_v3  ;;  %8220 = vmatprep.subr.bf16.mxu0 %v11650_v4  ;;  %v11689_v3 = vld [vmem:[%s13356_s10 + $0x1664] ss:$16 sps:$4 sm:$0xff]   ;;  %v11684_v4 = vld [vmem:[%s13356_s10 + $0x1460] ss:$16 sps:$4 sm:$0xff]  }
 0x19d   : > { %8261 = vmatprep.subr.bf16.mxu1 %v11653_v6  ;;  %v11687_v6 = vld [vmem:[%s13356_s10 + $0x1660] ss:$16 sps:$4 sm:$0xff]  }
 0x19f   : > { %8221 = vmatpush2.bf16.msra.mxu0 %v11648_v2  ;;  %v11692_v2 = vld [vmem:[%s13356_s10 + $0x1444] ss:$16 sps:$4 sm:$0xff]  }
 0x1a0   : > { %8262 = vmatpush2.bf16.msra.mxu1 %v11651_v9  ;;  %8222 = vmatprep.subr.bf16.mxu0 %v11656_v10  ;;  %v11695_v9 = vld [vmem:[%s13356_s10 + $0x1644] ss:$16 sps:$4 sm:$0xff]   ;;  %v11690_v10 = vld [vmem:[%s13356_s10 + $0x1440] ss:$16 sps:$4 sm:$0xff]  }
 0x1a1   : > { %8263 = vmatprep.subr.bf16.mxu1 %v11659_v11  ;;  %v11693_v11 = vld [vmem:[%s13356_s10 + $0x1640] ss:$16 sps:$4 sm:$0xff]  }
 0x1a3   : > { %8223 = vmatpush2.bf16.msra.mxu0 %v11654_v15  ;;  %v11701_v15 = vld [vmem:[%s13356_s10 + $0x1624] ss:$16 sps:$4 sm:$0xff]  }
 0x1a4   : > { %8264 = vmatpush2.bf16.msra.mxu1 %v11657_v17  ;;  %8274 = vmatprep.subr.bf16.mxu0 %v11662_v20  ;;  %v11696_v17 = vld [vmem:[%s13356_s10 + $0x1420] ss:$16 sps:$4 sm:$0xff]  }
 0x1a5   : > { %8315 = vmatprep.subr.bf16.mxu1 %v11665_v21  ;;  %v11699_v20 = vld [vmem:[%s13356_s10 + $0x1620] ss:$16 sps:$4 sm:$0xff]   ;;  %v11704_v21 = vld [vmem:[%s13356_s10 + $0x1404] ss:$16 sps:$4 sm:$0xff]  }
 0x1a6   : > { %v7980_v35 = vpop.f32.mrf.mxu0  ;;  %8225 = vmatmul.mubr.bf16.vlgmr.msra.gmra.mxu0 %v13829_v13 }
 0x1a7   : > { %v8021_v37 = vpop.f32.mrf.mxu1  ;;  %8266 = vmatmul.mubr.bf16.vlgmr.msra.gmra.mxu1 %v13842_v5  ;;  %v7981_v38 = vadd.f32 %v7980_v35, %v13762_v47  ;;  %8275 = vmatpush1.bf16.msra.mxu0 %v11660_v22  ;;  %v11707_v22 = vld [vmem:[%s13356_s10 + $0x1604] ss:$16 sps:$4 sm:$0xff]   ;;  %v11711_v35 = vld [vmem:[%s13356_s10 + $0x17e0] ss:$16 sps:$4 sm:$0xff]  }
 0x1a8   : > { %8316 = vmatpush1.bf16.msra.mxu1 %v11663_v41  ;;  %v7982_v39 = vpop.f32.mrf.mxu0  ;;  %8276 = vmatprep.subr.bf16.mxu0 %v11668_v28  ;;  %v11702_v41 = vld [vmem:[%s13356_s10 + $0x1400] ss:$16 sps:$4 sm:$0xff]  }
 0x1a9   : > { %v8023_v40 = vpop.f32.mrf.mxu1  ;;  %8317 = vmatprep.subr.bf16.mxu1 %v11671_v29  ;;  %v13857_v46 = vadd.f32 %v8021_v37, %v7981_v38  ;;  %v7983_v48 = vadd.f32 %v7982_v39, %v13768_v36  ;;  %8306 = vmatprep.mubr.bf16.mxu0 %v13838_v26  ;;  %v11680_v36 = vld [vmem:[%s13356_s10 + $0x1484] ss:$16 sps:$4 sm:$0xff]   ;;  %v11705_v28 = vld [vmem:[%s13356_s10 + $0x1600] ss:$16 sps:$4 sm:$0xff]  }
 0x1aa   : > { %8347 = vmatprep.mubr.bf16.mxu1 %v13850_v34  ;;  %v7984_v47 = vpop.f32.mrf.mxu0  ;;  %v11710_v29 = vld [vmem:[%s13356_s10 + $0x15e4] ss:$16 sps:$4 sm:$0xff]   ;;  %v11714_v39 = vld [vmem:[%s13356_s10 + $0x15c0] ss:$16 sps:$4 sm:$0xff]  }
 0x1ab   : > { %v8025_v53 = vpop.f32.mrf.mxu1  ;;  %v13864_v54 = vadd.f32 %v8023_v40, %v7983_v48  ;;  %8277 = vmatpush1.bf16.msra.mxu0 %v11666_v30  ;;  %v11713_v30 = vld [vmem:[%s13356_s10 + $0x17e4] ss:$16 sps:$4 sm:$0xff]   ;;  %v11717_v40 = vld [vmem:[%s13356_s10 + $0x17c0] ss:$16 sps:$4 sm:$0xff]  }
 0x1ac   : > { %8318 = vmatpush1.bf16.msra.mxu1 %v11669_v32  ;;  %v7985_v57 = vpop.f32.mrf.mxu0  ;;  %8278 = vmatprep.subr.bf16.mxu0 %v11674_v45  ;;  %v11708_v32 = vld [vmem:[%s13356_s10 + $0x15e0] ss:$16 sps:$4 sm:$0xff]   ;;  %v11716_v37 = vld [vmem:[%s13356_s10 + $0x15c4] ss:$16 sps:$4 sm:$0xff]  }
 0x1ad   : > { %v8026_v58 = vpop.f32.mrf.mxu1  ;;  %8319 = vmatprep.subr.bf16.mxu1 %v11677_v33  ;;  %v11719_v38 = vld [vmem:[%s13356_s10 + $0x17c4] ss:$16 sps:$4 sm:$0xff]   ;;  %v11720_v48 = vld [vmem:[%s13356_s10 + $0x15a0] ss:$16 sps:$4 sm:$0xff]  }
 0x1ae   : > { %v11722_v45 = vld [vmem:[%s13356_s10 + $0x15a4] ss:$16 sps:$4 sm:$0xff]   ;;  %v11726_v53 = vld [vmem:[%s13356_s10 + $0x1580] ss:$16 sps:$4 sm:$0xff]  }
 0x1af   : > { %8279 = vmatpush1.bf16.msra.mxu0 %v11672_v49  ;;  %v11725_v33 = vld [vmem:[%s13356_s10 + $0x17a4] ss:$16 sps:$4 sm:$0xff]   ;;  %v11723_v49 = vld [vmem:[%s13356_s10 + $0x17a0] ss:$16 sps:$4 sm:$0xff]  }
 0x1b0   : > { %8320 = vmatpush1.bf16.msra.mxu1 %v11675_v52  ;;  %8280 = vmatprep.subr.bf16.mxu0 %v11680_v36  ;;  %v11728_v52 = vld [vmem:[%s13356_s10 + $0x1584] ss:$16 sps:$4 sm:$0xff]   ;;  %v11729_v57 = vld [vmem:[%s13356_s10 + $0x1780] ss:$16 sps:$4 sm:$0xff]  }
 0x1b1   : > { %8321 = vmatprep.subr.bf16.mxu1 %v11683_v59  ;;  %v11731_v47 = vld [vmem:[%s13356_s10 + $0x1784] ss:$16 sps:$4 sm:$0xff]   ;;  %v11732_v59 = vld [vmem:[%s13356_s10 + $0x1560] ss:$16 sps:$4 sm:$0xff]  }
 0x1b2   : > { %v11734_v58 = vld [vmem:[%s13356_s10 + $0x1564] ss:$16 sps:$4 sm:$0xff]  }
 0x1b3   : > { %8281 = vmatpush1.bf16.msra.mxu0 %v11678_v62  ;;  %v11737_v36 = vld [vmem:[%s13356_s10 + $0x1764] ss:$16 sps:$4 sm:$0xff]   ;;  %v11735_v62 = vld [vmem:[%s13356_s10 + $0x1760] ss:$16 sps:$4 sm:$0xff]  }
 0x1b4   : > { %8322 = vmatpush1.bf16.msra.mxu1 %v11681_v63  ;;  %8282 = vmatprep.subr.bf16.mxu0 %v11686_v0  ;;  %v11740_v63 = vld [vmem:[%s13356_s10 + $0x1544] ss:$16 sps:$4 sm:$0xff]  }
 0x1b5   : > { %8323 = vmatprep.subr.bf16.mxu1 %v11689_v3  ;;  %v11743_v0 = vld [vmem:[%s13356_s10 + $0x1744] ss:$16 sps:$4 sm:$0xff]  }
 0x1b6   : > { %v13908_v3 = vld [vmem:[#allocation2 + $0x18] sm:$0xff] }
 0x1b7   : > { %8283 = vmatpush1.bf16.msra.mxu0 %v11684_v4  ;;  %v11738_v4 = vld [vmem:[%s13356_s10 + $0x1540] ss:$16 sps:$4 sm:$0xff]  }
 0x1b8   : > { %8324 = vmatpush1.bf16.msra.mxu1 %v11687_v6  ;;  %8284 = vmatprep.subr.bf16.mxu0 %v11692_v2  ;;  %v11741_v6 = vld [vmem:[%s13356_s10 + $0x1740] ss:$16 sps:$4 sm:$0xff]   ;;  %v11746_v2 = vld [vmem:[%s13356_s10 + $0x1524] ss:$16 sps:$4 sm:$0xff]  }
 0x1b9   : > { %8325 = vmatprep.subr.bf16.mxu1 %v11695_v9  ;;  %v11749_v9 = vld [vmem:[%s13356_s10 + $0x1724] ss:$16 sps:$4 sm:$0xff]  }
 0x1bb   : > { %8285 = vmatpush1.bf16.msra.mxu0 %v11690_v10  ;;  %v13916_v10 = vrot.slane %v13908_v3, %v13423_v50 }
 0x1bc   : > { %8326 = vmatpush1.bf16.msra.mxu1 %v11693_v11  ;;  %8286 = vmatprep.subr.bf16.mxu0 %v11698_v12  ;;  %v11744_v11 = vld [vmem:[%s13356_s10 + $0x1520] ss:$16 sps:$4 sm:$0xff]  }
 0x1bd   : > { %8327 = vmatprep.subr.bf16.mxu1 %v11701_v15  ;;  %v11747_v12 = vld [vmem:[%s13356_s10 + $0x1720] ss:$16 sps:$4 sm:$0xff]   ;;  %v11752_v15 = vld [vmem:[%s13356_s10 + $0x1504] ss:$16 sps:$4 sm:$0xff]  }
 0x1bf   : > { %8287 = vmatpush1.bf16.msra.mxu0 %v11696_v17  ;;  %v11755_v17 = vld [vmem:[%s13356_s10 + $0x1704] ss:$16 sps:$4 sm:$0xff]  }
 0x1c0   : > { %8328 = vmatpush1.bf16.msra.mxu1 %v11699_v20  ;;  %8288 = vmatprep.subr.bf16.mxu0 %v11704_v21  ;;  %v1742_v20 = vcombine.high %v13916_v10, %v13916_v10  ;;  %v13926_v21 = vrot.slane %v13819_v8, %v13423_v50 }
 0x1c1   : > { %8329 = vmatprep.subr.bf16.mxu1 %v11707_v22  ;;  %v11750_v22 = vld [vmem:[%s13356_s10 + $0x1500] ss:$16 sps:$4 sm:$0xff]  }
 0x1c2   : > { %v13939_v8 = vcombine.high %v13926_v21, %v13926_v21 }
 0x1c3   : > { %8289 = vmatpush1.bf16.msra.mxu0 %v11702_v41  ;;  %v11753_v41 = vld [vmem:[%s13356_s10 + $0x1700] ss:$16 sps:$4 sm:$0xff]  }
 0x1c4   : > { %8330 = vmatpush1.bf16.msra.mxu1 %v11705_v28  ;;  %8290 = vmatprep.subr.bf16.mxu0 %v11710_v29  ;;  %v11759_v28 = vld [vmem:[%s13356_s10 + $0x18e4] ss:$16 sps:$4 sm:$0xff]  }
 0x1c5   : > { %8331 = vmatprep.subr.bf16.mxu1 %v11713_v30  ;;  %v11762_v29 = vld [vmem:[%s13356_s10 + $0x1ae4] ss:$16 sps:$4 sm:$0xff]   ;;  %v11757_v30 = vld [vmem:[%s13356_s10 + $0x18e0] ss:$16 sps:$4 sm:$0xff]  }
 0x1c7   : > { %8291 = vmatpush2.bf16.msra.mxu0 %v11708_v32  ;;  %v11760_v32 = vld [vmem:[%s13356_s10 + $0x1ae0] ss:$16 sps:$4 sm:$0xff]  }
 0x1c8   : > { %8332 = vmatpush2.bf16.msra.mxu1 %v11711_v35  ;;  %8292 = vmatprep.subr.bf16.mxu0 %v11716_v37  ;;  %v13935_v35 = vrot.slane %v1742_v20, %v13423_v50  ;;  %v11765_v37 = vld [vmem:[%s13356_s10 + $0x18c4] ss:$16 sps:$4 sm:$0xff]   ;;  %v11784_v20 = vld [vmem:[%s13356_s10 + $0x1a60] ss:$16 sps:$4 sm:$0xff]  }
 0x1c9   : > { %8333 = vmatprep.subr.bf16.mxu1 %v11719_v38  ;;  %v11768_v38 = vld [vmem:[%s13356_s10 + $0x1ac4] ss:$16 sps:$4 sm:$0xff]  }
 0x1cb   : > { %8293 = vmatpush2.bf16.msra.mxu0 %v11714_v39  ;;  %v11763_v39 = vld [vmem:[%s13356_s10 + $0x18c0] ss:$16 sps:$4 sm:$0xff]  }
 0x1cc   : > { %8334 = vmatpush2.bf16.msra.mxu1 %v11717_v40  ;;  %8294 = vmatprep.subr.bf16.mxu0 %v11722_v45  ;;  %v11766_v40 = vld [vmem:[%s13356_s10 + $0x1ac0] ss:$16 sps:$4 sm:$0xff]   ;;  %v13947_v45 = vcombine.high %v13935_v35, %v13935_v35 }
 0x1cd   : > { %8335 = vmatprep.subr.bf16.mxu1 %v11725_v33 }
 0x1cf   : > { %8295 = vmatpush2.bf16.msra.mxu0 %v11720_v48 }
 0x1d0   : > { %8336 = vmatpush2.bf16.msra.mxu1 %v11723_v49  ;;  %8296 = vmatprep.subr.bf16.mxu0 %v11728_v52 }
 0x1d1   : > { %8337 = vmatprep.subr.bf16.mxu1 %v11731_v47 }
 0x1d3   : > { %8297 = vmatpush2.bf16.msra.mxu0 %v11726_v53  ;;  %v11771_v53 = vld [vmem:[%s13356_s10 + $0x18a4] ss:$16 sps:$4 sm:$0xff]  }
 0x1d4   : > { %8338 = vmatpush2.bf16.msra.mxu1 %v11729_v57  ;;  %8298 = vmatprep.subr.bf16.mxu0 %v11734_v58  ;;  %v11774_v57 = vld [vmem:[%s13356_s10 + $0x1aa4] ss:$16 sps:$4 sm:$0xff]  }
 0x1d5   : > { %8339 = vmatprep.subr.bf16.mxu1 %v11737_v36 }
 0x1d7   : > { %8299 = vmatpush2.bf16.msra.mxu0 %v11732_v59  ;;  %v11769_v59 = vld [vmem:[%s13356_s10 + $0x18a0] ss:$16 sps:$4 sm:$0xff]  }
 0x1d8   : > { %8340 = vmatpush2.bf16.msra.mxu1 %v11735_v62  ;;  %8300 = vmatprep.subr.bf16.mxu0 %v11740_v63  ;;  %v11772_v62 = vld [vmem:[%s13356_s10 + $0x1aa0] ss:$16 sps:$4 sm:$0xff]  }
 0x1d9   : > { %8341 = vmatprep.subr.bf16.mxu1 %v11743_v0 }
 0x1db   : > { %8301 = vmatpush2.bf16.msra.mxu0 %v11738_v4 }
 0x1dc   : > { %8342 = vmatpush2.bf16.msra.mxu1 %v11741_v6  ;;  %8302 = vmatprep.subr.bf16.mxu0 %v11746_v2  ;;  %v11780_v2 = vld [vmem:[%s13356_s10 + $0x1a84] ss:$16 sps:$4 sm:$0xff]  }
 0x1dd   : > { %8343 = vmatprep.subr.bf16.mxu1 %v11749_v9  ;;  %v11775_v9 = vld [vmem:[%s13356_s10 + $0x1880] ss:$16 sps:$4 sm:$0xff]  }
 0x1df   : > { %8303 = vmatpush2.bf16.msra.mxu0 %v11744_v11  ;;  %v11778_v11 = vld [vmem:[%s13356_s10 + $0x1a80] ss:$16 sps:$4 sm:$0xff]  }
 0x1e0   : > { %8344 = vmatpush2.bf16.msra.mxu1 %v11747_v12  ;;  %8304 = vmatprep.subr.bf16.mxu0 %v11752_v15  ;;  %v11783_v12 = vld [vmem:[%s13356_s10 + $0x1864] ss:$16 sps:$4 sm:$0xff]  }
 0x1e1   : > { %8345 = vmatprep.subr.bf16.mxu1 %v11755_v17  ;;  %v11786_v15 = vld [vmem:[%s13356_s10 + $0x1a64] ss:$16 sps:$4 sm:$0xff]   ;;  %v11781_v17 = vld [vmem:[%s13356_s10 + $0x1860] ss:$16 sps:$4 sm:$0xff]  }
 0x1e3   : > { %8305 = vmatpush2.bf16.msra.mxu0 %v11750_v22  ;;  %v11789_v22 = vld [vmem:[%s13356_s10 + $0x1844] ss:$16 sps:$4 sm:$0xff]  }
 0x1e4   : > { %8346 = vmatpush2.bf16.msra.mxu1 %v11753_v41  ;;  %8356 = vmatprep.subr.bf16.mxu0 %v11759_v28  ;;  %v11792_v41 = vld [vmem:[%s13356_s10 + $0x1a44] ss:$16 sps:$4 sm:$0xff]   ;;  %v11787_v28 = vld [vmem:[%s13356_s10 + $0x1840] ss:$16 sps:$4 sm:$0xff]  }
 0x1e5   : > { %8397 = vmatprep.subr.bf16.mxu1 %v11762_v29  ;;  %v11790_v29 = vld [vmem:[%s13356_s10 + $0x1a40] ss:$16 sps:$4 sm:$0xff]  }
 0x1e6   : > { %v8062_v33 = vpop.f32.mrf.mxu0  ;;  %8307 = vmatmul.mubr.bf16.vlgmr.msra.gmra.mxu0 %v13926_v21 }
 0x1e7   : > { %v8103_v48 = vpop.f32.mrf.mxu1  ;;  %8348 = vmatmul.mubr.bf16.vlgmr.msra.gmra.mxu1 %v13939_v8  ;;  %v8063_v49 = vadd.f32 %v8062_v33, %v13857_v46  ;;  %8357 = vmatpush1.bf16.msra.mxu0 %v11757_v30  ;;  %v11795_v30 = vld [vmem:[%s13356_s10 + $0x1824] ss:$16 sps:$4 sm:$0xff]   ;;  %v11799_v33 = vld [vmem:[%s13356_s10 + $0x1800] ss:$16 sps:$4 sm:$0xff]  }
 0x1e8   : > { %8398 = vmatpush1.bf16.msra.mxu1 %v11760_v32  ;;  %v8064_v52 = vpop.f32.mrf.mxu0  ;;  %8358 = vmatprep.subr.bf16.mxu0 %v11765_v37  ;;  %v11798_v32 = vld [vmem:[%s13356_s10 + $0x1a24] ss:$16 sps:$4 sm:$0xff]   ;;  %v11793_v37 = vld [vmem:[%s13356_s10 + $0x1820] ss:$16 sps:$4 sm:$0xff]  }
 0x1e9   : > { %v8105_v47 = vpop.f32.mrf.mxu1  ;;  %8399 = vmatprep.subr.bf16.mxu1 %v11768_v38  ;;  %v13954_v58 = vadd.f32 %v8103_v48, %v8063_v49  ;;  %v8065_v36 = vadd.f32 %v8064_v52, %v13864_v54  ;;  %8388 = vmatprep.mubr.bf16.mxu0 %v13935_v35  ;;  %v11777_v54 = vld [vmem:[%s13356_s10 + $0x1884] ss:$16 sps:$4 sm:$0xff]   ;;  %v11796_v38 = vld [vmem:[%s13356_s10 + $0x1a20] ss:$16 sps:$4 sm:$0xff]  }
 0x1ea   : > { %8429 = vmatprep.mubr.bf16.mxu1 %v13947_v45  ;;  %v8066_v46 = vpop.f32.mrf.mxu0  ;;  %v11802_v48 = vld [vmem:[%s13356_s10 + $0x1a00] ss:$16 sps:$4 sm:$0xff]   ;;  %v11807_v49 = vld [vmem:[%s13356_s10 + $0x19e4] ss:$16 sps:$4 sm:$0xff]  }
 0x1eb   : > { %v8107_v63 = vpop.f32.mrf.mxu1  ;;  %v13961_v0 = vadd.f32 %v8105_v47, %v8065_v36  ;;  %8359 = vmatpush1.bf16.msra.mxu0 %v11763_v39  ;;  %v11801_v39 = vld [vmem:[%s13356_s10 + $0x1804] ss:$16 sps:$4 sm:$0xff]   ;;  %v11805_v47 = vld [vmem:[%s13356_s10 + $0x19e0] ss:$16 sps:$4 sm:$0xff]  }
 0x1ec   : > { %8400 = vmatpush1.bf16.msra.mxu1 %v11766_v40  ;;  %v8067_v4 = vpop.f32.mrf.mxu0  ;;  %8360 = vmatprep.subr.bf16.mxu0 %v11771_v53  ;;  %v11804_v40 = vld [vmem:[%s13356_s10 + $0x1a04] ss:$16 sps:$4 sm:$0xff]   ;;  %v11808_v53 = vld [vmem:[%s13356_s10 + $0x1be0] ss:$16 sps:$4 sm:$0xff]  }
 0x1ed   : > { %v8108_v6 = vpop.f32.mrf.mxu1  ;;  %8401 = vmatprep.subr.bf16.mxu1 %v11774_v57  ;;  %v11810_v52 = vld [vmem:[%s13356_s10 + $0x1be4] ss:$16 sps:$4 sm:$0xff]   ;;  %v11817_v4 = vld [vmem:[%s13356_s10 + $0x19a0] ss:$16 sps:$4 sm:$0xff]  }
 0x1ee   : > { %v11813_v57 = vld [vmem:[%s13356_s10 + $0x19c4] ss:$16 sps:$4 sm:$0xff]   ;;  %v11820_v6 = vld [vmem:[%s13356_s10 + $0x1ba0] ss:$16 sps:$4 sm:$0xff]  }
 0x1ef   : > { %8361 = vmatpush1.bf16.msra.mxu0 %v11769_v59  ;;  %v11816_v36 = vld [vmem:[%s13356_s10 + $0x1bc4] ss:$16 sps:$4 sm:$0xff]   ;;  %v11811_v59 = vld [vmem:[%s13356_s10 + $0x19c0] ss:$16 sps:$4 sm:$0xff]  }
 0x1f0   : > { %8402 = vmatpush1.bf16.msra.mxu1 %v11772_v62  ;;  %8362 = vmatprep.subr.bf16.mxu0 %v11777_v54  ;;  %v11814_v62 = vld [vmem:[%s13356_s10 + $0x1bc0] ss:$16 sps:$4 sm:$0xff]   ;;  %v11819_v46 = vld [vmem:[%s13356_s10 + $0x19a4] ss:$16 sps:$4 sm:$0xff]  }
 0x1f1   : > { %8403 = vmatprep.subr.bf16.mxu1 %v11780_v2  ;;  %v11822_v63 = vld [vmem:[%s13356_s10 + $0x1ba4] ss:$16 sps:$4 sm:$0xff]  }
 0x1f2   : > { %v11825_v54 = vld [vmem:[%s13356_s10 + $0x1984] ss:$16 sps:$4 sm:$0xff]  }
 0x1f3   : > { %8363 = vmatpush1.bf16.msra.mxu0 %v11775_v9  ;;  %v11828_v2 = vld [vmem:[%s13356_s10 + $0x1b84] ss:$16 sps:$4 sm:$0xff]   ;;  %v11823_v9 = vld [vmem:[%s13356_s10 + $0x1980] ss:$16 sps:$4 sm:$0xff]  }
 0x1f4   : > { %8404 = vmatpush1.bf16.msra.mxu1 %v11778_v11  ;;  %8364 = vmatprep.subr.bf16.mxu0 %v11783_v12  ;;  %v11826_v11 = vld [vmem:[%s13356_s10 + $0x1b80] ss:$16 sps:$4 sm:$0xff]   ;;  %v11831_v12 = vld [vmem:[%s13356_s10 + $0x1964] ss:$16 sps:$4 sm:$0xff]  }
 0x1f5   : > { %8405 = vmatprep.subr.bf16.mxu1 %v11786_v15  ;;  %v11834_v15 = vld [vmem:[%s13356_s10 + $0x1b64] ss:$16 sps:$4 sm:$0xff]  }
 0x1f7   : > { %8365 = vmatpush1.bf16.msra.mxu0 %v11781_v17  ;;  %v11829_v17 = vld [vmem:[%s13356_s10 + $0x1960] ss:$16 sps:$4 sm:$0xff]  }
 0x1f8   : > { %8406 = vmatpush1.bf16.msra.mxu1 %v11784_v20  ;;  %8366 = vmatprep.subr.bf16.mxu0 %v11789_v22  ;;  %v11832_v20 = vld [vmem:[%s13356_s10 + $0x1b60] ss:$16 sps:$4 sm:$0xff]   ;;  %v11837_v22 = vld [vmem:[%s13356_s10 + $0x1944] ss:$16 sps:$4 sm:$0xff]  }
 0x1f9   : > { %8407 = vmatprep.subr.bf16.mxu1 %v11792_v41  ;;  %v11840_v41 = vld [vmem:[%s13356_s10 + $0x1b44] ss:$16 sps:$4 sm:$0xff]  }
 0x1fb   : > { %8367 = vmatpush1.bf16.msra.mxu0 %v11787_v28  ;;  %v1727_v28 = vcombine.high %v13908_v3, %v13908_v3  ;;  %v11841_v3 = vld [vmem:[%s13356_s10 + $0x1920] ss:$16 sps:$4 sm:$0xff]  }
 0x1fc   : > { %8408 = vmatpush1.bf16.msra.mxu1 %v11790_v29  ;;  %8368 = vmatprep.subr.bf16.mxu0 %v11795_v30  ;;  %v11835_v29 = vld [vmem:[%s13356_s10 + $0x1940] ss:$16 sps:$4 sm:$0xff]  }
 0x1fd   : > { %8409 = vmatprep.subr.bf16.mxu1 %v11798_v32  ;;  %v11838_v30 = vld [vmem:[%s13356_s10 + $0x1b40] ss:$16 sps:$4 sm:$0xff]   ;;  %v11843_v32 = vld [vmem:[%s13356_s10 + $0x1924] ss:$16 sps:$4 sm:$0xff]  }
 0x1ff   : > { %8369 = vmatpush1.bf16.msra.mxu0 %v11793_v37  ;;  %v11846_v37 = vld [vmem:[%s13356_s10 + $0x1b24] ss:$16 sps:$4 sm:$0xff]  }
 0x200   : > { %8410 = vmatpush1.bf16.msra.mxu1 %v11796_v38  ;;  %8370 = vmatprep.subr.bf16.mxu0 %v11801_v39  ;;  %v14012_v38 = vrot.slane %v1727_v28, %v13423_v50  ;;  %v11844_v39 = vld [vmem:[%s13356_s10 + $0x1b20] ss:$16 sps:$4 sm:$0xff]  }
 0x201   : > { %8411 = vmatprep.subr.bf16.mxu1 %v11804_v40  ;;  %v11849_v40 = vld [vmem:[%s13356_s10 + $0x1904] ss:$16 sps:$4 sm:$0xff]   ;;  %v11865_v28 = vld [vmem:[%s13356_s10 + $0x1ca0] ss:$16 sps:$4 sm:$0xff]  }
 0x203   : > { %8371 = vmatpush1.bf16.msra.mxu0 %v11799_v33  ;;  %v11852_v33 = vld [vmem:[%s13356_s10 + $0x1b04] ss:$16 sps:$4 sm:$0xff]  }
 0x204   : > { %8412 = vmatpush1.bf16.msra.mxu1 %v11802_v48  ;;  %8372 = vmatprep.subr.bf16.mxu0 %v11807_v49  ;;  %v1743_v48 = vcombine.high %v14012_v38, %v14012_v38  ;;  %v14022_v49 = vrot.slane %v13916_v10, %v13423_v50 }
 0x205   : > { %8413 = vmatprep.subr.bf16.mxu1 %v11810_v52  ;;  %v11847_v52 = vld [vmem:[%s13356_s10 + $0x1900] ss:$16 sps:$4 sm:$0xff]  }
 0x206   : > { %v14035_v10 = vcombine.high %v14022_v49, %v14022_v49 }
 0x207   : > { %8373 = vmatpush2.bf16.msra.mxu0 %v11805_v47  ;;  %v11850_v47 = vld [vmem:[%s13356_s10 + $0x1b00] ss:$16 sps:$4 sm:$0xff]  }
 0x208   : > { %8414 = vmatpush2.bf16.msra.mxu1 %v11808_v53  ;;  %8374 = vmatprep.subr.bf16.mxu0 %v11813_v57  ;;  %v11855_v53 = vld [vmem:[%s13356_s10 + $0x1ce4] ss:$16 sps:$4 sm:$0xff]  }
 0x209   : > { %8415 = vmatprep.subr.bf16.mxu1 %v11816_v36  ;;  %v11858_v57 = vld [vmem:[%s13356_s10 + $0x1ee4] ss:$16 sps:$4 sm:$0xff]   ;;  %v11853_v36 = vld [vmem:[%s13356_s10 + $0x1ce0] ss:$16 sps:$4 sm:$0xff]  }
 0x20b   : > { %8375 = vmatpush2.bf16.msra.mxu0 %v11811_v59  ;;  %v11856_v59 = vld [vmem:[%s13356_s10 + $0x1ee0] ss:$16 sps:$4 sm:$0xff]  }
 0x20c   : > { %8416 = vmatpush2.bf16.msra.mxu1 %v11814_v62  ;;  %8376 = vmatprep.subr.bf16.mxu0 %v11819_v46  ;;  %v14031_v62 = vrot.slane %v1743_v48, %v13423_v50  ;;  %v11861_v46 = vld [vmem:[%s13356_s10 + $0x1cc4] ss:$16 sps:$4 sm:$0xff]  }
 0x20d   : > { %8417 = vmatprep.subr.bf16.mxu1 %v11822_v63  ;;  %v11864_v63 = vld [vmem:[%s13356_s10 + $0x1ec4] ss:$16 sps:$4 sm:$0xff]  }
 0x20e   : > { %v11879_v48 = vld [vmem:[%s13356_s10 + $0x1c64] ss:$16 sps:$4 sm:$0xff]  }
 0x20f   : > { %8377 = vmatpush2.bf16.msra.mxu0 %v11817_v4  ;;  %v11859_v4 = vld [vmem:[%s13356_s10 + $0x1cc0] ss:$16 sps:$4 sm:$0xff]  }
 0x210   : > { %8418 = vmatpush2.bf16.msra.mxu1 %v11820_v6  ;;  %8378 = vmatprep.subr.bf16.mxu0 %v11825_v54  ;;  %v11862_v6 = vld [vmem:[%s13356_s10 + $0x1ec0] ss:$16 sps:$4 sm:$0xff]   ;;  %v14043_v54 = vcombine.high %v14031_v62, %v14031_v62 }
 0x211   : > { %8419 = vmatprep.subr.bf16.mxu1 %v11828_v2 }
 0x213   : > { %8379 = vmatpush2.bf16.msra.mxu0 %v11823_v9 }
 0x214   : > { %8420 = vmatpush2.bf16.msra.mxu1 %v11826_v11  ;;  %8380 = vmatprep.subr.bf16.mxu0 %v11831_v12 }
 0x215   : > { %8421 = vmatprep.subr.bf16.mxu1 %v11834_v15 }
 0x217   : > { %8381 = vmatpush2.bf16.msra.mxu0 %v11829_v17  ;;  %v11867_v17 = vld [vmem:[%s13356_s10 + $0x1ca4] ss:$16 sps:$4 sm:$0xff]  }
 0x218   : > { %8422 = vmatpush2.bf16.msra.mxu1 %v11832_v20  ;;  %8382 = vmatprep.subr.bf16.mxu0 %v11837_v22  ;;  %v11870_v20 = vld [vmem:[%s13356_s10 + $0x1ea4] ss:$16 sps:$4 sm:$0xff]  }
 0x219   : > { %8423 = vmatprep.subr.bf16.mxu1 %v11840_v41 }
 0x21b   : > { %8383 = vmatpush2.bf16.msra.mxu0 %v11835_v29  ;;  %v11868_v29 = vld [vmem:[%s13356_s10 + $0x1ea0] ss:$16 sps:$4 sm:$0xff]  }
 0x21c   : > { %8424 = vmatpush2.bf16.msra.mxu1 %v11838_v30  ;;  %8384 = vmatprep.subr.bf16.mxu0 %v11843_v32 }
 0x21d   : > { %8425 = vmatprep.subr.bf16.mxu1 %v11846_v37 }
 0x21f   : > { %8385 = vmatpush2.bf16.msra.mxu0 %v11841_v3 }
 0x220   : > { %8426 = vmatpush2.bf16.msra.mxu1 %v11844_v39  ;;  %8386 = vmatprep.subr.bf16.mxu0 %v11849_v40  ;;  %v11876_v39 = vld [vmem:[%s13356_s10 + $0x1e84] ss:$16 sps:$4 sm:$0xff]   ;;  %v11871_v40 = vld [vmem:[%s13356_s10 + $0x1c80] ss:$16 sps:$4 sm:$0xff]  }
 0x221   : > { %8427 = vmatprep.subr.bf16.mxu1 %v11852_v33  ;;  %v11874_v33 = vld [vmem:[%s13356_s10 + $0x1e80] ss:$16 sps:$4 sm:$0xff]  }
 0x223   : > { %8387 = vmatpush2.bf16.msra.mxu0 %v11847_v52  ;;  %v11882_v52 = vld [vmem:[%s13356_s10 + $0x1e64] ss:$16 sps:$4 sm:$0xff]  }
 0x224   : > { %8428 = vmatpush2.bf16.msra.mxu1 %v11850_v47  ;;  %8438 = vmatprep.subr.bf16.mxu0 %v11855_v53  ;;  %v11877_v47 = vld [vmem:[%s13356_s10 + $0x1c60] ss:$16 sps:$4 sm:$0xff]  }
 0x225   : > { %8479 = vmatprep.subr.bf16.mxu1 %v11858_v57  ;;  %v11880_v53 = vld [vmem:[%s13356_s10 + $0x1e60] ss:$16 sps:$4 sm:$0xff]   ;;  %v11885_v57 = vld [vmem:[%s13356_s10 + $0x1c44] ss:$16 sps:$4 sm:$0xff]  }
 0x226   : > { %v8144_v2 = vpop.f32.mrf.mxu0  ;;  %8389 = vmatmul.mubr.bf16.vlgmr.msra.gmra.mxu0 %v14022_v49 }
 0x227   : > { %v8185_v9 = vpop.f32.mrf.mxu1  ;;  %8430 = vmatmul.mubr.bf16.vlgmr.msra.gmra.mxu1 %v14035_v10  ;;  %v8145_v11 = vadd.f32 %v8144_v2, %v13954_v58  ;;  %8439 = vmatpush1.bf16.msra.mxu0 %v11853_v36  ;;  %v11888_v36 = vld [vmem:[%s13356_s10 + $0x1e44] ss:$16 sps:$4 sm:$0xff]   ;;  %v11892_v2 = vld [vmem:[%s13356_s10 + $0x1e20] ss:$16 sps:$4 sm:$0xff]  }
 0x228   : > { %8480 = vmatpush1.bf16.msra.mxu1 %v11856_v59  ;;  %v8146_v12 = vpop.f32.mrf.mxu0  ;;  %8440 = vmatprep.subr.bf16.mxu0 %v11861_v46  ;;  %v11883_v59 = vld [vmem:[%s13356_s10 + $0x1c40] ss:$16 sps:$4 sm:$0xff]  }
 0x229   : > { %v8187_v15 = vpop.f32.mrf.mxu1  ;;  %8481 = vmatprep.subr.bf16.mxu1 %v11864_v63  ;;  %v14050_v22 = vadd.f32 %v8185_v9, %v8145_v11  ;;  %v8147_v41 = vadd.f32 %v8146_v12, %v13961_v0  ;;  %8470 = vmatprep.mubr.bf16.mxu0 %v14031_v62  ;;  %v11873_v0 = vld [vmem:[%s13356_s10 + $0x1c84] ss:$16 sps:$4 sm:$0xff]   ;;  %v11886_v46 = vld [vmem:[%s13356_s10 + $0x1e40] ss:$16 sps:$4 sm:$0xff]  }
 0x22a   : > { %8511 = vmatprep.mubr.bf16.mxu1 %v14043_v54  ;;  %v8148_v58 = vpop.f32.mrf.mxu0  ;;  %v11891_v63 = vld [vmem:[%s13356_s10 + $0x1c24] ss:$16 sps:$4 sm:$0xff]   ;;  %v11895_v12 = vld [vmem:[%s13356_s10 + $0x1c00] ss:$16 sps:$4 sm:$0xff]  }
 0x22b   : > { %v8189_v30 = vpop.f32.mrf.mxu1  ;;  %v14057_v32 = vadd.f32 %v8187_v15, %v8147_v41  ;;  %8441 = vmatpush1.bf16.msra.mxu0 %v11859_v4  ;;  %v11894_v4 = vld [vmem:[%s13356_s10 + $0x1e24] ss:$16 sps:$4 sm:$0xff]   ;;  %v11898_v15 = vld [vmem:[%s13356_s10 + $0x1e00] ss:$16 sps:$4 sm:$0xff]  }
 0x22c   : > { %8482 = vmatpush1.bf16.msra.mxu1 %v11862_v6  ;;  %v8149_v37 = vpop.f32.mrf.mxu0  ;;  %8442 = vmatprep.subr.bf16.mxu0 %v11867_v17  ;;  %v11889_v6 = vld [vmem:[%s13356_s10 + $0x1c20] ss:$16 sps:$4 sm:$0xff]   ;;  %v11897_v9 = vld [vmem:[%s13356_s10 + $0x1c04] ss:$16 sps:$4 sm:$0xff]  }
 0x22d   : > { %v8190_v3 = vpop.f32.mrf.mxu1  ;;  %8483 = vmatprep.subr.bf16.mxu1 %v11870_v20  ;;  %v11900_v11 = vld [vmem:[%s13356_s10 + $0x1e04] ss:$16 sps:$4 sm:$0xff]   ;;  %v11901_v41 = vld [vmem:[%s13356_s10 + $0x1de0] ss:$16 sps:$4 sm:$0xff]  }
 0x22e   : > { %v11903_v17 = vld [vmem:[%s13356_s10 + $0x1de4] ss:$16 sps:$4 sm:$0xff]   ;;  %v11907_v30 = vld [vmem:[%s13356_s10 + $0x1dc0] ss:$16 sps:$4 sm:$0xff]  }
 0x22f   : > { %8443 = vmatpush1.bf16.msra.mxu0 %v11865_v28  ;;  %v11906_v20 = vld [vmem:[%s13356_s10 + $0x1fe4] ss:$16 sps:$4 sm:$0xff]   ;;  %v11904_v28 = vld [vmem:[%s13356_s10 + $0x1fe0] ss:$16 sps:$4 sm:$0xff]  }
 0x230   : > { %8484 = vmatpush1.bf16.msra.mxu1 %v11868_v29  ;;  %8444 = vmatprep.subr.bf16.mxu0 %v11873_v0  ;;  %v11909_v29 = vld [vmem:[%s13356_s10 + $0x1dc4] ss:$16 sps:$4 sm:$0xff]   ;;  %v11910_v37 = vld [vmem:[%s13356_s10 + $0x1fc0] ss:$16 sps:$4 sm:$0xff]  }
 0x231   : > { %8485 = vmatprep.subr.bf16.mxu1 %v11876_v39  ;;  %v11912_v58 = vld [vmem:[%s13356_s10 + $0x1fc4] ss:$16 sps:$4 sm:$0xff]   ;;  %v11913_v39 = vld [vmem:[%s13356_s10 + $0x1da0] ss:$16 sps:$4 sm:$0xff]  }
 0x232   : > { %v11915_v3 = vld [vmem:[%s13356_s10 + $0x1da4] ss:$16 sps:$4 sm:$0xff]  }
 0x233   : > { %8445 = vmatpush1.bf16.msra.mxu0 %v11871_v40  ;;  %v11918_v0 = vld [vmem:[%s13356_s10 + $0x1fa4] ss:$16 sps:$4 sm:$0xff]   ;;  %v11916_v40 = vld [vmem:[%s13356_s10 + $0x1fa0] ss:$16 sps:$4 sm:$0xff]  }
 0x234   : > { %8486 = vmatpush1.bf16.msra.mxu1 %v11874_v33  ;;  %8446 = vmatprep.subr.bf16.mxu0 %v11879_v48  ;;  %v11921_v33 = vld [vmem:[%s13356_s10 + $0x1d84] ss:$16 sps:$4 sm:$0xff]  }
 0x235   : > { %8487 = vmatprep.subr.bf16.mxu1 %v11882_v52  ;;  %v11924_v48 = vld [vmem:[%s13356_s10 + $0x1f84] ss:$16 sps:$4 sm:$0xff]   ;;  %v11919_v52 = vld [vmem:[%s13356_s10 + $0x1d80] ss:$16 sps:$4 sm:$0xff]  }
 0x237   : > { %8447 = vmatpush1.bf16.msra.mxu0 %v11877_v47  ;;  %v11922_v47 = vld [vmem:[%s13356_s10 + $0x1f80] ss:$16 sps:$4 sm:$0xff]  }
 0x238   : > { %8488 = vmatpush1.bf16.msra.mxu1 %v11880_v53  ;;  %8448 = vmatprep.subr.bf16.mxu0 %v11885_v57  ;;  %v11927_v53 = vld [vmem:[%s13356_s10 + $0x1d64] ss:$16 sps:$4 sm:$0xff]  }
 0x239   : > { %8489 = vmatprep.subr.bf16.mxu1 %v11888_v36  ;;  %v11930_v57 = vld [vmem:[%s13356_s10 + $0x1f64] ss:$16 sps:$4 sm:$0xff]   ;;  %v11925_v36 = vld [vmem:[%s13356_s10 + $0x1d60] ss:$16 sps:$4 sm:$0xff]  }
 0x23b   : > { %8449 = vmatpush1.bf16.msra.mxu0 %v11883_v59  ;;  %v11928_v59 = vld [vmem:[%s13356_s10 + $0x1f60] ss:$16 sps:$4 sm:$0xff]  }
 0x23c   : > { %8490 = vmatpush1.bf16.msra.mxu1 %v11886_v46  ;;  %8450 = vmatprep.subr.bf16.mxu0 %v11891_v63  ;;  %v11933_v46 = vld [vmem:[%s13356_s10 + $0x1d44] ss:$16 sps:$4 sm:$0xff]  }
 0x23d   : > { %8491 = vmatprep.subr.bf16.mxu1 %v11894_v4  ;;  %v11936_v63 = vld [vmem:[%s13356_s10 + $0x1f44] ss:$16 sps:$4 sm:$0xff]   ;;  %v14101_v4 = vld [vmem:[#allocation2 + $0x20] sm:$0x3f] }
 0x23f   : > { %8451 = vmatpush1.bf16.msra.mxu0 %v11889_v6  ;;  %v11931_v6 = vld [vmem:[%s13356_s10 + $0x1d40] ss:$16 sps:$4 sm:$0xff]  }
 0x240   : > { %8492 = vmatpush1.bf16.msra.mxu1 %v11892_v2  ;;  %8452 = vmatprep.subr.bf16.mxu0 %v11897_v9  ;;  %v11934_v2 = vld [vmem:[%s13356_s10 + $0x1f40] ss:$16 sps:$4 sm:$0xff]   ;;  %v11939_v9 = vld [vmem:[%s13356_s10 + $0x1d24] ss:$16 sps:$4 sm:$0xff]  }
 0x241   : > { %8493 = vmatprep.subr.bf16.mxu1 %v11900_v11  ;;  %v11942_v11 = vld [vmem:[%s13356_s10 + $0x1f24] ss:$16 sps:$4 sm:$0xff]  }
 0x243   : > { %8453 = vmatpush1.bf16.msra.mxu0 %v11895_v12  ;;  %v14109_v12 = vrot.slane %v14101_v4, %v13423_v50 }
 0x244   : > { %8494 = vmatpush1.bf16.msra.mxu1 %v11898_v15  ;;  %8454 = vmatprep.subr.bf16.mxu0 %v11903_v17  ;;  %v11937_v15 = vld [vmem:[%s13356_s10 + $0x1d20] ss:$16 sps:$4 sm:$0xff]  }
 0x245   : > { %8495 = vmatprep.subr.bf16.mxu1 %v11906_v20  ;;  %v11940_v17 = vld [vmem:[%s13356_s10 + $0x1f20] ss:$16 sps:$4 sm:$0xff]   ;;  %v11945_v20 = vld [vmem:[%s13356_s10 + $0x1d04] ss:$16 sps:$4 sm:$0xff]  }
 0x247   : > { %8455 = vmatpush2.bf16.msra.mxu0 %v11901_v41  ;;  %v11948_v41 = vld [vmem:[%s13356_s10 + $0x1f04] ss:$16 sps:$4 sm:$0xff]  }
 0x248   : > { %8496 = vmatpush2.bf16.msra.mxu1 %v11904_v28  ;;  %8456 = vmatprep.subr.bf16.mxu0 %v11909_v29  ;;  %v1791_v28 = vcombine.high %v14109_v12, %v14109_v12  ;;  %v14119_v29 = vrot.slane %v14012_v38, %v13423_v50 }
 0x249   : > { %8497 = vmatprep.subr.bf16.mxu1 %v11912_v58  ;;  %v11943_v58 = vld [vmem:[%s13356_s10 + $0x1d00] ss:$16 sps:$4 sm:$0xff]  }
 0x24a   : > { %v14132_v38 = vcombine.high %v14119_v29, %v14119_v29 }
 0x24b   : > { %8457 = vmatpush2.bf16.msra.mxu0 %v11907_v30  ;;  %v11946_v30 = vld [vmem:[%s13356_s10 + $0x1f00] ss:$16 sps:$4 sm:$0xff]  }
 0x24c   : > { %8498 = vmatpush2.bf16.msra.mxu1 %v11910_v37  ;;  %8458 = vmatprep.subr.bf16.mxu0 %v11915_v3  ;;  %v11952_v37 = vld [vmem:[%s13356_s10 + $0x20e4] ss:$16 sps:$4 sm:$0xff]  }
 0x24d   : > { %8499 = vmatprep.subr.bf16.mxu1 %v11918_v0  ;;  %v11955_v3 = vld [vmem:[%s13356_s10 + $0x22e4] ss:$16 sps:$4 sm:$0xff]   ;;  %v11950_v0 = vld [vmem:[%s13356_s10 + $0x20e0] ss:$16 sps:$4 sm:$0xff]  }
 0x24f   : > { %8459 = vmatpush2.bf16.msra.mxu0 %v11913_v39  ;;  %v11953_v39 = vld [vmem:[%s13356_s10 + $0x22e0] ss:$16 sps:$4 sm:$0xff]  }
 0x250   : > { %8500 = vmatpush2.bf16.msra.mxu1 %v11916_v40  ;;  %8460 = vmatprep.subr.bf16.mxu0 %v11921_v33  ;;  %v14128_v40 = vrot.slane %v1791_v28, %v13423_v50  ;;  %v11958_v33 = vld [vmem:[%s13356_s10 + $0x20c4] ss:$16 sps:$4 sm:$0xff]  }
 0x251   : > { %8501 = vmatprep.subr.bf16.mxu1 %v11924_v48  ;;  %v11961_v48 = vld [vmem:[%s13356_s10 + $0x22c4] ss:$16 sps:$4 sm:$0xff]  }
 0x253   : > { %8461 = vmatpush2.bf16.msra.mxu0 %v11919_v52  ;;  %v11956_v52 = vld [vmem:[%s13356_s10 + $0x20c0] ss:$16 sps:$4 sm:$0xff]  }
 0x254   : > { %8502 = vmatpush2.bf16.msra.mxu1 %v11922_v47  ;;  %8462 = vmatprep.subr.bf16.mxu0 %v11927_v53  ;;  %v11959_v47 = vld [vmem:[%s13356_s10 + $0x22c0] ss:$16 sps:$4 sm:$0xff]   ;;  %v14140_v53 = vcombine.high %v14128_v40, %v14128_v40 }
 0x255   : > { %8503 = vmatprep.subr.bf16.mxu1 %v11930_v57 }
 0x257   : > { %8463 = vmatpush2.bf16.msra.mxu0 %v11925_v36 }
 0x258   : > { %8504 = vmatpush2.bf16.msra.mxu1 %v11928_v59  ;;  %8464 = vmatprep.subr.bf16.mxu0 %v11933_v46 }
 0x259   : > { %8505 = vmatprep.subr.bf16.mxu1 %v11936_v63 }
 0x25b   : > { %8465 = vmatpush2.bf16.msra.mxu0 %v11931_v6  ;;  %v11964_v6 = vld [vmem:[%s13356_s10 + $0x20a4] ss:$16 sps:$4 sm:$0xff]  }
 0x25c   : > { %8506 = vmatpush2.bf16.msra.mxu1 %v11934_v2  ;;  %8466 = vmatprep.subr.bf16.mxu0 %v11939_v9  ;;  %v11967_v2 = vld [vmem:[%s13356_s10 + $0x22a4] ss:$16 sps:$4 sm:$0xff]  }
 0x25d   : > { %8507 = vmatprep.subr.bf16.mxu1 %v11942_v11 }
 0x25f   : > { %8467 = vmatpush2.bf16.msra.mxu0 %v11937_v15  ;;  %v11962_v15 = vld [vmem:[%s13356_s10 + $0x20a0] ss:$16 sps:$4 sm:$0xff]  }
 0x260   : > { %8508 = vmatpush2.bf16.msra.mxu1 %v11940_v17  ;;  %8468 = vmatprep.subr.bf16.mxu0 %v11945_v20  ;;  %v11965_v17 = vld [vmem:[%s13356_s10 + $0x22a0] ss:$16 sps:$4 sm:$0xff]  }
 0x261   : > { %8509 = vmatprep.subr.bf16.mxu1 %v11948_v41 }
 0x263   : > { %8469 = vmatpush2.bf16.msra.mxu0 %v11943_v58 }
 0x264   : > { %8510 = vmatpush2.bf16.msra.mxu1 %v11946_v30  ;;  %8520 = vmatprep.subr.bf16.mxu0 %v11952_v37  ;;  %v11973_v30 = vld [vmem:[%s13356_s10 + $0x2284] ss:$16 sps:$4 sm:$0xff]   ;;  %v11968_v37 = vld [vmem:[%s13356_s10 + $0x2080] ss:$16 sps:$4 sm:$0xff]  }
 0x265   : > { %8561 = vmatprep.subr.bf16.mxu1 %v11955_v3  ;;  %v11971_v3 = vld [vmem:[%s13356_s10 + $0x2280] ss:$16 sps:$4 sm:$0xff]  }
 0x266   : > { %v8226_v57 = vpop.f32.mrf.mxu0  ;;  %8471 = vmatmul.mubr.bf16.vlgmr.msra.gmra.mxu0 %v14119_v29 }
 0x267   : > { %v8267_v36 = vpop.f32.mrf.mxu1  ;;  %8512 = vmatmul.mubr.bf16.vlgmr.msra.gmra.mxu1 %v14132_v38  ;;  %v8227_v59 = vadd.f32 %v8226_v57, %v14050_v22  ;;  %8521 = vmatpush1.bf16.msra.mxu0 %v11950_v0  ;;  %v11976_v0 = vld [vmem:[%s13356_s10 + $0x2064] ss:$16 sps:$4 sm:$0xff]   ;;  %v11980_v57 = vld [vmem:[%s13356_s10 + $0x2040] ss:$16 sps:$4 sm:$0xff]  }
 0x268   : > { %8562 = vmatpush1.bf16.msra.mxu1 %v11953_v39  ;;  %v8228_v46 = vpop.f32.mrf.mxu0  ;;  %8522 = vmatprep.subr.bf16.mxu0 %v11958_v33  ;;  %v11979_v39 = vld [vmem:[%s13356_s10 + $0x2264] ss:$16 sps:$4 sm:$0xff]   ;;  %v11974_v33 = vld [vmem:[%s13356_s10 + $0x2060] ss:$16 sps:$4 sm:$0xff]  }
 0x269   : > { %v8269_v63 = vpop.f32.mrf.mxu1  ;;  %8563 = vmatprep.subr.bf16.mxu1 %v11961_v48  ;;  %v14147_v9 = vadd.f32 %v8267_v36, %v8227_v59  ;;  %v8229_v11 = vadd.f32 %v8228_v46, %v14057_v32  ;;  %8552 = vmatprep.mubr.bf16.mxu0 %v14128_v40  ;;  %v11970_v32 = vld [vmem:[%s13356_s10 + $0x2084] ss:$16 sps:$4 sm:$0xff]   ;;  %v11977_v48 = vld [vmem:[%s13356_s10 + $0x2260] ss:$16 sps:$4 sm:$0xff]  }
 0x26a   : > { %8593 = vmatprep.mubr.bf16.mxu1 %v14140_v53  ;;  %v8230_v22 = vpop.f32.mrf.mxu0  ;;  %v11983_v36 = vld [vmem:[%s13356_s10 + $0x2240] ss:$16 sps:$4 sm:$0xff]   ;;  %v11988_v59 = vld [vmem:[%s13356_s10 + $0x2024] ss:$16 sps:$4 sm:$0xff]  }
 0x26b   : > { %v8271_v20 = vpop.f32.mrf.mxu1  ;;  %v14154_v41 = vadd.f32 %v8269_v63, %v8229_v11  ;;  %8523 = vmatpush1.bf16.msra.mxu0 %v11956_v52  ;;  %v11982_v52 = vld [vmem:[%s13356_s10 + $0x2044] ss:$16 sps:$4 sm:$0xff]   ;;  %v11986_v63 = vld [vmem:[%s13356_s10 + $0x2020] ss:$16 sps:$4 sm:$0xff]  }
 0x26c   : > { %8564 = vmatpush1.bf16.msra.mxu1 %v11959_v47  ;;  %v8231_v28 = vpop.f32.mrf.mxu0  ;;  %8524 = vmatprep.subr.bf16.mxu0 %v11964_v6  ;;  %v11985_v47 = vld [vmem:[%s13356_s10 + $0x2244] ss:$16 sps:$4 sm:$0xff]   ;;  %v11989_v6 = vld [vmem:[%s13356_s10 + $0x2220] ss:$16 sps:$4 sm:$0xff]  }
 0x26d   : > { %v8272_v58 = vpop.f32.mrf.mxu1  ;;  %8565 = vmatprep.subr.bf16.mxu1 %v11967_v2  ;;  %v11991_v46 = vld [vmem:[%s13356_s10 + $0x2224] ss:$16 sps:$4 sm:$0xff]   ;;  %v11998_v28 = vld [vmem:[%s13356_s10 + $0x21e0] ss:$16 sps:$4 sm:$0xff]  }
 0x26e   : > { %v11994_v2 = vld [vmem:[%s13356_s10 + $0x2004] ss:$16 sps:$4 sm:$0xff]   ;;  %v12001_v58 = vld [vmem:[%s13356_s10 + $0x23e0] ss:$16 sps:$4 sm:$0xff]  }
 0x26f   : > { %8525 = vmatpush1.bf16.msra.mxu0 %v11962_v15  ;;  %v11997_v11 = vld [vmem:[%s13356_s10 + $0x2204] ss:$16 sps:$4 sm:$0xff]   ;;  %v11992_v15 = vld [vmem:[%s13356_s10 + $0x2000] ss:$16 sps:$4 sm:$0xff]  }
 0x270   : > { %8566 = vmatpush1.bf16.msra.mxu1 %v11965_v17  ;;  %8526 = vmatprep.subr.bf16.mxu0 %v11970_v32  ;;  %v11995_v17 = vld [vmem:[%s13356_s10 + $0x2200] ss:$16 sps:$4 sm:$0xff]   ;;  %v12000_v22 = vld [vmem:[%s13356_s10 + $0x21e4] ss:$16 sps:$4 sm:$0xff]  }
 0x271   : > { %8567 = vmatprep.subr.bf16.mxu1 %v11973_v30  ;;  %v12003_v20 = vld [vmem:[%s13356_s10 + $0x23e4] ss:$16 sps:$4 sm:$0xff]  }
 0x272   : > { %v12006_v32 = vld [vmem:[%s13356_s10 + $0x21c4] ss:$16 sps:$4 sm:$0xff]  }
 0x273   : > { %8527 = vmatpush1.bf16.msra.mxu0 %v11968_v37  ;;  %v12009_v30 = vld [vmem:[%s13356_s10 + $0x23c4] ss:$16 sps:$4 sm:$0xff]   ;;  %v12004_v37 = vld [vmem:[%s13356_s10 + $0x21c0] ss:$16 sps:$4 sm:$0xff]  }
 0x274   : > { %8568 = vmatpush1.bf16.msra.mxu1 %v11971_v3  ;;  %8528 = vmatprep.subr.bf16.mxu0 %v11976_v0  ;;  %v12007_v3 = vld [vmem:[%s13356_s10 + $0x23c0] ss:$16 sps:$4 sm:$0xff]   ;;  %v12012_v0 = vld [vmem:[%s13356_s10 + $0x21a4] ss:$16 sps:$4 sm:$0xff]  }
 0x275   : > { %8569 = vmatprep.subr.bf16.mxu1 %v11979_v39  ;;  %v12015_v39 = vld [vmem:[%s13356_s10 + $0x23a4] ss:$16 sps:$4 sm:$0xff]  }
 0x277   : > { %8529 = vmatpush1.bf16.msra.mxu0 %v11974_v33  ;;  %v12010_v33 = vld [vmem:[%s13356_s10 + $0x21a0] ss:$16 sps:$4 sm:$0xff]  }
 0x278   : > { %8570 = vmatpush1.bf16.msra.mxu1 %v11977_v48  ;;  %8530 = vmatprep.subr.bf16.mxu0 %v11982_v52  ;;  %v12013_v48 = vld [vmem:[%s13356_s10 + $0x23a0] ss:$16 sps:$4 sm:$0xff]   ;;  %v12018_v52 = vld [vmem:[%s13356_s10 + $0x2184] ss:$16 sps:$4 sm:$0xff]  }
 0x279   : > { %8571 = vmatprep.subr.bf16.mxu1 %v11985_v47  ;;  %v12021_v47 = vld [vmem:[%s13356_s10 + $0x2384] ss:$16 sps:$4 sm:$0xff]  }
 0x27b   : > { %8531 = vmatpush1.bf16.msra.mxu0 %v11980_v57  ;;  %v12016_v57 = vld [vmem:[%s13356_s10 + $0x2180] ss:$16 sps:$4 sm:$0xff]  }
 0x27c   : > { %8572 = vmatpush1.bf16.msra.mxu1 %v11983_v36  ;;  %8532 = vmatprep.subr.bf16.mxu0 %v11988_v59  ;;  %v12019_v36 = vld [vmem:[%s13356_s10 + $0x2380] ss:$16 sps:$4 sm:$0xff]   ;;  %v12024_v59 = vld [vmem:[%s13356_s10 + $0x2164] ss:$16 sps:$4 sm:$0xff]  }
 0x27d   : > { %8573 = vmatprep.subr.bf16.mxu1 %v11991_v46  ;;  %v12027_v46 = vld [vmem:[%s13356_s10 + $0x2364] ss:$16 sps:$4 sm:$0xff]  }
 0x27f   : > { %8533 = vmatpush1.bf16.msra.mxu0 %v11986_v63  ;;  %v12022_v63 = vld [vmem:[%s13356_s10 + $0x2160] ss:$16 sps:$4 sm:$0xff]  }
 0x280   : > { %8574 = vmatpush1.bf16.msra.mxu1 %v11989_v6  ;;  %8534 = vmatprep.subr.bf16.mxu0 %v11994_v2  ;;  %v12025_v6 = vld [vmem:[%s13356_s10 + $0x2360] ss:$16 sps:$4 sm:$0xff]   ;;  %v12030_v2 = vld [vmem:[%s13356_s10 + $0x2144] ss:$16 sps:$4 sm:$0xff]  }
 0x281   : > { %8575 = vmatprep.subr.bf16.mxu1 %v11997_v11  ;;  %v12033_v11 = vld [vmem:[%s13356_s10 + $0x2344] ss:$16 sps:$4 sm:$0xff]  }
 0x283   : > { %8535 = vmatpush1.bf16.msra.mxu0 %v11992_v15  ;;  %v12028_v15 = vld [vmem:[%s13356_s10 + $0x2140] ss:$16 sps:$4 sm:$0xff]  }
 0x284   : > { %8576 = vmatpush1.bf16.msra.mxu1 %v11995_v17  ;;  %8536 = vmatprep.subr.bf16.mxu0 %v12000_v22  ;;  %v12031_v17 = vld [vmem:[%s13356_s10 + $0x2340] ss:$16 sps:$4 sm:$0xff]   ;;  %v12036_v22 = vld [vmem:[%s13356_s10 + $0x2124] ss:$16 sps:$4 sm:$0xff]  }
 0x285   : > { %8577 = vmatprep.subr.bf16.mxu1 %v12003_v20  ;;  %v12039_v20 = vld [vmem:[%s13356_s10 + $0x2324] ss:$16 sps:$4 sm:$0xff]  }
 0x287   : > { %8537 = vmatpush2.bf16.msra.mxu0 %v11998_v28  ;;  %v1776_v28 = vcombine.high %v14101_v4, %v14101_v4  ;;  %v12040_v4 = vld [vmem:[%s13356_s10 + $0x2100] ss:$16 sps:$4 sm:$0xff]  }
 0x288   : > { %8578 = vmatpush2.bf16.msra.mxu1 %v12001_v58  ;;  %8538 = vmatprep.subr.bf16.mxu0 %v12006_v32  ;;  %v12034_v58 = vld [vmem:[%s13356_s10 + $0x2120] ss:$16 sps:$4 sm:$0xff]  }
 0x289   : > { %8579 = vmatprep.subr.bf16.mxu1 %v12009_v30  ;;  %v12037_v32 = vld [vmem:[%s13356_s10 + $0x2320] ss:$16 sps:$4 sm:$0xff]   ;;  %v12042_v30 = vld [vmem:[%s13356_s10 + $0x2104] ss:$16 sps:$4 sm:$0xff]  }
 0x28b   : > { %8539 = vmatpush2.bf16.msra.mxu0 %v12004_v37  ;;  %v12045_v37 = vld [vmem:[%s13356_s10 + $0x2304] ss:$16 sps:$4 sm:$0xff]  }
 0x28c   : > { %8580 = vmatpush2.bf16.msra.mxu1 %v12007_v3  ;;  %8540 = vmatprep.subr.bf16.mxu0 %v12012_v0  ;;  %v14209_v3 = vrot.slane %v1776_v28, %v13423_v50  ;;  %v14213_v0 = vrot.slane %v14109_v12, %v13423_v50  ;;  %v12064_v28 = vld [vmem:[%s13356_s10 + $0xac] ss:$16 sps:$4 sm:$0xff]  }
 0x28d   : > { %8581 = vmatprep.subr.bf16.mxu1 %v12015_v39  ;;  %v12043_v39 = vld [vmem:[%s13356_s10 + $0x2300] ss:$16 sps:$4 sm:$0xff]  }
 0x28e   : > { %v14225_v12 = vcombine.high %v14213_v0, %v14213_v0 }
 0x28f   : > { %8541 = vmatpush2.bf16.msra.mxu0 %v12010_v33  ;;  %v12049_v33 = vld [vmem:[%s13356_s10 + $0x24e4] ss:$16 sps:$4 sm:$0xff]  }
 0x290   : > { %8582 = vmatpush2.bf16.msra.mxu1 %v12013_v48  ;;  %8542 = vmatprep.subr.bf16.mxu0 %v12018_v52  ;;  %v12052_v48 = vld [vmem:[%s13356_s10 + $0xec] ss:$16 sps:$4 sm:$0xff]   ;;  %v12047_v52 = vld [vmem:[%s13356_s10 + $0x24e0] ss:$16 sps:$4 sm:$0xff]  }
 0x291   : > { %8583 = vmatprep.subr.bf16.mxu1 %v12021_v47  ;;  %v12050_v47 = vld [vmem:[%s13356_s10 + $0xe8] ss:$16 sps:$4 sm:$0xff]  }
 0x293   : > { %8543 = vmatpush2.bf16.msra.mxu0 %v12016_v57  ;;  %v1792_v57 = vcombine.high %v14209_v3, %v14209_v3 }
 0x294   : > { %8584 = vmatpush2.bf16.msra.mxu1 %v12019_v36  ;;  %8544 = vmatprep.subr.bf16.mxu0 %v12024_v59  ;;  %v12055_v36 = vld [vmem:[%s13356_s10 + $0x24c4] ss:$16 sps:$4 sm:$0xff]   ;;  %v12058_v59 = vld [vmem:[%s13356_s10 + $0xcc] ss:$16 sps:$4 sm:$0xff]  }
 0x295   : > { %8585 = vmatprep.subr.bf16.mxu1 %v12027_v46  ;;  %v12053_v46 = vld [vmem:[%s13356_s10 + $0x24c0] ss:$16 sps:$4 sm:$0xff]  }
 0x297   : > { %8545 = vmatpush2.bf16.msra.mxu0 %v12022_v63  ;;  %v12056_v63 = vld [vmem:[%s13356_s10 + $0xc8] ss:$16 sps:$4 sm:$0xff]  }
 0x298   : > { %8586 = vmatpush2.bf16.msra.mxu1 %v12025_v6  ;;  %8546 = vmatprep.subr.bf16.mxu0 %v12030_v2  ;;  %v14232_v6 = vrot.slane %v1792_v57, %v13423_v50  ;;  %v12073_v57 = vld [vmem:[%s13356_s10 + $0x2464] ss:$16 sps:$4 sm:$0xff]  }
 0x299   : > { %8587 = vmatprep.subr.bf16.mxu1 %v12033_v11 }
 0x29b   : > { %8547 = vmatpush2.bf16.msra.mxu0 %v12028_v15 }
 0x29c   : > { %8588 = vmatpush2.bf16.msra.mxu1 %v12031_v17  ;;  %8548 = vmatprep.subr.bf16.mxu0 %v12036_v22 }
 0x29d   : > { %8589 = vmatprep.subr.bf16.mxu1 %v12039_v20  ;;  %v12061_v20 = vld [vmem:[%s13356_s10 + $0x24a4] ss:$16 sps:$4 sm:$0xff]  }
 0x29f   : > { %8549 = vmatpush2.bf16.msra.mxu0 %v12034_v58 }
 0x2a0   : > { %8590 = vmatpush2.bf16.msra.mxu1 %v12037_v32  ;;  %8550 = vmatprep.subr.bf16.mxu0 %v12042_v30  ;;  %v12059_v30 = vld [vmem:[%s13356_s10 + $0x24a0] ss:$16 sps:$4 sm:$0xff]  }
 0x2a1   : > { %8591 = vmatprep.subr.bf16.mxu1 %v12045_v37  ;;  %v12062_v37 = vld [vmem:[%s13356_s10 + $0xa8] ss:$16 sps:$4 sm:$0xff]  }
 0x2a3   : > { %8551 = vmatpush2.bf16.msra.mxu0 %v12040_v4 }
 0x2a4   : > { %8592 = vmatpush2.bf16.msra.mxu1 %v12043_v39  ;;  %8602 = vmatprep.subr.bf16.mxu0 %v12049_v33 }
 0x2a5   : > { %8643 = vmatprep.subr.bf16.mxu1 %v12052_v48  ;;  %v12067_v48 = vld [vmem:[%s13356_s10 + $0x2484] ss:$16 sps:$4 sm:$0xff]  }
 0x2a6   : > { %v8308_v2 = vpop.f32.mrf.mxu0  ;;  %8553 = vmatmul.mubr.bf16.vlgmr.msra.gmra.mxu0 %v14213_v0 }
 0x2a7   : > { %v8349_v11 = vpop.f32.mrf.mxu1  ;;  %8594 = vmatmul.mubr.bf16.vlgmr.msra.gmra.mxu1 %v14225_v12  ;;  %v8309_v15 = vadd.f32 %v8308_v2, %v14147_v9  ;;  %8603 = vmatpush1.bf16.msra.mxu0 %v12047_v52  ;;  %v12070_v52 = vld [vmem:[%s13356_s10 + $0x8c] ss:$16 sps:$4 sm:$0xff]  }
 0x2a8   : > { %8644 = vmatpush1.bf16.msra.mxu1 %v12050_v47  ;;  %v8310_v17 = vpop.f32.mrf.mxu0  ;;  %8604 = vmatprep.subr.bf16.mxu0 %v12055_v36  ;;  %v12068_v47 = vld [vmem:[%s13356_s10 + $0x88] ss:$16 sps:$4 sm:$0xff]   ;;  %v12076_v36 = vld [vmem:[%s13356_s10 + $0x6c] ss:$16 sps:$4 sm:$0xff]  }
 0x2a9   : > { %v8351_v22 = vpop.f32.mrf.mxu1  ;;  %8645 = vmatprep.subr.bf16.mxu1 %v12058_v59  ;;  %v14239_v58 = vadd.f32 %v8349_v11, %v8309_v15  ;;  %v8311_v32 = vadd.f32 %v8310_v17, %v14154_v41  ;;  %11003 = vmatprep.mubr.msk.bf16.mxu0 %vm7860_vm1, %v14232_v6  ;;  %v12071_v59 = vld [vmem:[%s13356_s10 + $0x2460] ss:$16 sps:$4 sm:$0xff]   ;;  %v12082_v2 = vld [vmem:[%s13356_s10 + $0x4c] ss:$16 sps:$4 sm:$0xff]   ;;  %v12080_v15 = vld [vmem:[%s13356_s10 + $0x48] ss:$16 sps:$4 sm:$0xff]  }
 0x2aa   : > { %8675 = vmatprep.mubr.bf16.mxu1 %v13434_v61  ;;  %v8312_v9 = vpop.f32.mrf.mxu0  ;;  %v12065_v61 = vld [vmem:[%s13356_s10 + $0x2480] ss:$16 sps:$4 sm:$0xff]   ;;  %v12085_v17 = vld [vmem:[%s13356_s10 + $0x2424] ss:$16 sps:$4 sm:$0xff]  }
 0x2ab   : > { %v8353_v4 = vpop.f32.mrf.mxu1  ;;  %v14247_v39 = vadd.f32 %v8351_v22, %v8311_v32  ;;  %8605 = vmatpush1.bf16.msra.mxu0 %v12053_v46  ;;  %v12074_v46 = vld [vmem:[%s13356_s10 + $0x68] ss:$16 sps:$4 sm:$0xff]   ;;  %v12077_v11 = vld [vmem:[%s13356_s10 + $0x2440] ss:$16 sps:$4 sm:$0xff]   ;;  %v12088_v22 = vld [vmem:[%s13356_s10 + $0x2c] ss:$16 sps:$4 sm:$0xff]  }
 0x2ac   : > { %8646 = vmatpush1.bf16.msra.mxu1 %v12056_v63  ;;  %v8313_v33 = vpop.f32.mrf.mxu0  ;;  %8606 = vmatprep.subr.bf16.mxu0 %v12061_v20  ;;  %v12079_v63 = vld [vmem:[%s13356_s10 + $0x2444] ss:$16 sps:$4 sm:$0xff]   ;;  %v12083_v20 = vld [vmem:[%s13356_s10 + $0x2420] ss:$16 sps:$4 sm:$0xff]   ;;  %v12092_v9 = vld [vmem:[%s13356_s10 + $0x8] ss:$16 sps:$4 sm:$0xff]  }
 0x2ad   : > { %v8354_v41 = vpop.f32.mrf.mxu1  ;;  %8647 = vmatprep.subr.bf16.mxu1 %v12064_v28  ;;  %v12086_v28 = vld [vmem:[%s13356_s10 + $0x28] ss:$16 sps:$4 sm:$0xff]   ;;  %v12091_v32 = vld [vmem:[%s13356_s10 + $0x2404] ss:$16 sps:$4 sm:$0xff]   ;;  %v12100_v33 = vld [vmem:[%s13356_s10 + $0x1ec] ss:$16 sps:$4 sm:$0xff]  }
 0x2ae   : > { %v12097_v4 = vld [vmem:[%s13356_s10 + $0x2564] ss:$16 sps:$4 sm:$0xff]   ;;  %v12095_v41 = vld [vmem:[%s13356_s10 + $0x2560] ss:$16 sps:$4 sm:$0xff]  }
 0x2af   : > { %8607 = vmatpush1.bf16.msra.mxu0 %v12059_v30  ;;  %v12094_v30 = vld [vmem:[%s13356_s10 + $0xc] ss:$16 sps:$4 sm:$0xff]  }
 0x2b0   : > { %8648 = vmatpush1.bf16.msra.mxu1 %v12062_v37  ;;  %8608 = vmatprep.subr.bf16.mxu0 %v12067_v48  ;;  %v12089_v37 = vld [vmem:[%s13356_s10 + $0x2400] ss:$16 sps:$4 sm:$0xff]   ;;  %v12098_v48 = vld [vmem:[%s13356_s10 + $0x1e8] ss:$16 sps:$4 sm:$0xff]  }
 0x2b1   : > { %8649 = vmatprep.subr.bf16.mxu1 %v12070_v52  ;;  %v12103_v52 = vld [vmem:[%s13356_s10 + $0x2544] ss:$16 sps:$4 sm:$0xff]  }
 0x2b3   : > { %8609 = vmatpush1.bf16.msra.mxu0 %v12065_v61  ;;  %v12106_v61 = vld [vmem:[%s13356_s10 + $0x1cc] ss:$16 sps:$4 sm:$0xff]  }
 0x2b4   : > { %8650 = vmatpush1.bf16.msra.mxu1 %v12068_v47  ;;  %8610 = vmatprep.subr.bf16.mxu0 %v12073_v57  ;;  %v12101_v47 = vld [vmem:[%s13356_s10 + $0x2540] ss:$16 sps:$4 sm:$0xff]   ;;  %v12104_v57 = vld [vmem:[%s13356_s10 + $0x1c8] ss:$16 sps:$4 sm:$0xff]  }
 0x2b5   : > { %8651 = vmatprep.subr.bf16.mxu1 %v12076_v36  ;;  %v12109_v36 = vld [vmem:[%s13356_s10 + $0x2524] ss:$16 sps:$4 sm:$0xff]  }
 0x2b7   : > { %8611 = vmatpush1.bf16.msra.mxu0 %v12071_v59  ;;  %v12112_v59 = vld [vmem:[%s13356_s10 + $0x1ac] ss:$16 sps:$4 sm:$0xff]  }
 0x2b8   : > { %8652 = vmatpush1.bf16.msra.mxu1 %v12074_v46  ;;  %8612 = vmatprep.subr.bf16.mxu0 %v12079_v63  ;;  %v12107_v46 = vld [vmem:[%s13356_s10 + $0x2520] ss:$16 sps:$4 sm:$0xff]   ;;  %v12110_v63 = vld [vmem:[%s13356_s10 + $0x1a8] ss:$16 sps:$4 sm:$0xff]  }
 0x2b9   : > { %8653 = vmatprep.subr.bf16.mxu1 %v12082_v2  ;;  %v12115_v2 = vld [vmem:[%s13356_s10 + $0x2504] ss:$16 sps:$4 sm:$0xff]  }
 0x2bb   : > { %8613 = vmatpush1.bf16.msra.mxu0 %v12077_v11  ;;  %v12118_v11 = vld [vmem:[%s13356_s10 + $0x18c] ss:$16 sps:$4 sm:$0xff]  }
 0x2bc   : > { %8654 = vmatpush1.bf16.msra.mxu1 %v12080_v15  ;;  %8614 = vmatprep.subr.bf16.mxu0 %v12085_v17  ;;  %v12113_v15 = vld [vmem:[%s13356_s10 + $0x2500] ss:$16 sps:$4 sm:$0xff]   ;;  %v12116_v17 = vld [vmem:[%s13356_s10 + $0x188] ss:$16 sps:$4 sm:$0xff]  }
 0x2bd   : > { %8655 = vmatprep.subr.bf16.mxu1 %v12088_v22  ;;  %v12121_v22 = vld [vmem:[%s13356_s10 + $0x16c] ss:$16 sps:$4 sm:$0xff]  }
 0x2bf   : > { %8615 = vmatpush1.bf16.msra.mxu0 %v12083_v20  ;;  %v12124_v20 = vld [vmem:[%s13356_s10 + $0x2ec] ss:$16 sps:$4 sm:$0xff]  }
 0x2c0   : > { %8656 = vmatpush1.bf16.msra.mxu1 %v12086_v28  ;;  %8616 = vmatprep.subr.bf16.mxu0 %v12091_v32  ;;  %v12119_v28 = vld [vmem:[%s13356_s10 + $0x168] ss:$16 sps:$4 sm:$0xff]  }
 0x2c1   : > { %8657 = vmatprep.subr.bf16.mxu1 %v12094_v30  ;;  %v12122_v32 = vld [vmem:[%s13356_s10 + $0x2e8] ss:$16 sps:$4 sm:$0xff]   ;;  %v14291_v30 = vrot.slane %v14209_v3, %v13423_v50  ;;  %v12133_v50 = vld [vmem:[%s13356_s10 + $0x12c] ss:$16 sps:$4 sm:$0xff]  }
 0x2c2   : > { %v12136_v3 = vld [vmem:[%s13356_s10 + $0x2ac] ss:$16 sps:$4 sm:$0xff]  }
 0x2c3   : > { %8617 = vmatpush1.bf16.msra.mxu0 %v12089_v37  ;;  %v12127_v37 = vld [vmem:[%s13356_s10 + $0x14c] ss:$16 sps:$4 sm:$0xff]  }
 0x2c4   : > { %8658 = vmatpush1.bf16.msra.mxu1 %v12092_v9  ;;  %8626 = vmatprep.subr.bf16.mxu0 %v12097_v4  ;;  %v12130_v9 = vld [vmem:[%s13356_s10 + $0x2cc] ss:$16 sps:$4 sm:$0xff]   ;;  %v12125_v4 = vld [vmem:[%s13356_s10 + $0x148] ss:$16 sps:$4 sm:$0xff]  }
 0x2c5   : > { %8659 = vmatprep.subr.bf16.mxu1 %v12100_v33  ;;  %v12128_v33 = vld [vmem:[%s13356_s10 + $0x2c8] ss:$16 sps:$4 sm:$0xff]  }
 0x2c7   : > { %8627 = vmatpush2.bf16.msra.mxu0 %v12095_v41  ;;  %v12131_v41 = vld [vmem:[%s13356_s10 + $0x128] ss:$16 sps:$4 sm:$0xff]  }
 0x2c8   : > { %8660 = vmatpush2.bf16.msra.mxu1 %v12098_v48  ;;  %8628 = vmatprep.subr.bf16.mxu0 %v12103_v52  ;;  %v12134_v48 = vld [vmem:[%s13356_s10 + $0x2a8] ss:$16 sps:$4 sm:$0xff]   ;;  %v12139_v52 = vld [vmem:[%s13356_s10 + $0x10c] ss:$16 sps:$4 sm:$0xff]  }
 0x2c9   : > { %8661 = vmatprep.subr.bf16.mxu1 %v12106_v61  ;;  %v12142_v61 = vld [vmem:[%s13356_s10 + $0x28c] ss:$16 sps:$4 sm:$0xff]  }
 0x2cb   : > { %8629 = vmatpush2.bf16.msra.mxu0 %v12101_v47  ;;  %v12137_v47 = vld [vmem:[%s13356_s10 + $0x108] ss:$16 sps:$4 sm:$0xff]  }
 0x2cc   : > { %8662 = vmatpush2.bf16.msra.mxu1 %v12104_v57  ;;  %8630 = vmatprep.subr.bf16.mxu0 %v12109_v36  ;;  %v12140_v57 = vld [vmem:[%s13356_s10 + $0x288] ss:$16 sps:$4 sm:$0xff]   ;;  %v12148_v36 = vld [vmem:[%s13356_s10 + $0x4ec] ss:$16 sps:$4 sm:$0xff]  }
 0x2cd   : > { %8663 = vmatprep.subr.bf16.mxu1 %v12112_v59  ;;  %v12143_v59 = vld [vmem:[%s13356_s10 + $0x268] ss:$16 sps:$4 sm:$0xff]  }
 0x2cf   : > { %8631 = vmatpush2.bf16.msra.mxu0 %v12107_v46  ;;  %v12146_v46 = vld [vmem:[%s13356_s10 + $0x4e8] ss:$16 sps:$4 sm:$0xff]  }
 0x2d0   : > { %8664 = vmatpush2.bf16.msra.mxu1 %v12110_v63  ;;  %8632 = vmatprep.subr.bf16.mxu0 %v12115_v2  ;;  %v12151_v63 = vld [vmem:[%s13356_s10 + $0x24c] ss:$16 sps:$4 sm:$0xff]  }
 0x2d1   : > { %8665 = vmatprep.subr.bf16.mxu1 %v12118_v11  ;;  %v12154_v2 = vld [vmem:[%s13356_s10 + $0x4cc] ss:$16 sps:$4 sm:$0xff]   ;;  %v12149_v11 = vld [vmem:[%s13356_s10 + $0x248] ss:$16 sps:$4 sm:$0xff]  }
 0x2d3   : > { %8633 = vmatpush2.bf16.msra.mxu0 %v12113_v15  ;;  %v12152_v15 = vld [vmem:[%s13356_s10 + $0x4c8] ss:$16 sps:$4 sm:$0xff]  }
 0x2d4   : > { %8666 = vmatpush2.bf16.msra.mxu1 %v12116_v17  ;;  %8684 = vmatprep.subr.bf16.mxu0 %v12124_v20 }
 0x2d5   : > { %8667 = vmatprep.subr.bf16.mxu1 %v12121_v22 }
 0x2d6   : > { %8635 = vmatmul.mubr.bf16.vlgmr.msra.gmra.mxu0 %v14291_v30 }
 0x2d7   : > { %8685 = vmatpush1.bf16.msra.mxu0 %v12122_v32  ;;  %8716 = vmatprep.mubr.bf16.mxu0 %v13441_v1  ;;  %v12145_v1 = vld [vmem:[%s13356_s10 + $0x26c] ss:$16 sps:$4 sm:$0xff]  }
 0x2d8   : > { %8668 = vmatpush2.bf16.msra.mxu1 %v12119_v28  ;;  %8686 = vmatprep.subr.bf16.mxu0 %v12130_v9  ;;  %v12160_v9 = vld [vmem:[%s13356_s10 + $0x4ac] ss:$16 sps:$4 sm:$0xff]  }
 0x2d9   : > { %8669 = vmatprep.subr.bf16.mxu1 %v12127_v37  ;;  %v12157_v37 = vld [vmem:[%s13356_s10 + $0x22c] ss:$16 sps:$4 sm:$0xff]  }
 0x2db   : > { %8687 = vmatpush1.bf16.msra.mxu0 %v12128_v33 }
 0x2dc   : > { %8670 = vmatpush2.bf16.msra.mxu1 %v12125_v4  ;;  %8688 = vmatprep.subr.bf16.mxu0 %v12136_v3  ;;  %v12158_v3 = vld [vmem:[%s13356_s10 + $0x4a8] ss:$16 sps:$4 sm:$0xff]  }
 0x2dd   : > { %8671 = vmatprep.subr.bf16.mxu1 %v12133_v50  ;;  %v12155_v50 = vld [vmem:[%s13356_s10 + $0x228] ss:$16 sps:$4 sm:$0xff]  }
 0x2df   : > { %8689 = vmatpush1.bf16.msra.mxu0 %v12134_v48 }
 0x2e0   : > { %8672 = vmatpush2.bf16.msra.mxu1 %v12131_v41  ;;  %8690 = vmatprep.subr.bf16.mxu0 %v12142_v61  ;;  %v12166_v61 = vld [vmem:[%s13356_s10 + $0x48c] ss:$16 sps:$4 sm:$0xff]  }
 0x2e1   : > { %8673 = vmatprep.subr.bf16.mxu1 %v12139_v52 }
 0x2e3   : > { %8691 = vmatpush1.bf16.msra.mxu0 %v12140_v57  ;;  %v12169_v57 = vld [vmem:[%s13356_s10 + $0x3ec] ss:$16 sps:$4 sm:$0xff]  }
 0x2e4   : > { %8674 = vmatpush2.bf16.msra.mxu1 %v12137_v47  ;;  %8692 = vmatprep.subr.bf16.mxu0 %v12145_v1  ;;  %v12164_v47 = vld [vmem:[%s13356_s10 + $0x488] ss:$16 sps:$4 sm:$0xff]   ;;  %v12172_v1 = vld [vmem:[%s13356_s10 + $0x46c] ss:$16 sps:$4 sm:$0xff]  }
 0x2e5   : > { %8725 = vmatprep.subr.bf16.mxu1 %v12148_v36  ;;  %v12167_v36 = vld [vmem:[%s13356_s10 + $0x3e8] ss:$16 sps:$4 sm:$0xff]  }
 0x2e6   : > { %v8390_v17 = vpop.f32.mrf.mxu0 }
 0x2e7   : > { %v8431_v22 = vpop.f32.mrf.mxu1  ;;  %8676 = vmatmul.mubr.bf16.vlgmr.msra.gmra.mxu1 %v13460_v14  ;;  %v8391_v20 = vadd.f32 %v8390_v17, %v14239_v58  ;;  %8693 = vmatpush1.bf16.msra.mxu0 %v12143_v59  ;;  %v12170_v59 = vld [vmem:[%s13356_s10 + $0x468] ss:$16 sps:$4 sm:$0xff]   ;;  %v12184_v17 = vld [vmem:[%s13356_s10 + $0x42c] ss:$16 sps:$4 sm:$0xff]  }
 0x2e8   : > { %8726 = vmatpush1.bf16.msra.mxu1 %v12146_v46  ;;  %v8392_v28 = vpop.f32.mrf.mxu0  ;;  %8694 = vmatprep.subr.bf16.mxu0 %v12151_v63  ;;  %v12175_v46 = vld [vmem:[%s13356_s10 + $0x3cc] ss:$16 sps:$4 sm:$0xff]  }
 0x2e9   : > { %v8433_v32 = vpop.f32.mrf.mxu1  ;;  %8727 = vmatprep.subr.bf16.mxu1 %v12154_v2  ;;  %v14319_v4 = vadd.f32 %v8431_v22, %v8391_v20  ;;  %v8393_v33 = vadd.f32 %v8392_v28, %v14247_v39  ;;  %8757 = vmatprep.mubr.bf16.mxu1 %v13466_v18  ;;  %v12163_v39 = vld [vmem:[%s13356_s10 + $0x20c] ss:$16 sps:$4 sm:$0xff]   ;;  %v12161_v18 = vld [vmem:[%s13356_s10 + $0x208] ss:$16 sps:$4 sm:$0xff]  }
 0x2ea   : > { %v8394_v14 = vpop.f32.mrf.mxu0  ;;  %v12178_v63 = vld [vmem:[%s13356_s10 + $0x44c] ss:$16 sps:$4 sm:$0xff]   ;;  %v12173_v2 = vld [vmem:[%s13356_s10 + $0x3c8] ss:$16 sps:$4 sm:$0xff]  }
 0x2eb   : > { %v8435_v58 = vpop.f32.mrf.mxu1  ;;  %v14325_v41 = vadd.f32 %v8433_v32, %v8393_v33  ;;  %8695 = vmatpush1.bf16.msra.mxu0 %v12149_v11  ;;  %v12176_v11 = vld [vmem:[%s13356_s10 + $0x448] ss:$16 sps:$4 sm:$0xff]   ;;  %v12187_v28 = vld [vmem:[%s13356_s10 + $0x38c] ss:$16 sps:$4 sm:$0xff]  }
 0x2ec   : > { %8728 = vmatpush1.bf16.msra.mxu1 %v12152_v15  ;;  %v8395_v48 = vpop.f32.mrf.mxu0  ;;  %8696 = vmatprep.subr.bf16.mxu0 %v12157_v37  ;;  %v12181_v15 = vld [vmem:[%s13356_s10 + $0x3ac] ss:$16 sps:$4 sm:$0xff]   ;;  %v12179_v22 = vld [vmem:[%s13356_s10 + $0x3a8] ss:$16 sps:$4 sm:$0xff]  }
 0x2ed   : > { %v8436_v52 = vpop.f32.mrf.mxu1  ;;  %8729 = vmatprep.subr.bf16.mxu1 %v12160_v9  ;;  %v12182_v20 = vld [vmem:[%s13356_s10 + $0x428] ss:$16 sps:$4 sm:$0xff]   ;;  %v12190_v32 = vld [vmem:[%s13356_s10 + $0x40c] ss:$16 sps:$4 sm:$0xff]  }
 0x2ee   : > { %v12185_v37 = vld [vmem:[%s13356_s10 + $0x388] ss:$16 sps:$4 sm:$0xff]   ;;  %v12193_v33 = vld [vmem:[%s13356_s10 + $0x36c] ss:$16 sps:$4 sm:$0xff]  }
 0x2ef   : > { %8697 = vmatpush1.bf16.msra.mxu0 %v12155_v50  ;;  %v12188_v9 = vld [vmem:[%s13356_s10 + $0x408] ss:$16 sps:$4 sm:$0xff]   ;;  %v12196_v50 = vld [vmem:[%s13356_s10 + $0x5ec] ss:$16 sps:$4 sm:$0xff]  }
 0x2f0   : > { %8730 = vmatpush1.bf16.msra.mxu1 %v12158_v3  ;;  %8698 = vmatprep.subr.bf16.mxu0 %v12163_v39  ;;  %v12191_v3 = vld [vmem:[%s13356_s10 + $0x368] ss:$16 sps:$4 sm:$0xff]   ;;  %v12199_v58 = vld [vmem:[%s13356_s10 + $0x34c] ss:$16 sps:$4 sm:$0xff]  }
 0x2f1   : > { %8731 = vmatprep.subr.bf16.mxu1 %v12166_v61  ;;  %v12194_v14 = vld [vmem:[%s13356_s10 + $0x5e8] ss:$16 sps:$4 sm:$0xff]   ;;  %v12202_v48 = vld [vmem:[%s13356_s10 + $0x5cc] ss:$16 sps:$4 sm:$0xff]  }
 0x2f2   : > { %v12197_v52 = vld [vmem:[%s13356_s10 + $0x348] ss:$16 sps:$4 sm:$0xff]   ;;  %v12205_v61 = vld [vmem:[%s13356_s10 + $0x32c] ss:$16 sps:$4 sm:$0xff]  }
 0x2f3   : > { %8699 = vmatpush1.bf16.msra.mxu0 %v12161_v18  ;;  %v12200_v39 = vld [vmem:[%s13356_s10 + $0x5c8] ss:$16 sps:$4 sm:$0xff]   ;;  %v12208_v18 = vld [vmem:[%s13356_s10 + $0x5ac] ss:$16 sps:$4 sm:$0xff]  }
 0x2f4   : > { %8732 = vmatpush1.bf16.msra.mxu1 %v12164_v47  ;;  %8700 = vmatprep.subr.bf16.mxu0 %v12169_v57  ;;  %v12203_v47 = vld [vmem:[%s13356_s10 + $0x328] ss:$16 sps:$4 sm:$0xff]  }
 0x2f5   : > { %8733 = vmatprep.subr.bf16.mxu1 %v12172_v1  ;;  %v12206_v57 = vld [vmem:[%s13356_s10 + $0x5a8] ss:$16 sps:$4 sm:$0xff]   ;;  %v12211_v1 = vld [vmem:[%s13356_s10 + $0x30c] ss:$16 sps:$4 sm:$0xff]  }
 0x2f7   : > { %8701 = vmatpush2.bf16.msra.mxu0 %v12167_v36  ;;  %v12214_v36 = vld [vmem:[%s13356_s10 + $0x58c] ss:$16 sps:$4 sm:$0xff]  }
 0x2f8   : > { %8734 = vmatpush1.bf16.msra.mxu1 %v12170_v59  ;;  %8702 = vmatprep.subr.bf16.mxu0 %v12175_v46  ;;  %v12209_v59 = vld [vmem:[%s13356_s10 + $0x308] ss:$16 sps:$4 sm:$0xff]  }
 0x2f9   : > { %8735 = vmatprep.subr.bf16.mxu1 %v12178_v63  ;;  %v12212_v46 = vld [vmem:[%s13356_s10 + $0x588] ss:$16 sps:$4 sm:$0xff]   ;;  %v12217_v63 = vld [vmem:[%s13356_s10 + $0x56c] ss:$16 sps:$4 sm:$0xff]  }
 0x2fb   : > { %8703 = vmatpush2.bf16.msra.mxu0 %v12173_v2  ;;  %v12220_v2 = vld [vmem:[%s13356_s10 + $0x6ec] ss:$16 sps:$4 sm:$0xff]  }
 0x2fc   : > { %8736 = vmatpush1.bf16.msra.mxu1 %v12176_v11  ;;  %8704 = vmatprep.subr.bf16.mxu0 %v12181_v15  ;;  %v12215_v11 = vld [vmem:[%s13356_s10 + $0x568] ss:$16 sps:$4 sm:$0xff]  }
 0x2fd   : > { %8737 = vmatprep.subr.bf16.mxu1 %v12184_v17  ;;  %v12218_v15 = vld [vmem:[%s13356_s10 + $0x6e8] ss:$16 sps:$4 sm:$0xff]   ;;  %v12223_v17 = vld [vmem:[%s13356_s10 + $0x54c] ss:$16 sps:$4 sm:$0xff]  }
 0x2ff   : > { %8705 = vmatpush2.bf16.msra.mxu0 %v12179_v22  ;;  %v12226_v22 = vld [vmem:[%s13356_s10 + $0x6cc] ss:$16 sps:$4 sm:$0xff]  }
 0x300   : > { %8738 = vmatpush1.bf16.msra.mxu1 %v12182_v20  ;;  %8706 = vmatprep.subr.bf16.mxu0 %v12187_v28  ;;  %v12221_v20 = vld [vmem:[%s13356_s10 + $0x548] ss:$16 sps:$4 sm:$0xff]  }
 0x301   : > { %8739 = vmatprep.subr.bf16.mxu1 %v12190_v32  ;;  %v12224_v28 = vld [vmem:[%s13356_s10 + $0x6c8] ss:$16 sps:$4 sm:$0xff]   ;;  %v12229_v32 = vld [vmem:[%s13356_s10 + $0x52c] ss:$16 sps:$4 sm:$0xff]  }
 0x303   : > { %8707 = vmatpush2.bf16.msra.mxu0 %v12185_v37  ;;  %v12232_v37 = vld [vmem:[%s13356_s10 + $0x6ac] ss:$16 sps:$4 sm:$0xff]  }
 0x304   : > { %8740 = vmatpush1.bf16.msra.mxu1 %v12188_v9  ;;  %8708 = vmatprep.subr.bf16.mxu0 %v12193_v33  ;;  %v12227_v9 = vld [vmem:[%s13356_s10 + $0x528] ss:$16 sps:$4 sm:$0xff]   ;;  %v12235_v33 = vld [vmem:[%s13356_s10 + $0x50c] ss:$16 sps:$4 sm:$0xff]  }
 0x305   : > { %8741 = vmatprep.subr.bf16.mxu1 %v12196_v50  ;;  %v12238_v50 = vld [vmem:[%s13356_s10 + $0x68c] ss:$16 sps:$4 sm:$0xff]  }
 0x307   : > { %8709 = vmatpush2.bf16.msra.mxu0 %v12191_v3  ;;  %v12233_v3 = vld [vmem:[%s13356_s10 + $0x508] ss:$16 sps:$4 sm:$0xff]  }
 0x308   : > { %8742 = vmatpush2.bf16.msra.mxu1 %v12194_v14  ;;  %8710 = vmatprep.subr.bf16.mxu0 %v12199_v58  ;;  %v12236_v14 = vld [vmem:[%s13356_s10 + $0x688] ss:$16 sps:$4 sm:$0xff]   ;;  %v12244_v58 = vld [vmem:[%s13356_s10 + $0x8ec] ss:$16 sps:$4 sm:$0xff]  }
 0x309   : > { %8743 = vmatprep.subr.bf16.mxu1 %v12202_v48  ;;  %v12239_v48 = vld [vmem:[%s13356_s10 + $0x668] ss:$16 sps:$4 sm:$0xff]  }
 0x30b   : > { %8711 = vmatpush2.bf16.msra.mxu0 %v12197_v52  ;;  %v12242_v52 = vld [vmem:[%s13356_s10 + $0x8e8] ss:$16 sps:$4 sm:$0xff]  }
 0x30c   : > { %8744 = vmatpush2.bf16.msra.mxu1 %v12200_v39  ;;  %8712 = vmatprep.subr.bf16.mxu0 %v12205_v61  ;;  %v12247_v39 = vld [vmem:[%s13356_s10 + $0x64c] ss:$16 sps:$4 sm:$0xff]  }
 0x30d   : > { %8745 = vmatprep.subr.bf16.mxu1 %v12208_v18  ;;  %v12250_v61 = vld [vmem:[%s13356_s10 + $0x8cc] ss:$16 sps:$4 sm:$0xff]  }
 0x30f   : > { %8713 = vmatpush2.bf16.msra.mxu0 %v12203_v47 }
 0x310   : > { %8746 = vmatpush2.bf16.msra.mxu1 %v12206_v57  ;;  %8714 = vmatprep.subr.bf16.mxu0 %v12211_v1  ;;  %v12245_v1 = vld [vmem:[%s13356_s10 + $0x648] ss:$16 sps:$4 sm:$0xff]  }
 0x311   : > { %8747 = vmatprep.subr.bf16.mxu1 %v12214_v36  ;;  %v12248_v36 = vld [vmem:[%s13356_s10 + $0x8c8] ss:$16 sps:$4 sm:$0xff]  }
 0x313   : > { %8715 = vmatpush2.bf16.msra.mxu0 %v12209_v59 }
 0x314   : > { %8748 = vmatpush2.bf16.msra.mxu1 %v12212_v46  ;;  %8766 = vmatprep.subr.bf16.mxu0 %v12220_v2  ;;  %v12256_v2 = vld [vmem:[%s13356_s10 + $0x8ac] ss:$16 sps:$4 sm:$0xff]  }
 0x315   : > { %8749 = vmatprep.subr.bf16.mxu1 %v12217_v63  ;;  %v12253_v63 = vld [vmem:[%s13356_s10 + $0x62c] ss:$16 sps:$4 sm:$0xff]  }
 0x316   : > { %8717 = vmatmul.mubr.bf16.vlgmr.msra.gmra.mxu0 %v13470_v19  ;;  %v12230_v19 = vld [vmem:[%s13356_s10 + $0x6a8] ss:$16 sps:$4 sm:$0xff]  }
 0x317   : > { %8767 = vmatpush1.bf16.msra.mxu0 %v12218_v15  ;;  %8798 = vmatprep.mubr.bf16.mxu0 %v13478_v24  ;;  %v12241_v24 = vld [vmem:[%s13356_s10 + $0x66c] ss:$16 sps:$4 sm:$0xff]  }
 0x318   : > { %8750 = vmatpush2.bf16.msra.mxu1 %v12215_v11  ;;  %8768 = vmatprep.subr.bf16.mxu0 %v12226_v22  ;;  %v12251_v22 = vld [vmem:[%s13356_s10 + $0x628] ss:$16 sps:$4 sm:$0xff]  }
 0x319   : > { %8751 = vmatprep.subr.bf16.mxu1 %v12223_v17 }
 0x31b   : > { %8769 = vmatpush1.bf16.msra.mxu0 %v12224_v28 }
 0x31c   : > { %8752 = vmatpush2.bf16.msra.mxu1 %v12221_v20  ;;  %8770 = vmatprep.subr.bf16.mxu0 %v12232_v37  ;;  %v12254_v20 = vld [vmem:[%s13356_s10 + $0x8a8] ss:$16 sps:$4 sm:$0xff]  }
 0x31d   : > { %8753 = vmatprep.subr.bf16.mxu1 %v12229_v32  ;;  %v12257_v37 = vld [vmem:[%s13356_s10 + $0x608] ss:$16 sps:$4 sm:$0xff]  }
 0x31f   : > { %8771 = vmatpush1.bf16.msra.mxu0 %v12230_v19  ;;  %v12265_v19 = vld [vmem:[%s13356_s10 + $0x7ec] ss:$16 sps:$4 sm:$0xff]  }
 0x320   : > { %8754 = vmatpush2.bf16.msra.mxu1 %v12227_v9  ;;  %8772 = vmatprep.subr.bf16.mxu0 %v12238_v50  ;;  %v12260_v9 = vld [vmem:[%s13356_s10 + $0x888] ss:$16 sps:$4 sm:$0xff]  }
 0x321   : > { %8755 = vmatprep.subr.bf16.mxu1 %v12235_v33  ;;  %v12268_v33 = vld [vmem:[%s13356_s10 + $0x86c] ss:$16 sps:$4 sm:$0xff]   ;;  %v12263_v50 = vld [vmem:[%s13356_s10 + $0x7e8] ss:$16 sps:$4 sm:$0xff]  }
 0x323   : > { %8773 = vmatpush1.bf16.msra.mxu0 %v12236_v14  ;;  %v12271_v14 = vld [vmem:[%s13356_s10 + $0x7cc] ss:$16 sps:$4 sm:$0xff]  }
 0x324   : > { %8756 = vmatpush2.bf16.msra.mxu1 %v12233_v3  ;;  %8774 = vmatprep.subr.bf16.mxu0 %v12241_v24  ;;  %v12266_v3 = vld [vmem:[%s13356_s10 + $0x868] ss:$16 sps:$4 sm:$0xff]   ;;  %v12274_v24 = vld [vmem:[%s13356_s10 + $0x84c] ss:$16 sps:$4 sm:$0xff]  }
 0x325   : > { %8807 = vmatprep.subr.bf16.mxu1 %v12244_v58  ;;  %v12269_v58 = vld [vmem:[%s13356_s10 + $0x7c8] ss:$16 sps:$4 sm:$0xff]  }
 0x326   : > { %v8472_v18 = vpop.f32.mrf.mxu0 }
 0x327   : > { %v8513_v47 = vpop.f32.mrf.mxu1  ;;  %8758 = vmatmul.mubr.bf16.vlgmr.msra.gmra.mxu1 %v13543_v27  ;;  %v8473_v57 = vadd.f32 %v8472_v18, %v14319_v4  ;;  %8775 = vmatpush1.bf16.msra.mxu0 %v12239_v48  ;;  %v12272_v48 = vld [vmem:[%s13356_s10 + $0x848] ss:$16 sps:$4 sm:$0xff]  }
 0x328   : > { %8808 = vmatpush1.bf16.msra.mxu1 %v12242_v52  ;;  %v8474_v59 = vpop.f32.mrf.mxu0  ;;  %8776 = vmatprep.subr.bf16.mxu0 %v12247_v39  ;;  %v12277_v52 = vld [vmem:[%s13356_s10 + $0x7ac] ss:$16 sps:$4 sm:$0xff]   ;;  %v12278_v18 = vld [vmem:[%s13356_s10 + $0x828] ss:$16 sps:$4 sm:$0xff]  }
 0x329   : > { %v8515_v46 = vpop.f32.mrf.mxu1  ;;  %8809 = vmatprep.subr.bf16.mxu1 %v12250_v61  ;;  %v14393_v11 = vadd.f32 %v8513_v47, %v8473_v57  ;;  %v8475_v27 = vadd.f32 %v8474_v59, %v14325_v41  ;;  %8839 = vmatprep.mubr.bf16.mxu1 %v13571_v42  ;;  %v12259_v41 = vld [vmem:[%s13356_s10 + $0x60c] ss:$16 sps:$4 sm:$0xff]   ;;  %v12275_v61 = vld [vmem:[%s13356_s10 + $0x7a8] ss:$16 sps:$4 sm:$0xff]  }
 0x32a   : > { %v8476_v4 = vpop.f32.mrf.mxu0  ;;  %v12262_v42 = vld [vmem:[%s13356_s10 + $0x88c] ss:$16 sps:$4 sm:$0xff]  }
 0x32b   : > { %v8517_v15 = vpop.f32.mrf.mxu1  ;;  %v14397_v17 = vadd.f32 %v8515_v46, %v8475_v27  ;;  %8777 = vmatpush1.bf16.msra.mxu0 %v12245_v1  ;;  %v12280_v39 = vld [vmem:[%s13356_s10 + $0x82c] ss:$16 sps:$4 sm:$0xff]   ;;  %v12281_v1 = vld [vmem:[%s13356_s10 + $0x788] ss:$16 sps:$4 sm:$0xff]  }
 0x32c   : > { %8810 = vmatpush1.bf16.msra.mxu1 %v12248_v36  ;;  %v8477_v28 = vpop.f32.mrf.mxu0  ;;  %8778 = vmatprep.subr.bf16.mxu0 %v12253_v63  ;;  %v12283_v47 = vld [vmem:[%s13356_s10 + $0x78c] ss:$16 sps:$4 sm:$0xff]   ;;  %v12284_v36 = vld [vmem:[%s13356_s10 + $0x808] ss:$16 sps:$4 sm:$0xff]  }
 0x32d   : > { %v8518_v32 = vpop.f32.mrf.mxu1  ;;  %8811 = vmatprep.subr.bf16.mxu1 %v12256_v2  ;;  %v12286_v57 = vld [vmem:[%s13356_s10 + $0x80c] ss:$16 sps:$4 sm:$0xff]   ;;  %v12287_v63 = vld [vmem:[%s13356_s10 + $0x768] ss:$16 sps:$4 sm:$0xff]  }
 0x32e   : > { %v12289_v59 = vld [vmem:[%s13356_s10 + $0x76c] ss:$16 sps:$4 sm:$0xff]   ;;  %v12290_v2 = vld [vmem:[%s13356_s10 + $0x9e8] ss:$16 sps:$4 sm:$0xff]  }
 0x32f   : > { %8779 = vmatpush1.bf16.msra.mxu0 %v12251_v22  ;;  %v12292_v46 = vld [vmem:[%s13356_s10 + $0x9ec] ss:$16 sps:$4 sm:$0xff]   ;;  %v12293_v15 = vld [vmem:[%s13356_s10 + $0x748] ss:$16 sps:$4 sm:$0xff]  }
 0x330   : > { %8812 = vmatpush1.bf16.msra.mxu1 %v12254_v20  ;;  %8780 = vmatprep.subr.bf16.mxu0 %v12259_v41  ;;  %v12295_v27 = vld [vmem:[%s13356_s10 + $0x74c] ss:$16 sps:$4 sm:$0xff]   ;;  %v12296_v22 = vld [vmem:[%s13356_s10 + $0x9c8] ss:$16 sps:$4 sm:$0xff]  }
 0x331   : > { %8813 = vmatprep.subr.bf16.mxu1 %v12262_v42  ;;  %v12298_v4 = vld [vmem:[%s13356_s10 + $0x9cc] ss:$16 sps:$4 sm:$0xff]   ;;  %v12299_v32 = vld [vmem:[%s13356_s10 + $0x728] ss:$16 sps:$4 sm:$0xff]  }
 0x332   : > { %v12301_v20 = vld [vmem:[%s13356_s10 + $0x72c] ss:$16 sps:$4 sm:$0xff]   ;;  %v12302_v41 = vld [vmem:[%s13356_s10 + $0x9a8] ss:$16 sps:$4 sm:$0xff]  }
 0x333   : > { %8781 = vmatpush1.bf16.msra.mxu0 %v12257_v37  ;;  %v12304_v28 = vld [vmem:[%s13356_s10 + $0x9ac] ss:$16 sps:$4 sm:$0xff]  }
 0x334   : > { %8814 = vmatpush1.bf16.msra.mxu1 %v12260_v9  ;;  %8782 = vmatprep.subr.bf16.mxu0 %v12265_v19  ;;  %v12307_v42 = vld [vmem:[%s13356_s10 + $0x70c] ss:$16 sps:$4 sm:$0xff]   ;;  %v12305_v9 = vld [vmem:[%s13356_s10 + $0x708] ss:$16 sps:$4 sm:$0xff]  }
 0x335   : > { %8815 = vmatprep.subr.bf16.mxu1 %v12268_v33  ;;  %v12310_v37 = vld [vmem:[%s13356_s10 + $0x98c] ss:$16 sps:$4 sm:$0xff]   ;;  %v12308_v19 = vld [vmem:[%s13356_s10 + $0x988] ss:$16 sps:$4 sm:$0xff]  }
 0x336   : > { %v12313_v33 = vld [vmem:[%s13356_s10 + $0x96c] ss:$16 sps:$4 sm:$0xff]  }
 0x337   : > { %8783 = vmatpush2.bf16.msra.mxu0 %v12263_v50  ;;  %v12316_v50 = vld [vmem:[%s13356_s10 + $0xaec] ss:$16 sps:$4 sm:$0xff]  }
 0x338   : > { %8816 = vmatpush1.bf16.msra.mxu1 %v12266_v3  ;;  %8784 = vmatprep.subr.bf16.mxu0 %v12271_v14  ;;  %v12311_v3 = vld [vmem:[%s13356_s10 + $0x968] ss:$16 sps:$4 sm:$0xff]  }
 0x339   : > { %8817 = vmatprep.subr.bf16.mxu1 %v12274_v24  ;;  %v12314_v14 = vld [vmem:[%s13356_s10 + $0xae8] ss:$16 sps:$4 sm:$0xff]   ;;  %v12319_v24 = vld [vmem:[%s13356_s10 + $0x94c] ss:$16 sps:$4 sm:$0xff]  }
 0x33b   : > { %8785 = vmatpush2.bf16.msra.mxu0 %v12269_v58  ;;  %v12322_v58 = vld [vmem:[%s13356_s10 + $0xacc] ss:$16 sps:$4 sm:$0xff]  }
 0x33c   : > { %8818 = vmatpush1.bf16.msra.mxu1 %v12272_v48  ;;  %8786 = vmatprep.subr.bf16.mxu0 %v12277_v52  ;;  %v12317_v48 = vld [vmem:[%s13356_s10 + $0x948] ss:$16 sps:$4 sm:$0xff]  }
 0x33d   : > { %8819 = vmatprep.subr.bf16.mxu1 %v12280_v39  ;;  %v12320_v52 = vld [vmem:[%s13356_s10 + $0xac8] ss:$16 sps:$4 sm:$0xff]   ;;  %v12325_v39 = vld [vmem:[%s13356_s10 + $0x92c] ss:$16 sps:$4 sm:$0xff]  }
 0x33f   : > { %8787 = vmatpush2.bf16.msra.mxu0 %v12275_v61  ;;  %v12328_v61 = vld [vmem:[%s13356_s10 + $0xaac] ss:$16 sps:$4 sm:$0xff]  }
 0x340   : > { %8820 = vmatpush1.bf16.msra.mxu1 %v12278_v18  ;;  %8788 = vmatprep.subr.bf16.mxu0 %v12283_v47  ;;  %v12323_v18 = vld [vmem:[%s13356_s10 + $0x928] ss:$16 sps:$4 sm:$0xff]   ;;  %v12331_v47 = vld [vmem:[%s13356_s10 + $0x90c] ss:$16 sps:$4 sm:$0xff]  }
 0x341   : > { %8821 = vmatprep.subr.bf16.mxu1 %v12286_v57  ;;  %v12334_v57 = vld [vmem:[%s13356_s10 + $0xa8c] ss:$16 sps:$4 sm:$0xff]  }
 0x343   : > { %8789 = vmatpush2.bf16.msra.mxu0 %v12281_v1  ;;  %v12329_v1 = vld [vmem:[%s13356_s10 + $0x908] ss:$16 sps:$4 sm:$0xff]  }
 0x344   : > { %8822 = vmatpush1.bf16.msra.mxu1 %v12284_v36  ;;  %8790 = vmatprep.subr.bf16.mxu0 %v12289_v59  ;;  %v12332_v36 = vld [vmem:[%s13356_s10 + $0xa88] ss:$16 sps:$4 sm:$0xff]   ;;  %v12340_v59 = vld [vmem:[%s13356_s10 + $0xcec] ss:$16 sps:$4 sm:$0xff]  }
 0x345   : > { %8823 = vmatprep.subr.bf16.mxu1 %v12292_v46  ;;  %v12335_v46 = vld [vmem:[%s13356_s10 + $0xa68] ss:$16 sps:$4 sm:$0xff]  }
 0x347   : > { %8791 = vmatpush2.bf16.msra.mxu0 %v12287_v63  ;;  %v12338_v63 = vld [vmem:[%s13356_s10 + $0xce8] ss:$16 sps:$4 sm:$0xff]  }
 0x348   : > { %8824 = vmatpush2.bf16.msra.mxu1 %v12290_v2  ;;  %8792 = vmatprep.subr.bf16.mxu0 %v12295_v27  ;;  %v12343_v2 = vld [vmem:[%s13356_s10 + $0xa4c] ss:$16 sps:$4 sm:$0xff]  }
 0x349   : > { %8825 = vmatprep.subr.bf16.mxu1 %v12298_v4  ;;  %v12346_v27 = vld [vmem:[%s13356_s10 + $0xccc] ss:$16 sps:$4 sm:$0xff]  }
 0x34b   : > { %8793 = vmatpush2.bf16.msra.mxu0 %v12293_v15 }
 0x34c   : > { %8826 = vmatpush2.bf16.msra.mxu1 %v12296_v22  ;;  %8794 = vmatprep.subr.bf16.mxu0 %v12301_v20  ;;  %v12341_v20 = vld [vmem:[%s13356_s10 + $0xa48] ss:$16 sps:$4 sm:$0xff]  }
 0x34d   : > { %8827 = vmatprep.subr.bf16.mxu1 %v12304_v28  ;;  %v12344_v28 = vld [vmem:[%s13356_s10 + $0xcc8] ss:$16 sps:$4 sm:$0xff]  }
 0x34f   : > { %8795 = vmatpush2.bf16.msra.mxu0 %v12299_v32 }
 0x350   : > { %8828 = vmatpush2.bf16.msra.mxu1 %v12302_v41  ;;  %8796 = vmatprep.subr.bf16.mxu0 %v12307_v42  ;;  %v12349_v42 = vld [vmem:[%s13356_s10 + $0xa2c] ss:$16 sps:$4 sm:$0xff]  }
 0x351   : > { %8829 = vmatprep.subr.bf16.mxu1 %v12310_v37  ;;  %v12352_v37 = vld [vmem:[%s13356_s10 + $0xcac] ss:$16 sps:$4 sm:$0xff]  }
 0x353   : > { %8797 = vmatpush2.bf16.msra.mxu0 %v12305_v9 }
 0x354   : > { %8830 = vmatpush2.bf16.msra.mxu1 %v12308_v19  ;;  %8848 = vmatprep.subr.bf16.mxu0 %v12316_v50  ;;  %v12347_v50 = vld [vmem:[%s13356_s10 + $0xa28] ss:$16 sps:$4 sm:$0xff]  }
 0x355   : > { %8831 = vmatprep.subr.bf16.mxu1 %v12313_v33 }
 0x356   : > { %8799 = vmatmul.mubr.bf16.vlgmr.msra.gmra.mxu0 %v13550_v31  ;;  %v12326_v31 = vld [vmem:[%s13356_s10 + $0xaa8] ss:$16 sps:$4 sm:$0xff]  }
 0x357   : > { %8849 = vmatpush1.bf16.msra.mxu0 %v12314_v14  ;;  %8880 = vmatprep.mubr.bf16.mxu0 %v13576_v44  ;;  %v12337_v44 = vld [vmem:[%s13356_s10 + $0xa6c] ss:$16 sps:$4 sm:$0xff]  }
 0x358   : > { %8832 = vmatpush2.bf16.msra.mxu1 %v12311_v3  ;;  %8850 = vmatprep.subr.bf16.mxu0 %v12322_v58  ;;  %v12350_v3 = vld [vmem:[%s13356_s10 + $0xca8] ss:$16 sps:$4 sm:$0xff]  }
 0x359   : > { %8833 = vmatprep.subr.bf16.mxu1 %v12319_v24  ;;  %v12353_v58 = vld [vmem:[%s13356_s10 + $0xa08] ss:$16 sps:$4 sm:$0xff]  }
 0x35b   : > { %8851 = vmatpush1.bf16.msra.mxu0 %v12320_v52  ;;  %v12361_v52 = vld [vmem:[%s13356_s10 + $0xbec] ss:$16 sps:$4 sm:$0xff]  }
 0x35c   : > { %8834 = vmatpush2.bf16.msra.mxu1 %v12317_v48  ;;  %8852 = vmatprep.subr.bf16.mxu0 %v12328_v61  ;;  %v12356_v48 = vld [vmem:[%s13356_s10 + $0xc88] ss:$16 sps:$4 sm:$0xff]  }
 0x35d   : > { %8835 = vmatprep.subr.bf16.mxu1 %v12325_v39  ;;  %v12364_v39 = vld [vmem:[%s13356_s10 + $0xc6c] ss:$16 sps:$4 sm:$0xff]   ;;  %v12359_v61 = vld [vmem:[%s13356_s10 + $0xbe8] ss:$16 sps:$4 sm:$0xff]  }
 0x35f   : > { %8853 = vmatpush1.bf16.msra.mxu0 %v12326_v31  ;;  %v12367_v31 = vld [vmem:[%s13356_s10 + $0xbcc] ss:$16 sps:$4 sm:$0xff]  }
 0x360   : > { %8836 = vmatpush2.bf16.msra.mxu1 %v12323_v18  ;;  %8854 = vmatprep.subr.bf16.mxu0 %v12334_v57  ;;  %v12362_v18 = vld [vmem:[%s13356_s10 + $0xc68] ss:$16 sps:$4 sm:$0xff]  }
 0x361   : > { %8837 = vmatprep.subr.bf16.mxu1 %v12331_v47  ;;  %v12370_v47 = vld [vmem:[%s13356_s10 + $0xc4c] ss:$16 sps:$4 sm:$0xff]   ;;  %v12365_v57 = vld [vmem:[%s13356_s10 + $0xbc8] ss:$16 sps:$4 sm:$0xff]  }
 0x363   : > { %8855 = vmatpush1.bf16.msra.mxu0 %v12332_v36  ;;  %v12373_v36 = vld [vmem:[%s13356_s10 + $0xbac] ss:$16 sps:$4 sm:$0xff]  }
 0x364   : > { %8838 = vmatpush2.bf16.msra.mxu1 %v12329_v1  ;;  %8856 = vmatprep.subr.bf16.mxu0 %v12337_v44  ;;  %v12368_v1 = vld [vmem:[%s13356_s10 + $0xc48] ss:$16 sps:$4 sm:$0xff]   ;;  %v12376_v44 = vld [vmem:[%s13356_s10 + $0xc2c] ss:$16 sps:$4 sm:$0xff]  }
 0x365   : > { %8889 = vmatprep.subr.bf16.mxu1 %v12340_v59  ;;  %v12371_v59 = vld [vmem:[%s13356_s10 + $0xba8] ss:$16 sps:$4 sm:$0xff]  }
 0x366   : > { %v8554_v4 = vpop.f32.mrf.mxu0 }
 0x367   : > { %v8595_v15 = vpop.f32.mrf.mxu1  ;;  %8840 = vmatmul.mubr.bf16.vlgmr.msra.gmra.mxu1 %v13641_v51  ;;  %v8555_v22 = vadd.f32 %v8554_v4, %v14393_v11  ;;  %8857 = vmatpush1.bf16.msra.mxu0 %v12335_v46  ;;  %v12374_v46 = vld [vmem:[%s13356_s10 + $0xc28] ss:$16 sps:$4 sm:$0xff]  }
 0x368   : > { %8890 = vmatpush1.bf16.msra.mxu1 %v12338_v63  ;;  %v8556_v32 = vpop.f32.mrf.mxu0  ;;  %8858 = vmatprep.subr.bf16.mxu0 %v12343_v2  ;;  %v12379_v63 = vld [vmem:[%s13356_s10 + $0xb8c] ss:$16 sps:$4 sm:$0xff]   ;;  %v12380_v4 = vld [vmem:[%s13356_s10 + $0xc08] ss:$16 sps:$4 sm:$0xff]  }
 0x369   : > { %v8597_v41 = vpop.f32.mrf.mxu1  ;;  %8891 = vmatprep.subr.bf16.mxu1 %v12346_v27  ;;  %v14467_v9 = vadd.f32 %v8595_v15, %v8555_v22  ;;  %v8557_v51 = vadd.f32 %v8556_v32, %v14397_v17  ;;  %8921 = vmatprep.mubr.bf16.mxu1 %v13647_v55  ;;  %v12355_v17 = vld [vmem:[%s13356_s10 + $0xa0c] ss:$16 sps:$4 sm:$0xff]   ;;  %v12377_v27 = vld [vmem:[%s13356_s10 + $0xb88] ss:$16 sps:$4 sm:$0xff]  }
 0x36a   : > { %v8558_v11 = vpop.f32.mrf.mxu0  ;;  %v12358_v55 = vld [vmem:[%s13356_s10 + $0xc8c] ss:$16 sps:$4 sm:$0xff]  }
 0x36b   : > { %v8599_v19 = vpop.f32.mrf.mxu1  ;;  %v14471_v33 = vadd.f32 %v8597_v41, %v8557_v51  ;;  %8859 = vmatpush1.bf16.msra.mxu0 %v12341_v20  ;;  %v12382_v2 = vld [vmem:[%s13356_s10 + $0xc0c] ss:$16 sps:$4 sm:$0xff]   ;;  %v12383_v20 = vld [vmem:[%s13356_s10 + $0xb68] ss:$16 sps:$4 sm:$0xff]  }
 0x36c   : > { %8892 = vmatpush1.bf16.msra.mxu1 %v12344_v28  ;;  %v8559_v14 = vpop.f32.mrf.mxu0  ;;  %8860 = vmatprep.subr.bf16.mxu0 %v12349_v42  ;;  %v12385_v15 = vld [vmem:[%s13356_s10 + $0xb6c] ss:$16 sps:$4 sm:$0xff]   ;;  %v12386_v28 = vld [vmem:[%s13356_s10 + $0xde8] ss:$16 sps:$4 sm:$0xff]  }
 0x36d   : > { %v8600_v24 = vpop.f32.mrf.mxu1  ;;  %8893 = vmatprep.subr.bf16.mxu1 %v12352_v37  ;;  %v12388_v22 = vld [vmem:[%s13356_s10 + $0xdec] ss:$16 sps:$4 sm:$0xff]   ;;  %v12389_v42 = vld [vmem:[%s13356_s10 + $0xb48] ss:$16 sps:$4 sm:$0xff]  }
 0x36e   : > { %v12391_v32 = vld [vmem:[%s13356_s10 + $0xb4c] ss:$16 sps:$4 sm:$0xff]   ;;  %v12392_v37 = vld [vmem:[%s13356_s10 + $0xdc8] ss:$16 sps:$4 sm:$0xff]  }
 0x36f   : > { %8861 = vmatpush1.bf16.msra.mxu0 %v12347_v50  ;;  %v12394_v41 = vld [vmem:[%s13356_s10 + $0xdcc] ss:$16 sps:$4 sm:$0xff]   ;;  %v12395_v19 = vld [vmem:[%s13356_s10 + $0xb28] ss:$16 sps:$4 sm:$0xff]  }
 0x370   : > { %8894 = vmatpush1.bf16.msra.mxu1 %v12350_v3  ;;  %8862 = vmatprep.subr.bf16.mxu0 %v12355_v17  ;;  %v12397_v51 = vld [vmem:[%s13356_s10 + $0xb2c] ss:$16 sps:$4 sm:$0xff]   ;;  %v12398_v50 = vld [vmem:[%s13356_s10 + $0xda8] ss:$16 sps:$4 sm:$0xff]  }
 0x371   : > { %8895 = vmatprep.subr.bf16.mxu1 %v12358_v55  ;;  %v12400_v11 = vld [vmem:[%s13356_s10 + $0xdac] ss:$16 sps:$4 sm:$0xff]   ;;  %v12401_v24 = vld [vmem:[%s13356_s10 + $0xb08] ss:$16 sps:$4 sm:$0xff]  }
 0x372   : > { %v12403_v3 = vld [vmem:[%s13356_s10 + $0xb0c] ss:$16 sps:$4 sm:$0xff]   ;;  %v12404_v17 = vld [vmem:[%s13356_s10 + $0xd88] ss:$16 sps:$4 sm:$0xff]  }
 0x373   : > { %8863 = vmatpush1.bf16.msra.mxu0 %v12353_v58  ;;  %v12406_v14 = vld [vmem:[%s13356_s10 + $0xd8c] ss:$16 sps:$4 sm:$0xff]  }
 0x374   : > { %8896 = vmatpush1.bf16.msra.mxu1 %v12356_v48  ;;  %8864 = vmatprep.subr.bf16.mxu0 %v12361_v52  ;;  %v12409_v55 = vld [vmem:[%s13356_s10 + $0xd6c] ss:$16 sps:$4 sm:$0xff]   ;;  %v12407_v48 = vld [vmem:[%s13356_s10 + $0xd68] ss:$16 sps:$4 sm:$0xff]  }
 0x375   : > { %8897 = vmatprep.subr.bf16.mxu1 %v12364_v39  ;;  %v12412_v58 = vld [vmem:[%s13356_s10 + $0xeec] ss:$16 sps:$4 sm:$0xff]   ;;  %v12410_v52 = vld [vmem:[%s13356_s10 + $0xee8] ss:$16 sps:$4 sm:$0xff]  }
 0x376   : > { %v12415_v39 = vld [vmem:[%s13356_s10 + $0xd4c] ss:$16 sps:$4 sm:$0xff]  }
 0x377   : > { %8865 = vmatpush2.bf16.msra.mxu0 %v12359_v61  ;;  %v12418_v61 = vld [vmem:[%s13356_s10 + $0xecc] ss:$16 sps:$4 sm:$0xff]  }
 0x378   : > { %8898 = vmatpush1.bf16.msra.mxu1 %v12362_v18  ;;  %8866 = vmatprep.subr.bf16.mxu0 %v12367_v31 }
 0x379   : > { %8899 = vmatprep.subr.bf16.mxu1 %v12370_v47  ;;  %v12413_v47 = vld [vmem:[%s13356_s10 + $0xd48] ss:$16 sps:$4 sm:$0xff]  }
 0x37b   : > { %8867 = vmatpush2.bf16.msra.mxu0 %v12365_v57  ;;  %v12416_v57 = vld [vmem:[%s13356_s10 + $0xec8] ss:$16 sps:$4 sm:$0xff]  }
 0x37c   : > { %8900 = vmatpush1.bf16.msra.mxu1 %v12368_v1  ;;  %8868 = vmatprep.subr.bf16.mxu0 %v12373_v36  ;;  %v12421_v36 = vld [vmem:[%s13356_s10 + $0xd2c] ss:$16 sps:$4 sm:$0xff]  }
 0x37d   : > { %8901 = vmatprep.subr.bf16.mxu1 %v12376_v44  ;;  %v12424_v44 = vld [vmem:[%s13356_s10 + $0xeac] ss:$16 sps:$4 sm:$0xff]  }
 0x37f   : > { %8869 = vmatpush2.bf16.msra.mxu0 %v12371_v59  ;;  %v12419_v59 = vld [vmem:[%s13356_s10 + $0xd28] ss:$16 sps:$4 sm:$0xff]  }
 0x380   : > { %8902 = vmatpush1.bf16.msra.mxu1 %v12374_v46  ;;  %8870 = vmatprep.subr.bf16.mxu0 %v12379_v63  ;;  %v12422_v46 = vld [vmem:[%s13356_s10 + $0xea8] ss:$16 sps:$4 sm:$0xff]  }
 0x381   : > { %8903 = vmatprep.subr.bf16.mxu1 %v12382_v2  ;;  %v12427_v2 = vld [vmem:[%s13356_s10 + $0xd0c] ss:$16 sps:$4 sm:$0xff]  }
 0x383   : > { %8871 = vmatpush2.bf16.msra.mxu0 %v12377_v27  ;;  %v12430_v27 = vld [vmem:[%s13356_s10 + $0xe8c] ss:$16 sps:$4 sm:$0xff]  }
 0x384   : > { %8904 = vmatpush1.bf16.msra.mxu1 %v12380_v4  ;;  %8872 = vmatprep.subr.bf16.mxu0 %v12385_v15  ;;  %v12433_v4 = vld [vmem:[%s13356_s10 + $0xe6c] ss:$16 sps:$4 sm:$0xff]  }
 0x385   : > { %8905 = vmatprep.subr.bf16.mxu1 %v12388_v22  ;;  %v12436_v15 = vld [vmem:[%s13356_s10 + $0x10ec] ss:$16 sps:$4 sm:$0xff]   ;;  %v12431_v22 = vld [vmem:[%s13356_s10 + $0xe68] ss:$16 sps:$4 sm:$0xff]  }
 0x387   : > { %8873 = vmatpush2.bf16.msra.mxu0 %v12383_v20  ;;  %v12434_v20 = vld [vmem:[%s13356_s10 + $0x10e8] ss:$16 sps:$4 sm:$0xff]  }
 0x388   : > { %8906 = vmatpush2.bf16.msra.mxu1 %v12386_v28  ;;  %8874 = vmatprep.subr.bf16.mxu0 %v12391_v32  ;;  %v12439_v28 = vld [vmem:[%s13356_s10 + $0xe4c] ss:$16 sps:$4 sm:$0xff]  }
 0x389   : > { %8907 = vmatprep.subr.bf16.mxu1 %v12394_v41  ;;  %v12442_v32 = vld [vmem:[%s13356_s10 + $0x10cc] ss:$16 sps:$4 sm:$0xff]  }
 0x38b   : > { %8875 = vmatpush2.bf16.msra.mxu0 %v12389_v42  ;;  %v12437_v42 = vld [vmem:[%s13356_s10 + $0xe48] ss:$16 sps:$4 sm:$0xff]  }
 0x38c   : > { %8908 = vmatpush2.bf16.msra.mxu1 %v12392_v37  ;;  %8876 = vmatprep.subr.bf16.mxu0 %v12397_v51  ;;  %v12440_v37 = vld [vmem:[%s13356_s10 + $0x10c8] ss:$16 sps:$4 sm:$0xff]  }
 0x38d   : > { %8909 = vmatprep.subr.bf16.mxu1 %v12400_v11  ;;  %v12445_v11 = vld [vmem:[%s13356_s10 + $0xe2c] ss:$16 sps:$4 sm:$0xff]  }
 0x38f   : > { %8877 = vmatpush2.bf16.msra.mxu0 %v12395_v19  ;;  %v12448_v19 = vld [vmem:[%s13356_s10 + $0x10ac] ss:$16 sps:$4 sm:$0xff]  }
 0x390   : > { %8910 = vmatpush2.bf16.msra.mxu1 %v12398_v50  ;;  %8878 = vmatprep.subr.bf16.mxu0 %v12403_v3  ;;  %v12446_v3 = vld [vmem:[%s13356_s10 + $0x10a8] ss:$16 sps:$4 sm:$0xff]  }
 0x391   : > { %8911 = vmatprep.subr.bf16.mxu1 %v12406_v14 }
 0x393   : > { %8879 = vmatpush2.bf16.msra.mxu0 %v12401_v24  ;;  %v12451_v24 = vld [vmem:[%s13356_s10 + $0xe0c] ss:$16 sps:$4 sm:$0xff]  }
 0x394   : > { %8912 = vmatpush2.bf16.msra.mxu1 %v12404_v17  ;;  %8930 = vmatprep.subr.bf16.mxu0 %v12412_v58  ;;  %v12454_v17 = vld [vmem:[%s13356_s10 + $0x108c] ss:$16 sps:$4 sm:$0xff]  }
 0x395   : > { %8913 = vmatprep.subr.bf16.mxu1 %v12409_v55  ;;  %v12449_v55 = vld [vmem:[%s13356_s10 + $0xe08] ss:$16 sps:$4 sm:$0xff]   ;;  %v12457_v58 = vld [vmem:[%s13356_s10 + $0xfec] ss:$16 sps:$4 sm:$0xff]  }
 0x396   : > { %v8636_v18 = vpop.f32.mrf.mxu0  ;;  %8881 = vmatmul.mubr.bf16.vlgmr.msra.gmra.mxu0 %v13651_v56 }
 0x397   : > { %v14519_v31 = vadd.f32 %v8636_v18, %v14467_v9  ;;  %8931 = vmatpush1.bf16.msra.mxu0 %v12410_v52  ;;  %8962 = vmatprep.mubr.bf16.mxu0 %v13659_v60  ;;  %v12428_v60 = vld [vmem:[%s13356_s10 + $0xe88] ss:$16 sps:$4 sm:$0xff]   ;;  %v12466_v18 = vld [vmem:[%s13356_s10 + $0x104c] ss:$16 sps:$4 sm:$0xff]  }
 0x398   : > { %8914 = vmatpush2.bf16.msra.mxu1 %v12407_v48  ;;  %v8638_v1 = vpop.f32.mrf.mxu0  ;;  %8932 = vmatprep.subr.bf16.mxu0 %v12418_v61  ;;  %v12460_v48 = vld [vmem:[%s13356_s10 + $0x106c] ss:$16 sps:$4 sm:$0xff]   ;;  %v12455_v52 = vld [vmem:[%s13356_s10 + $0xfe8] ss:$16 sps:$4 sm:$0xff]  }
 0x399   : > { %8915 = vmatprep.subr.bf16.mxu1 %v12415_v39  ;;  %v14526_v56 = vadd.f32 %v8638_v1, %v14471_v33  ;;  %v12425_v33 = vld [vmem:[%s13356_s10 + $0xd08] ss:$16 sps:$4 sm:$0xff]   ;;  %v12463_v61 = vld [vmem:[%s13356_s10 + $0xfcc] ss:$16 sps:$4 sm:$0xff]  }
 0x39a   : > { %v8640_v9 = vpop.f32.mrf.mxu0  ;;  %v12458_v39 = vld [vmem:[%s13356_s10 + $0x1068] ss:$16 sps:$4 sm:$0xff]   ;;  %v12469_v1 = vld [vmem:[%s13356_s10 + $0xfac] ss:$16 sps:$4 sm:$0xff]  }
 0x39b   : > { %8933 = vmatpush1.bf16.msra.mxu0 %v12416_v57  ;;  %v12464_v57 = vld [vmem:[%s13356_s10 + $0x1048] ss:$16 sps:$4 sm:$0xff]  }
 0x39c   : > { %8916 = vmatpush2.bf16.msra.mxu1 %v12413_v47  ;;  %v8641_v63 = vpop.f32.mrf.mxu0  ;;  %8934 = vmatprep.subr.bf16.mxu0 %v12424_v44  ;;  %v12461_v47 = vld [vmem:[%s13356_s10 + $0xfc8] ss:$16 sps:$4 sm:$0xff]  }
 0x39d   : > { %8917 = vmatprep.subr.bf16.mxu1 %v12421_v36  ;;  %v12472_v36 = vld [vmem:[%s13356_s10 + $0x102c] ss:$16 sps:$4 sm:$0xff]   ;;  %v12467_v44 = vld [vmem:[%s13356_s10 + $0xfa8] ss:$16 sps:$4 sm:$0xff]  }
 0x39e   : > { %v12470_v9 = vld [vmem:[%s13356_s10 + $0x1028] ss:$16 sps:$4 sm:$0xff]  }
 0x39f   : > { %8935 = vmatpush1.bf16.msra.mxu0 %v12422_v46  ;;  %v12478_v46 = vld [vmem:[%s13356_s10 + $0x100c] ss:$16 sps:$4 sm:$0xff]   ;;  %v12473_v63 = vld [vmem:[%s13356_s10 + $0xf88] ss:$16 sps:$4 sm:$0xff]  }
 0x3a0   : > { %8918 = vmatpush2.bf16.msra.mxu1 %v12419_v59  ;;  %8936 = vmatprep.subr.bf16.mxu0 %v12430_v27  ;;  %v12475_v59 = vld [vmem:[%s13356_s10 + $0xf8c] ss:$16 sps:$4 sm:$0xff]  }
 0x3a1   : > { %8919 = vmatprep.subr.bf16.mxu1 %v12427_v2  ;;  %v12476_v2 = vld [vmem:[%s13356_s10 + $0x1008] ss:$16 sps:$4 sm:$0xff]   ;;  %v12481_v27 = vld [vmem:[%s13356_s10 + $0xf6c] ss:$16 sps:$4 sm:$0xff]  }
 0x3a3   : > { %8937 = vmatpush1.bf16.msra.mxu0 %v12428_v60  ;;  %v12479_v60 = vld [vmem:[%s13356_s10 + $0xf68] ss:$16 sps:$4 sm:$0xff]  }
 0x3a4   : > { %8920 = vmatpush2.bf16.msra.mxu1 %v12425_v33  ;;  %8938 = vmatprep.subr.bf16.mxu0 %v12433_v4  ;;  %v12484_v33 = vld [vmem:[%s13356_s10 + $0x11ec] ss:$16 sps:$4 sm:$0xff]   ;;  %v12482_v4 = vld [vmem:[%s13356_s10 + $0x11e8] ss:$16 sps:$4 sm:$0xff]  }
 0x3a5   : > { %8971 = vmatprep.subr.bf16.mxu1 %v12436_v15  ;;  %v12487_v15 = vld [vmem:[%s13356_s10 + $0xf4c] ss:$16 sps:$4 sm:$0xff]  }
 0x3a7   : > { %v14541_v41 = vpop.f32.mrf.mxu1  ;;  %8922 = vmatmul.mubr.bf16.vlgmr.msra.gmra.mxu1 %v13735_v16  ;;  %8939 = vmatpush1.bf16.msra.mxu0 %v12431_v22  ;;  %v12443_v16 = vld [vmem:[%s13356_s10 + $0xe28] ss:$16 sps:$4 sm:$0xff]   ;;  %v12490_v22 = vld [vmem:[%s13356_s10 + $0x11cc] ss:$16 sps:$4 sm:$0xff]  }
 0x3a8   : > { %8972 = vmatpush1.bf16.msra.mxu1 %v12434_v20  ;;  %8940 = vmatprep.subr.bf16.mxu0 %v12439_v28  ;;  %v12485_v20 = vld [vmem:[%s13356_s10 + $0xf48] ss:$16 sps:$4 sm:$0xff]  }
 0x3a9   : > { %v14546_v51 = vpop.f32.mrf.mxu1  ;;  %8973 = vmatprep.subr.bf16.mxu1 %v12442_v32  ;;  %9003 = vmatprep.mubr.bf16.mxu1 %v13742_v23  ;;  %v12452_v23 = vld [vmem:[%s13356_s10 + $0x1088] ss:$16 sps:$4 sm:$0xff]   ;;  %v12493_v32 = vld [vmem:[%s13356_s10 + $0xf2c] ss:$16 sps:$4 sm:$0xff]  }
 0x3aa   : > { %v12488_v28 = vld [vmem:[%s13356_s10 + $0x11c8] ss:$16 sps:$4 sm:$0xff]  }
 0x3ab   : > { %v8681_v50 = vpop.f32.mrf.mxu1  ;;  %8941 = vmatpush1.bf16.msra.mxu0 %v12437_v42  ;;  %v12496_v42 = vld [vmem:[%s13356_s10 + $0x11ac] ss:$16 sps:$4 sm:$0xff]  }
 0x3ac   : > { %8974 = vmatpush1.bf16.msra.mxu1 %v12440_v37  ;;  %8942 = vmatprep.subr.bf16.mxu0 %v12445_v11  ;;  %v12491_v37 = vld [vmem:[%s13356_s10 + $0xf28] ss:$16 sps:$4 sm:$0xff]   ;;  %v12502_v50 = vld [vmem:[%s13356_s10 + $0x118c] ss:$16 sps:$4 sm:$0xff]  }
 0x3ad   : > { %v8682_v14 = vpop.f32.mrf.mxu1  ;;  %8975 = vmatprep.subr.bf16.mxu1 %v12448_v19  ;;  %v12494_v11 = vld [vmem:[%s13356_s10 + $0x11a8] ss:$16 sps:$4 sm:$0xff]   ;;  %v12499_v19 = vld [vmem:[%s13356_s10 + $0xf0c] ss:$16 sps:$4 sm:$0xff]  }
 0x3ae   : > { %v12497_v14 = vld [vmem:[%s13356_s10 + $0xf08] ss:$16 sps:$4 sm:$0xff]  }
 0x3af   : > { %8943 = vmatpush1.bf16.msra.mxu0 %v12443_v16  ;;  %v1565_v16 = vsub.s32 2, %v13415_v43 }
 0x3b0   : > { %8976 = vmatpush1.bf16.msra.mxu1 %v12446_v3  ;;  %8944 = vmatprep.subr.bf16.mxu0 %v12451_v24  ;;  %v1569_v3 = vsub.s32 3, %v13415_v43  ;;  %v12500_v24 = vld [vmem:[%s13356_s10 + $0x1188] ss:$16 sps:$4 sm:$0xff]  }
 0x3b1   : > { %8977 = vmatprep.subr.bf16.mxu1 %v12454_v17  ;;  %v12505_v17 = vld [vmem:[%s13356_s10 + $0x116c] ss:$16 sps:$4 sm:$0xff]   ;;  %v12506_v43 = vld [vmem:[%s13356_s10 + $0x12e8] ss:$16 sps:$4 sm:$0xff]  }
 0x3b3   : > { %8945 = vmatpush1.bf16.msra.mxu0 %v12449_v55  ;;  %v12508_v55 = vld [vmem:[%s13356_s10 + $0x12ec] ss:$16 sps:$4 sm:$0xff]  }
 0x3b4   : > { %8978 = vmatpush1.bf16.msra.mxu1 %v12452_v23  ;;  %8946 = vmatprep.subr.bf16.mxu0 %v12457_v58  ;;  %v12983_v23 = vld [vmem:[%s297_s7] sm:$0xf] }
 0x3b5   : > { %8979 = vmatprep.subr.bf16.mxu1 %v12460_v48  ;;  %v1566_v58 = vrot.slane %v12983_v23, %v1565_v16  ;;  %v1570_v48 = vrot.slane %v12983_v23, %v1569_v3  ;;  %v12541_v16 = vld [vmem:[%s13356_s10 + $0x122c] ss:$16 sps:$4 sm:$0xff]  }
 0x3b6   : > { %v12544_v3 = vld [vmem:[%s13356_s10 + $0x14ac] ss:$16 sps:$4 sm:$0xff]  }
 0x3b7   : > { %8947 = vmatpush2.bf16.msra.mxu0 %v12455_v52  ;;  %v12503_v52 = vld [vmem:[%s13356_s10 + $0x1168] ss:$16 sps:$4 sm:$0xff]   ;;  %v12547_v23 = vld [vmem:[%s13356_s10 + $0x120c] ss:$16 sps:$4 sm:$0xff]  }
 0x3b8   : > { %8980 = vmatpush1.bf16.msra.mxu1 %v12458_v39  ;;  %8948 = vmatprep.subr.bf16.mxu0 %v12463_v61  ;;  %v12511_v39 = vld [vmem:[%s13356_s10 + $0x114c] ss:$16 sps:$4 sm:$0xff]  }
 0x3b9   : > { %8981 = vmatprep.subr.bf16.mxu1 %v12466_v18  ;;  %v12514_v61 = vld [vmem:[%s13356_s10 + $0x12cc] ss:$16 sps:$4 sm:$0xff]   ;;  %v8678_v18 = vadd.f32 %v14541_v41, %v1566_v58 }
 0x3ba   : > { %v12520_v41 = vld [vmem:[%s13356_s10 + $0x12ac] ss:$16 sps:$4 sm:$0xff]  }
 0x3bb   : > { %8949 = vmatpush2.bf16.msra.mxu0 %v12461_v47  ;;  %v12550_v58 = vld [vmem:[%s13356_s10 + $0x148c] ss:$16 sps:$4 sm:$0xff]  }
 0x3bc   : > { %8982 = vmatpush1.bf16.msra.mxu1 %v12464_v57  ;;  %8950 = vmatprep.subr.bf16.mxu0 %v12469_v1  ;;  %v8680_v57 = vadd.f32 %v14546_v51, %v1570_v48  ;;  %v12515_v51 = vld [vmem:[%s13356_s10 + $0x1128] ss:$16 sps:$4 sm:$0xff]  }
 0x3bd   : > { %8983 = vmatprep.subr.bf16.mxu1 %v12472_v36  ;;  %v12509_v36 = vld [vmem:[%s13356_s10 + $0x1148] ss:$16 sps:$4 sm:$0xff]  }
 0x3be   : > { %v12545_v48 = vld [vmem:[%s13356_s10 + $0x1208] ss:$16 sps:$4 sm:$0xff]  }
 0x3bf   : > { %8951 = vmatpush2.bf16.msra.mxu0 %v12467_v44  ;;  %v12512_v44 = vld [vmem:[%s13356_s10 + $0x12c8] ss:$16 sps:$4 sm:$0xff]  }
 0x3c0   : > { %8984 = vmatpush1.bf16.msra.mxu1 %v12470_v9  ;;  %8952 = vmatprep.subr.bf16.mxu0 %v12475_v59  ;;  %v12517_v59 = vld [vmem:[%s13356_s10 + $0x112c] ss:$16 sps:$4 sm:$0xff]  }
 0x3c1   : > { %8985 = vmatprep.subr.bf16.mxu1 %v12478_v46 }
 0x3c3   : > { %8953 = vmatpush2.bf16.msra.mxu0 %v12473_v63  ;;  %v12518_v63 = vld [vmem:[%s13356_s10 + $0x12a8] ss:$16 sps:$4 sm:$0xff]  }
 0x3c4   : > { %8986 = vmatpush1.bf16.msra.mxu1 %v12476_v2  ;;  %8954 = vmatprep.subr.bf16.mxu0 %v12481_v27  ;;  %v12523_v27 = vld [vmem:[%s13356_s10 + $0x110c] ss:$16 sps:$4 sm:$0xff]  }
 0x3c5   : > { %8987 = vmatprep.subr.bf16.mxu1 %v12484_v33  ;;  %v12526_v33 = vld [vmem:[%s13356_s10 + $0x128c] ss:$16 sps:$4 sm:$0xff]  }
 0x3c7   : > { %8955 = vmatpush2.bf16.msra.mxu0 %v12479_v60  ;;  %v12521_v60 = vld [vmem:[%s13356_s10 + $0x1108] ss:$16 sps:$4 sm:$0xff]  }
 0x3c8   : > { %8988 = vmatpush2.bf16.msra.mxu1 %v12482_v4  ;;  %8956 = vmatprep.subr.bf16.mxu0 %v12487_v15  ;;  %v12529_v4 = vld [vmem:[%s13356_s10 + $0x126c] ss:$16 sps:$4 sm:$0xff]  }
 0x3c9   : > { %8989 = vmatprep.subr.bf16.mxu1 %v12490_v22  ;;  %v12532_v15 = vld [vmem:[%s13356_s10 + $0x14ec] ss:$16 sps:$4 sm:$0xff]   ;;  %v12527_v22 = vld [vmem:[%s13356_s10 + $0x1268] ss:$16 sps:$4 sm:$0xff]  }
 0x3cb   : > { %8957 = vmatpush2.bf16.msra.mxu0 %v12485_v20  ;;  %v12530_v20 = vld [vmem:[%s13356_s10 + $0x14e8] ss:$16 sps:$4 sm:$0xff]  }
 0x3cc   : > { %8990 = vmatpush2.bf16.msra.mxu1 %v12488_v28  ;;  %8958 = vmatprep.subr.bf16.mxu0 %v12493_v32  ;;  %v12535_v28 = vld [vmem:[%s13356_s10 + $0x124c] ss:$16 sps:$4 sm:$0xff]  }
 0x3cd   : > { %8991 = vmatprep.subr.bf16.mxu1 %v12496_v42  ;;  %v12538_v32 = vld [vmem:[%s13356_s10 + $0x14cc] ss:$16 sps:$4 sm:$0xff]  }
 0x3cf   : > { %8959 = vmatpush2.bf16.msra.mxu0 %v12491_v37 }
 0x3d0   : > { %8992 = vmatpush2.bf16.msra.mxu1 %v12494_v11  ;;  %8960 = vmatprep.subr.bf16.mxu0 %v12499_v19  ;;  %v12533_v11 = vld [vmem:[%s13356_s10 + $0x1248] ss:$16 sps:$4 sm:$0xff]  }
 0x3d1   : > { %8993 = vmatprep.subr.bf16.mxu1 %v12502_v50  ;;  %v12536_v19 = vld [vmem:[%s13356_s10 + $0x14c8] ss:$16 sps:$4 sm:$0xff]  }
 0x3d3   : > { %8961 = vmatpush2.bf16.msra.mxu0 %v12497_v14 }
 0x3d4   : > { %8994 = vmatpush2.bf16.msra.mxu1 %v12500_v24  ;;  %9012 = vmatprep.subr.bf16.mxu0 %v12508_v55  ;;  %v12539_v24 = vld [vmem:[%s13356_s10 + $0x1228] ss:$16 sps:$4 sm:$0xff]  }
 0x3d5   : > { %8995 = vmatprep.subr.bf16.mxu1 %v12505_v17  ;;  %v12542_v17 = vld [vmem:[%s13356_s10 + $0x14a8] ss:$16 sps:$4 sm:$0xff]  }
 0x3d6   : > { %v8718_v47 = vpop.f32.mrf.mxu0  ;;  %8963 = vmatmul.mubr.bf16.vlgmr.msra.gmra.mxu0 %v13746_v25 }
 0x3d7   : > { %v8719_v1 = vadd.f32 %v8718_v47, %v8678_v18  ;;  %9013 = vmatpush1.bf16.msra.mxu0 %v12506_v43  ;;  %9044 = vmatprep.mubr.bf16.mxu0 %v13754_v7  ;;  %v12524_v7 = vld [vmem:[%s13356_s10 + $0x1288] ss:$16 sps:$4 sm:$0xff]   ;;  %v12556_v43 = vld [vmem:[%s13356_s10 + $0x146c] ss:$16 sps:$4 sm:$0xff]  }
 0x3d8   : > { %8996 = vmatpush2.bf16.msra.mxu1 %v12503_v52  ;;  %v8720_v9 = vpop.f32.mrf.mxu0  ;;  %9014 = vmatprep.subr.bf16.mxu0 %v12514_v61  ;;  %v12553_v52 = vld [vmem:[%s13356_s10 + $0x13ec] ss:$16 sps:$4 sm:$0xff]   ;;  %v12554_v61 = vld [vmem:[%s13356_s10 + $0x1468] ss:$16 sps:$4 sm:$0xff]  }
 0x3d9   : > { %8997 = vmatprep.subr.bf16.mxu1 %v12511_v39  ;;  %v8721_v46 = vadd.f32 %v8720_v9, %v8680_v57  ;;  %v12551_v39 = vld [vmem:[%s13356_s10 + $0x13e8] ss:$16 sps:$4 sm:$0xff]   ;;  %v12559_v18 = vld [vmem:[%s13356_s10 + $0x13cc] ss:$16 sps:$4 sm:$0xff]  }
 0x3da   : > { %v8722_v25 = vpop.f32.mrf.mxu0  ;;  %v12562_v47 = vld [vmem:[%s13356_s10 + $0x144c] ss:$16 sps:$4 sm:$0xff]   ;;  %v12557_v57 = vld [vmem:[%s13356_s10 + $0x13c8] ss:$16 sps:$4 sm:$0xff]  }
 0x3db   : > { %9015 = vmatpush1.bf16.msra.mxu0 %v12512_v44  ;;  %v12568_v44 = vld [vmem:[%s13356_s10 + $0x142c] ss:$16 sps:$4 sm:$0xff]   ;;  %v12563_v9 = vld [vmem:[%s13356_s10 + $0x13a8] ss:$16 sps:$4 sm:$0xff]  }
 0x3dc   : > { %8998 = vmatpush2.bf16.msra.mxu1 %v12509_v36  ;;  %v8723_v2 = vpop.f32.mrf.mxu0  ;;  %9016 = vmatprep.subr.bf16.mxu0 %v12520_v41  ;;  %v12565_v36 = vld [vmem:[%s13356_s10 + $0x13ac] ss:$16 sps:$4 sm:$0xff]   ;;  %v12569_v25 = vld [vmem:[%s13356_s10 + $0x1388] ss:$16 sps:$4 sm:$0xff]  }
 0x3dd   : > { %8999 = vmatprep.subr.bf16.mxu1 %v12517_v59  ;;  %v12566_v59 = vld [vmem:[%s13356_s10 + $0x1428] ss:$16 sps:$4 sm:$0xff]   ;;  %v12571_v41 = vld [vmem:[%s13356_s10 + $0x138c] ss:$16 sps:$4 sm:$0xff]  }
 0x3de   : > { %v12580_v2 = vld [vmem:[%s13356_s10 + $0x15ec] ss:$16 sps:$4 sm:$0xff]  }
 0x3df   : > { %9017 = vmatpush1.bf16.msra.mxu0 %v12518_v63  ;;  %v12577_v63 = vld [vmem:[%s13356_s10 + $0x136c] ss:$16 sps:$4 sm:$0xff]  }
 0x3e0   : > { %9000 = vmatpush2.bf16.msra.mxu1 %v12515_v51  ;;  %9018 = vmatprep.subr.bf16.mxu0 %v12526_v33  ;;  %v12572_v51 = vld [vmem:[%s13356_s10 + $0x1408] ss:$16 sps:$4 sm:$0xff]  }
 0x3e1   : > { %9001 = vmatprep.subr.bf16.mxu1 %v12523_v27  ;;  %v12575_v27 = vld [vmem:[%s13356_s10 + $0x1368] ss:$16 sps:$4 sm:$0xff]  }
 0x3e2   : > { %v12578_v33 = vld [vmem:[%s13356_s10 + $0x15e8] ss:$16 sps:$4 sm:$0xff]  }
 0x3e3   : > { %9019 = vmatpush1.bf16.msra.mxu0 %v12524_v7  ;;  %v12586_v7 = vld [vmem:[%s13356_s10 + $0x15cc] ss:$16 sps:$4 sm:$0xff]  }
 0x3e4   : > { %9002 = vmatpush2.bf16.msra.mxu1 %v12521_v60  ;;  %9020 = vmatprep.subr.bf16.mxu0 %v12529_v4  ;;  %v12583_v60 = vld [vmem:[%s13356_s10 + $0x134c] ss:$16 sps:$4 sm:$0xff]   ;;  %v12581_v4 = vld [vmem:[%s13356_s10 + $0x1348] ss:$16 sps:$4 sm:$0xff]  }
 0x3e5   : > { %9053 = vmatprep.subr.bf16.mxu1 %v12532_v15  ;;  %v12584_v15 = vld [vmem:[%s13356_s10 + $0x15c8] ss:$16 sps:$4 sm:$0xff]  }
 0x3e7   : > { %v8759_v42 = vpop.f32.mrf.mxu1  ;;  %9004 = vmatmul.mubr.bf16.vlgmr.msra.gmra.mxu1 %v13829_v13  ;;  %9021 = vmatpush1.bf16.msra.mxu0 %v12527_v22  ;;  %v12589_v22 = vld [vmem:[%s13356_s10 + $0x132c] ss:$16 sps:$4 sm:$0xff]  }
 0x3e8   : > { %v14620_v37 = vadd.f32 %v8759_v42, %v8719_v1  ;;  %9054 = vmatpush1.bf16.msra.mxu1 %v12530_v20  ;;  %9022 = vmatprep.subr.bf16.mxu0 %v12535_v28  ;;  %v12560_v1 = vld [vmem:[%s13356_s10 + $0x1448] ss:$16 sps:$4 sm:$0xff]   ;;  %v12592_v20 = vld [vmem:[%s13356_s10 + $0x15ac] ss:$16 sps:$4 sm:$0xff]  }
 0x3e9   : > { %v8761_v50 = vpop.f32.mrf.mxu1  ;;  %9055 = vmatprep.subr.bf16.mxu1 %v12538_v32  ;;  %9085 = vmatprep.mubr.bf16.mxu1 %v13838_v26  ;;  %v12548_v26 = vld [vmem:[%s13356_s10 + $0x1488] ss:$16 sps:$4 sm:$0xff]   ;;  %v12595_v42 = vld [vmem:[%s13356_s10 + $0x130c] ss:$16 sps:$4 sm:$0xff]  }
 0x3ea   : > { %v14626_v14 = vadd.f32 %v8761_v50, %v8721_v46  ;;  %v12574_v46 = vld [vmem:[%s13356_s10 + $0x140c] ss:$16 sps:$4 sm:$0xff]   ;;  %v12587_v28 = vld [vmem:[%s13356_s10 + $0x1328] ss:$16 sps:$4 sm:$0xff]  }
 0x3eb   : > { %v8763_v13 = vpop.f32.mrf.mxu1  ;;  %9023 = vmatpush1.bf16.msra.mxu0 %v12533_v11  ;;  %v12590_v32 = vld [vmem:[%s13356_s10 + $0x15a8] ss:$16 sps:$4 sm:$0xff]   ;;  %v12598_v11 = vld [vmem:[%s13356_s10 + $0x158c] ss:$16 sps:$4 sm:$0xff]  }
 0x3ec   : > { %9056 = vmatpush1.bf16.msra.mxu1 %v12536_v19  ;;  %9024 = vmatprep.subr.bf16.mxu0 %v12541_v16  ;;  %v12593_v19 = vld [vmem:[%s13356_s10 + $0x1308] ss:$16 sps:$4 sm:$0xff]   ;;  %v12601_v16 = vld [vmem:[%s13356_s10 + $0x156c] ss:$16 sps:$4 sm:$0xff]  }
 0x3ed   : > { %v8764_v55 = vpop.f32.mrf.mxu1  ;;  %9057 = vmatprep.subr.bf16.mxu1 %v12544_v3  ;;  %v12596_v50 = vld [vmem:[%s13356_s10 + $0x1588] ss:$16 sps:$4 sm:$0xff]   ;;  %v12604_v3 = vld [vmem:[%s13356_s10 + $0x16ec] ss:$16 sps:$4 sm:$0xff]  }
 0x3ee   : > { %v12599_v13 = vld [vmem:[%s13356_s10 + $0x1568] ss:$16 sps:$4 sm:$0xff]   ;;  %v12610_v55 = vld [vmem:[%s13356_s10 + $0x16cc] ss:$16 sps:$4 sm:$0xff]  }
 0x3ef   : > { %9025 = vmatpush1.bf16.msra.mxu0 %v12539_v24  ;;  %v12602_v24 = vld [vmem:[%s13356_s10 + $0x16e8] ss:$16 sps:$4 sm:$0xff]  }
 0x3f0   : > { %9058 = vmatpush1.bf16.msra.mxu1 %v12542_v17  ;;  %9026 = vmatprep.subr.bf16.mxu0 %v12547_v23  ;;  %v12607_v17 = vld [vmem:[%s13356_s10 + $0x154c] ss:$16 sps:$4 sm:$0xff]  }
 0x3f1   : > { %9059 = vmatprep.subr.bf16.mxu1 %v12550_v58 }
 0x3f3   : > { %9027 = vmatpush1.bf16.msra.mxu0 %v12545_v48  ;;  %v12605_v48 = vld [vmem:[%s13356_s10 + $0x1548] ss:$16 sps:$4 sm:$0xff]  }
 0x3f4   : > { %9060 = vmatpush1.bf16.msra.mxu1 %v12548_v26  ;;  %9028 = vmatprep.subr.bf16.mxu0 %v12553_v52  ;;  %v12608_v26 = vld [vmem:[%s13356_s10 + $0x16c8] ss:$16 sps:$4 sm:$0xff]  }
 0x3f5   : > { %9061 = vmatprep.subr.bf16.mxu1 %v12556_v43  ;;  %v12613_v43 = vld [vmem:[%s13356_s10 + $0x152c] ss:$16 sps:$4 sm:$0xff]  }
 0x3f7   : > { %9029 = vmatpush2.bf16.msra.mxu0 %v12551_v39  ;;  %v12616_v39 = vld [vmem:[%s13356_s10 + $0x16ac] ss:$16 sps:$4 sm:$0xff]  }
 0x3f8   : > { %9062 = vmatpush1.bf16.msra.mxu1 %v12554_v61  ;;  %9030 = vmatprep.subr.bf16.mxu0 %v12559_v18  ;;  %v12614_v18 = vld [vmem:[%s13356_s10 + $0x16a8] ss:$16 sps:$4 sm:$0xff]  }
 0x3f9   : > { %9063 = vmatprep.subr.bf16.mxu1 %v12562_v47 }
 0x3fb   : > { %9031 = vmatpush2.bf16.msra.mxu0 %v12557_v57  ;;  %v12619_v57 = vld [vmem:[%s13356_s10 + $0x150c] ss:$16 sps:$4 sm:$0xff]  }
 0x3fc   : > { %9064 = vmatpush1.bf16.msra.mxu1 %v12560_v1  ;;  %9032 = vmatprep.subr.bf16.mxu0 %v12565_v36  ;;  %v12622_v1 = vld [vmem:[%s13356_s10 + $0x168c] ss:$16 sps:$4 sm:$0xff]  }
 0x3fd   : > { %9065 = vmatprep.subr.bf16.mxu1 %v12568_v44  ;;  %v12625_v36 = vld [vmem:[%s13356_s10 + $0x166c] ss:$16 sps:$4 sm:$0xff]  }
 0x3fe   : > { %v12628_v44 = vld [vmem:[%s13356_s10 + $0x18ec] ss:$16 sps:$4 sm:$0xff]  }
 0x3ff   : > { %9033 = vmatpush2.bf16.msra.mxu0 %v12563_v9  ;;  %v12623_v9 = vld [vmem:[%s13356_s10 + $0x1668] ss:$16 sps:$4 sm:$0xff]  }
 0x400   : > { %9066 = vmatpush1.bf16.msra.mxu1 %v12566_v59  ;;  %9034 = vmatprep.subr.bf16.mxu0 %v12571_v41  ;;  %v12626_v59 = vld [vmem:[%s13356_s10 + $0x18e8] ss:$16 sps:$4 sm:$0xff]   ;;  %v12631_v41 = vld [vmem:[%s13356_s10 + $0x164c] ss:$16 sps:$4 sm:$0xff]  }
 0x401   : > { %9067 = vmatprep.subr.bf16.mxu1 %v12574_v46  ;;  %v12634_v46 = vld [vmem:[%s13356_s10 + $0x18cc] ss:$16 sps:$4 sm:$0xff]  }
 0x403   : > { %9035 = vmatpush2.bf16.msra.mxu0 %v12569_v25 }
 0x404   : > { %9068 = vmatpush1.bf16.msra.mxu1 %v12572_v51  ;;  %9036 = vmatprep.subr.bf16.mxu0 %v12577_v63  ;;  %v12629_v63 = vld [vmem:[%s13356_s10 + $0x1648] ss:$16 sps:$4 sm:$0xff]  }
 0x405   : > { %9069 = vmatprep.subr.bf16.mxu1 %v12580_v2  ;;  %v12632_v2 = vld [vmem:[%s13356_s10 + $0x18c8] ss:$16 sps:$4 sm:$0xff]  }
 0x407   : > { %9037 = vmatpush2.bf16.msra.mxu0 %v12575_v27 }
 0x408   : > { %9070 = vmatpush2.bf16.msra.mxu1 %v12578_v33  ;;  %9038 = vmatprep.subr.bf16.mxu0 %v12583_v60  ;;  %v12637_v33 = vld [vmem:[%s13356_s10 + $0x162c] ss:$16 sps:$4 sm:$0xff]  }
 0x409   : > { %9071 = vmatprep.subr.bf16.mxu1 %v12586_v7  ;;  %v12640_v60 = vld [vmem:[%s13356_s10 + $0x18ac] ss:$16 sps:$4 sm:$0xff]  }
 0x40b   : > { %9039 = vmatpush2.bf16.msra.mxu0 %v12581_v4  ;;  %v12635_v4 = vld [vmem:[%s13356_s10 + $0x1628] ss:$16 sps:$4 sm:$0xff]  }
 0x40c   : > { %9072 = vmatpush2.bf16.msra.mxu1 %v12584_v15  ;;  %9040 = vmatprep.subr.bf16.mxu0 %v12589_v22  ;;  %v12638_v15 = vld [vmem:[%s13356_s10 + $0x18a8] ss:$16 sps:$4 sm:$0xff]  }
 0x40d   : > { %9073 = vmatprep.subr.bf16.mxu1 %v12592_v20  ;;  %v12643_v20 = vld [vmem:[%s13356_s10 + $0x160c] ss:$16 sps:$4 sm:$0xff]  }
 0x40f   : > { %9041 = vmatpush2.bf16.msra.mxu0 %v12587_v28  ;;  %v12646_v28 = vld [vmem:[%s13356_s10 + $0x188c] ss:$16 sps:$4 sm:$0xff]  }
 0x410   : > { %9074 = vmatpush2.bf16.msra.mxu1 %v12590_v32  ;;  %9042 = vmatprep.subr.bf16.mxu0 %v12595_v42  ;;  %v12641_v32 = vld [vmem:[%s13356_s10 + $0x1608] ss:$16 sps:$4 sm:$0xff]   ;;  %v12649_v42 = vld [vmem:[%s13356_s10 + $0x17ec] ss:$16 sps:$4 sm:$0xff]  }
 0x411   : > { %9075 = vmatprep.subr.bf16.mxu1 %v12598_v11  ;;  %v12652_v11 = vld [vmem:[%s13356_s10 + $0x186c] ss:$16 sps:$4 sm:$0xff]  }
 0x413   : > { %9043 = vmatpush2.bf16.msra.mxu0 %v12593_v19  ;;  %v12647_v19 = vld [vmem:[%s13356_s10 + $0x17e8] ss:$16 sps:$4 sm:$0xff]  }
 0x414   : > { %9076 = vmatpush2.bf16.msra.mxu1 %v12596_v50  ;;  %9094 = vmatprep.subr.bf16.mxu0 %v12604_v3  ;;  %v12650_v50 = vld [vmem:[%s13356_s10 + $0x1868] ss:$16 sps:$4 sm:$0xff]   ;;  %v12658_v3 = vld [vmem:[%s13356_s10 + $0x184c] ss:$16 sps:$4 sm:$0xff]  }
 0x415   : > { %9077 = vmatprep.subr.bf16.mxu1 %v12601_v16  ;;  %v12655_v16 = vld [vmem:[%s13356_s10 + $0x17cc] ss:$16 sps:$4 sm:$0xff]  }
 0x416   : > { %v8800_v23 = vpop.f32.mrf.mxu0  ;;  %9045 = vmatmul.mubr.bf16.vlgmr.msra.gmra.mxu0 %v13842_v5 }
 0x417   : > { %v8801_v58 = vadd.f32 %v8800_v23, %v14620_v37  ;;  %9095 = vmatpush1.bf16.msra.mxu0 %v12602_v24  ;;  %9126 = vmatprep.mubr.bf16.mxu0 %v13850_v34  ;;  %v12611_v37 = vld [vmem:[%s13356_s10 + $0x1528] ss:$16 sps:$4 sm:$0xff]  }
 0x418   : > { %9078 = vmatpush2.bf16.msra.mxu1 %v12599_v13  ;;  %v8802_v52 = vpop.f32.mrf.mxu0  ;;  %9096 = vmatprep.subr.bf16.mxu0 %v12610_v55  ;;  %v12620_v34 = vld [vmem:[%s13356_s10 + $0x1688] ss:$16 sps:$4 sm:$0xff]   ;;  %v12664_v55 = vld [vmem:[%s13356_s10 + $0x182c] ss:$16 sps:$4 sm:$0xff]  }
 0x419   : > { %9079 = vmatprep.subr.bf16.mxu1 %v12607_v17  ;;  %v8803_v61 = vadd.f32 %v8802_v52, %v14626_v14  ;;  %v12617_v14 = vld [vmem:[%s13356_s10 + $0x1508] ss:$16 sps:$4 sm:$0xff]   ;;  %v12661_v17 = vld [vmem:[%s13356_s10 + $0x17ac] ss:$16 sps:$4 sm:$0xff]  }
 0x41a   : > { %v8804_v5 = vpop.f32.mrf.mxu0  ;;  %v12653_v13 = vld [vmem:[%s13356_s10 + $0x17c8] ss:$16 sps:$4 sm:$0xff]  }
 0x41b   : > { %9097 = vmatpush1.bf16.msra.mxu0 %v12608_v26  ;;  %v12656_v24 = vld [vmem:[%s13356_s10 + $0x1848] ss:$16 sps:$4 sm:$0xff]   ;;  %v12670_v26 = vld [vmem:[%s13356_s10 + $0x180c] ss:$16 sps:$4 sm:$0xff]  }
 0x41c   : > { %9080 = vmatpush2.bf16.msra.mxu1 %v12605_v48  ;;  %v8805_v47 = vpop.f32.mrf.mxu0  ;;  %9098 = vmatprep.subr.bf16.mxu0 %v12616_v39  ;;  %v12659_v23 = vld [vmem:[%s13356_s10 + $0x17a8] ss:$16 sps:$4 sm:$0xff]   ;;  %v12667_v48 = vld [vmem:[%s13356_s10 + $0x178c] ss:$16 sps:$4 sm:$0xff]  }
 0x41d   : > { %9081 = vmatprep.subr.bf16.mxu1 %v12613_v43  ;;  %v12665_v52 = vld [vmem:[%s13356_s10 + $0x1788] ss:$16 sps:$4 sm:$0xff]   ;;  %v12673_v39 = vld [vmem:[%s13356_s10 + $0x176c] ss:$16 sps:$4 sm:$0xff]  }
 0x41e   : > { %v12668_v43 = vld [vmem:[%s13356_s10 + $0x1808] ss:$16 sps:$4 sm:$0xff]   ;;  %v12682_v47 = vld [vmem:[%s13356_s10 + $0x19cc] ss:$16 sps:$4 sm:$0xff]  }
 0x41f   : > { %9099 = vmatpush1.bf16.msra.mxu0 %v12614_v18  ;;  %v12671_v5 = vld [vmem:[%s13356_s10 + $0x1768] ss:$16 sps:$4 sm:$0xff]   ;;  %v12679_v18 = vld [vmem:[%s13356_s10 + $0x174c] ss:$16 sps:$4 sm:$0xff]  }
 0x420   : > { %9082 = vmatpush2.bf16.msra.mxu1 %v12611_v37  ;;  %9100 = vmatprep.subr.bf16.mxu0 %v12622_v1  ;;  %v12674_v37 = vld [vmem:[%s13356_s10 + $0x19e8] ss:$16 sps:$4 sm:$0xff]  }
 0x421   : > { %9083 = vmatprep.subr.bf16.mxu1 %v12619_v57  ;;  %v12677_v57 = vld [vmem:[%s13356_s10 + $0x1748] ss:$16 sps:$4 sm:$0xff]  }
 0x422   : > { %v12680_v1 = vld [vmem:[%s13356_s10 + $0x19c8] ss:$16 sps:$4 sm:$0xff]  }
 0x423   : > { %9101 = vmatpush1.bf16.msra.mxu0 %v12620_v34  ;;  %v12688_v34 = vld [vmem:[%s13356_s10 + $0x19ac] ss:$16 sps:$4 sm:$0xff]  }
 0x424   : > { %9084 = vmatpush2.bf16.msra.mxu1 %v12617_v14  ;;  %9102 = vmatprep.subr.bf16.mxu0 %v12625_v36  ;;  %v12685_v14 = vld [vmem:[%s13356_s10 + $0x172c] ss:$16 sps:$4 sm:$0xff]   ;;  %v12683_v36 = vld [vmem:[%s13356_s10 + $0x1728] ss:$16 sps:$4 sm:$0xff]  }
 0x425   : > { %9135 = vmatprep.subr.bf16.mxu1 %v12628_v44  ;;  %v12686_v44 = vld [vmem:[%s13356_s10 + $0x19a8] ss:$16 sps:$4 sm:$0xff]  }
 0x427   : > { %v8841_v25 = vpop.f32.mrf.mxu1  ;;  %9086 = vmatmul.mubr.bf16.vlgmr.msra.gmra.mxu1 %v13926_v21  ;;  %9103 = vmatpush1.bf16.msra.mxu0 %v12623_v9  ;;  %v12691_v9 = vld [vmem:[%s13356_s10 + $0x170c] ss:$16 sps:$4 sm:$0xff]  }
 0x428   : > { %v14694_v51 = vadd.f32 %v8841_v25, %v8801_v58  ;;  %9136 = vmatpush1.bf16.msra.mxu1 %v12626_v59  ;;  %9104 = vmatprep.subr.bf16.mxu0 %v12631_v41  ;;  %v12662_v58 = vld [vmem:[%s13356_s10 + $0x1828] ss:$16 sps:$4 sm:$0xff]   ;;  %v12694_v59 = vld [vmem:[%s13356_s10 + $0x198c] ss:$16 sps:$4 sm:$0xff]  }
 0x429   : > { %v8843_v27 = vpop.f32.mrf.mxu1  ;;  %9137 = vmatprep.subr.bf16.mxu1 %v12634_v46  ;;  %9167 = vmatprep.mubr.bf16.mxu1 %v13935_v35  ;;  %v12644_v35 = vld [vmem:[%s13356_s10 + $0x1888] ss:$16 sps:$4 sm:$0xff]   ;;  %v12697_v25 = vld [vmem:[%s13356_s10 + $0x196c] ss:$16 sps:$4 sm:$0xff]  }
 0x42a   : > { %v14700_v7 = vadd.f32 %v8843_v27, %v8803_v61  ;;  %v12676_v61 = vld [vmem:[%s13356_s10 + $0x19ec] ss:$16 sps:$4 sm:$0xff]   ;;  %v12689_v41 = vld [vmem:[%s13356_s10 + $0x1708] ss:$16 sps:$4 sm:$0xff]  }
 0x42b   : > { %v8845_v21 = vpop.f32.mrf.mxu1  ;;  %9105 = vmatpush1.bf16.msra.mxu0 %v12629_v63  ;;  %v12692_v46 = vld [vmem:[%s13356_s10 + $0x1988] ss:$16 sps:$4 sm:$0xff]   ;;  %v12700_v63 = vld [vmem:[%s13356_s10 + $0x1aec] ss:$16 sps:$4 sm:$0xff]  }
 0x42c   : > { %9138 = vmatpush1.bf16.msra.mxu1 %v12632_v2  ;;  %9106 = vmatprep.subr.bf16.mxu0 %v12637_v33  ;;  %v12695_v2 = vld [vmem:[%s13356_s10 + $0x1968] ss:$16 sps:$4 sm:$0xff]   ;;  %v12703_v33 = vld [vmem:[%s13356_s10 + $0x194c] ss:$16 sps:$4 sm:$0xff]  }
 0x42d   : > { %v8846_v22 = vpop.f32.mrf.mxu1  ;;  %9139 = vmatprep.subr.bf16.mxu1 %v12640_v60  ;;  %v12698_v27 = vld [vmem:[%s13356_s10 + $0x1ae8] ss:$16 sps:$4 sm:$0xff]   ;;  %v12706_v60 = vld [vmem:[%s13356_s10 + $0x1acc] ss:$16 sps:$4 sm:$0xff]  }
 0x42e   : > { %v12704_v22 = vld [vmem:[%s13356_s10 + $0x1ac8] ss:$16 sps:$4 sm:$0xff]  }
 0x42f   : > { %9107 = vmatpush1.bf16.msra.mxu0 %v12635_v4 }
 0x430   : > { %9140 = vmatpush1.bf16.msra.mxu1 %v12638_v15  ;;  %9108 = vmatprep.subr.bf16.mxu0 %v12643_v20  ;;  %v12701_v15 = vld [vmem:[%s13356_s10 + $0x1948] ss:$16 sps:$4 sm:$0xff]  }
 0x431   : > { %9141 = vmatprep.subr.bf16.mxu1 %v12646_v28  ;;  %v12709_v28 = vld [vmem:[%s13356_s10 + $0x192c] ss:$16 sps:$4 sm:$0xff]  }
 0x433   : > { %9109 = vmatpush1.bf16.msra.mxu0 %v12641_v32  ;;  %v12712_v32 = vld [vmem:[%s13356_s10 + $0x1aac] ss:$16 sps:$4 sm:$0xff]  }
 0x434   : > { %9142 = vmatpush1.bf16.msra.mxu1 %v12644_v35  ;;  %9110 = vmatprep.subr.bf16.mxu0 %v12649_v42  ;;  %v12710_v42 = vld [vmem:[%s13356_s10 + $0x1aa8] ss:$16 sps:$4 sm:$0xff]  }
 0x435   : > { %9143 = vmatprep.subr.bf16.mxu1 %v12652_v11 }
 0x437   : > { %9111 = vmatpush2.bf16.msra.mxu0 %v12647_v19  ;;  %v12715_v19 = vld [vmem:[%s13356_s10 + $0x190c] ss:$16 sps:$4 sm:$0xff]  }
 0x438   : > { %9144 = vmatpush1.bf16.msra.mxu1 %v12650_v50  ;;  %9112 = vmatprep.subr.bf16.mxu0 %v12655_v16  ;;  %v12718_v50 = vld [vmem:[%s13356_s10 + $0x1a8c] ss:$16 sps:$4 sm:$0xff]  }
 0x439   : > { %9145 = vmatprep.subr.bf16.mxu1 %v12658_v3  ;;  %v12721_v16 = vld [vmem:[%s13356_s10 + $0x1a6c] ss:$16 sps:$4 sm:$0xff]  }
 0x43a   : > { %v12724_v3 = vld [vmem:[%s13356_s10 + $0x1cec] ss:$16 sps:$4 sm:$0xff]  }
 0x43b   : > { %9113 = vmatpush2.bf16.msra.mxu0 %v12653_v13  ;;  %v12719_v13 = vld [vmem:[%s13356_s10 + $0x1a68] ss:$16 sps:$4 sm:$0xff]  }
 0x43c   : > { %9146 = vmatpush1.bf16.msra.mxu1 %v12656_v24  ;;  %9114 = vmatprep.subr.bf16.mxu0 %v12661_v17  ;;  %v12722_v24 = vld [vmem:[%s13356_s10 + $0x1ce8] ss:$16 sps:$4 sm:$0xff]   ;;  %v12727_v17 = vld [vmem:[%s13356_s10 + $0x1a4c] ss:$16 sps:$4 sm:$0xff]  }
 0x43d   : > { %9147 = vmatprep.subr.bf16.mxu1 %v12664_v55  ;;  %v12730_v55 = vld [vmem:[%s13356_s10 + $0x1ccc] ss:$16 sps:$4 sm:$0xff]  }
 0x43f   : > { %9115 = vmatpush2.bf16.msra.mxu0 %v12659_v23 }
 0x440   : > { %9148 = vmatpush1.bf16.msra.mxu1 %v12662_v58  ;;  %9116 = vmatprep.subr.bf16.mxu0 %v12667_v48  ;;  %v12725_v48 = vld [vmem:[%s13356_s10 + $0x1a48] ss:$16 sps:$4 sm:$0xff]  }
 0x441   : > { %9149 = vmatprep.subr.bf16.mxu1 %v12670_v26  ;;  %v12728_v26 = vld [vmem:[%s13356_s10 + $0x1cc8] ss:$16 sps:$4 sm:$0xff]  }
 0x443   : > { %9117 = vmatpush2.bf16.msra.mxu0 %v12665_v52 }
 0x444   : > { %9150 = vmatpush1.bf16.msra.mxu1 %v12668_v43  ;;  %9118 = vmatprep.subr.bf16.mxu0 %v12673_v39  ;;  %v12733_v43 = vld [vmem:[%s13356_s10 + $0x1a2c] ss:$16 sps:$4 sm:$0xff]  }
 0x445   : > { %9151 = vmatprep.subr.bf16.mxu1 %v12676_v61  ;;  %v12736_v39 = vld [vmem:[%s13356_s10 + $0x1cac] ss:$16 sps:$4 sm:$0xff]  }
 0x447   : > { %9119 = vmatpush2.bf16.msra.mxu0 %v12671_v5  ;;  %v12731_v5 = vld [vmem:[%s13356_s10 + $0x1a28] ss:$16 sps:$4 sm:$0xff]  }
 0x448   : > { %9152 = vmatpush2.bf16.msra.mxu1 %v12674_v37  ;;  %9120 = vmatprep.subr.bf16.mxu0 %v12679_v18  ;;  %v12734_v37 = vld [vmem:[%s13356_s10 + $0x1ca8] ss:$16 sps:$4 sm:$0xff]  }
 0x449   : > { %9153 = vmatprep.subr.bf16.mxu1 %v12682_v47  ;;  %v12739_v47 = vld [vmem:[%s13356_s10 + $0x1a0c] ss:$16 sps:$4 sm:$0xff]  }
 0x44b   : > { %9121 = vmatpush2.bf16.msra.mxu0 %v12677_v57  ;;  %v12742_v57 = vld [vmem:[%s13356_s10 + $0x1c8c] ss:$16 sps:$4 sm:$0xff]  }
 0x44c   : > { %9154 = vmatpush2.bf16.msra.mxu1 %v12680_v1  ;;  %9122 = vmatprep.subr.bf16.mxu0 %v12685_v14  ;;  %v12737_v1 = vld [vmem:[%s13356_s10 + $0x1a08] ss:$16 sps:$4 sm:$0xff]   ;;  %v12745_v14 = vld [vmem:[%s13356_s10 + $0x1bec] ss:$16 sps:$4 sm:$0xff]  }
 0x44d   : > { %9155 = vmatprep.subr.bf16.mxu1 %v12688_v34  ;;  %v12748_v34 = vld [vmem:[%s13356_s10 + $0x1c6c] ss:$16 sps:$4 sm:$0xff]  }
 0x44f   : > { %9123 = vmatpush2.bf16.msra.mxu0 %v12683_v36  ;;  %v12743_v36 = vld [vmem:[%s13356_s10 + $0x1be8] ss:$16 sps:$4 sm:$0xff]  }
 0x450   : > { %9156 = vmatpush2.bf16.msra.mxu1 %v12686_v44  ;;  %9124 = vmatprep.subr.bf16.mxu0 %v12691_v9  ;;  %v12746_v44 = vld [vmem:[%s13356_s10 + $0x1c68] ss:$16 sps:$4 sm:$0xff]   ;;  %v12751_v9 = vld [vmem:[%s13356_s10 + $0x1bcc] ss:$16 sps:$4 sm:$0xff]  }
 0x451   : > { %9157 = vmatprep.subr.bf16.mxu1 %v12694_v59  ;;  %v12754_v59 = vld [vmem:[%s13356_s10 + $0x1c4c] ss:$16 sps:$4 sm:$0xff]  }
 0x453   : > { %9125 = vmatpush2.bf16.msra.mxu0 %v12689_v41  ;;  %v12749_v41 = vld [vmem:[%s13356_s10 + $0x1bc8] ss:$16 sps:$4 sm:$0xff]  }
 0x454   : > { %9158 = vmatpush2.bf16.msra.mxu1 %v12692_v46  ;;  %9176 = vmatprep.subr.bf16.mxu0 %v12700_v63  ;;  %v12752_v46 = vld [vmem:[%s13356_s10 + $0x1c48] ss:$16 sps:$4 sm:$0xff]   ;;  %v12760_v63 = vld [vmem:[%s13356_s10 + $0x1c2c] ss:$16 sps:$4 sm:$0xff]  }
 0x455   : > { %9159 = vmatprep.subr.bf16.mxu1 %v12697_v25  ;;  %v12757_v25 = vld [vmem:[%s13356_s10 + $0x1bac] ss:$16 sps:$4 sm:$0xff]  }
 0x456   : > { %v8882_v21 = vpop.f32.mrf.mxu0  ;;  %9127 = vmatmul.mubr.bf16.vlgmr.msra.gmra.mxu0 %v13939_v8 }
 0x457   : > { %v8883_v4 = vadd.f32 %v8882_v21, %v14694_v51  ;;  %9177 = vmatpush1.bf16.msra.mxu0 %v12698_v27  ;;  %9208 = vmatprep.mubr.bf16.mxu0 %v13947_v45  ;;  %v12707_v51 = vld [vmem:[%s13356_s10 + $0x1928] ss:$16 sps:$4 sm:$0xff]  }
 0x458   : > { %9160 = vmatpush2.bf16.msra.mxu1 %v12695_v2  ;;  %v8884_v20 = vpop.f32.mrf.mxu0  ;;  %9178 = vmatprep.subr.bf16.mxu0 %v12706_v60  ;;  %v12716_v45 = vld [vmem:[%s13356_s10 + $0x1a88] ss:$16 sps:$4 sm:$0xff]   ;;  %v12766_v60 = vld [vmem:[%s13356_s10 + $0x1c0c] ss:$16 sps:$4 sm:$0xff]  }
 0x459   : > { %9161 = vmatprep.subr.bf16.mxu1 %v12703_v33  ;;  %v8885_v35 = vadd.f32 %v8884_v20, %v14700_v7  ;;  %v12713_v7 = vld [vmem:[%s13356_s10 + $0x1908] ss:$16 sps:$4 sm:$0xff]   ;;  %v12763_v33 = vld [vmem:[%s13356_s10 + $0x1b8c] ss:$16 sps:$4 sm:$0xff]  }
 0x45a   : > { %v8886_v8 = vpop.f32.mrf.mxu0  ;;  %v12755_v2 = vld [vmem:[%s13356_s10 + $0x1ba8] ss:$16 sps:$4 sm:$0xff]  }
 0x45b   : > { %9179 = vmatpush1.bf16.msra.mxu0 %v12704_v22  ;;  %v12758_v27 = vld [vmem:[%s13356_s10 + $0x1c28] ss:$16 sps:$4 sm:$0xff]   ;;  %v12772_v22 = vld [vmem:[%s13356_s10 + $0x1dec] ss:$16 sps:$4 sm:$0xff]  }
 0x45c   : > { %9162 = vmatpush2.bf16.msra.mxu1 %v12701_v15  ;;  %v8887_v11 = vpop.f32.mrf.mxu0  ;;  %9180 = vmatprep.subr.bf16.mxu0 %v12712_v32  ;;  %v12761_v21 = vld [vmem:[%s13356_s10 + $0x1b88] ss:$16 sps:$4 sm:$0xff]   ;;  %v12769_v15 = vld [vmem:[%s13356_s10 + $0x1b6c] ss:$16 sps:$4 sm:$0xff]  }
 0x45d   : > { %9163 = vmatprep.subr.bf16.mxu1 %v12709_v28  ;;  %v12767_v20 = vld [vmem:[%s13356_s10 + $0x1b68] ss:$16 sps:$4 sm:$0xff]   ;;  %v12775_v32 = vld [vmem:[%s13356_s10 + $0x1b4c] ss:$16 sps:$4 sm:$0xff]  }
 0x45e   : > { %v12770_v28 = vld [vmem:[%s13356_s10 + $0x1de8] ss:$16 sps:$4 sm:$0xff]   ;;  %v12784_v11 = vld [vmem:[%s13356_s10 + $0x1dac] ss:$16 sps:$4 sm:$0xff]  }
 0x45f   : > { %9181 = vmatpush1.bf16.msra.mxu0 %v12710_v42  ;;  %v12773_v8 = vld [vmem:[%s13356_s10 + $0x1b48] ss:$16 sps:$4 sm:$0xff]   ;;  %v12781_v42 = vld [vmem:[%s13356_s10 + $0x1b2c] ss:$16 sps:$4 sm:$0xff]  }
 0x460   : > { %9164 = vmatpush2.bf16.msra.mxu1 %v12707_v51  ;;  %9182 = vmatprep.subr.bf16.mxu0 %v12718_v50  ;;  %v12776_v51 = vld [vmem:[%s13356_s10 + $0x1dc8] ss:$16 sps:$4 sm:$0xff]  }
 0x461   : > { %9165 = vmatprep.subr.bf16.mxu1 %v12715_v19  ;;  %v12779_v19 = vld [vmem:[%s13356_s10 + $0x1b28] ss:$16 sps:$4 sm:$0xff]  }
 0x462   : > { %v12782_v50 = vld [vmem:[%s13356_s10 + $0x1da8] ss:$16 sps:$4 sm:$0xff]  }
 0x463   : > { %9183 = vmatpush1.bf16.msra.mxu0 %v12716_v45  ;;  %v12790_v45 = vld [vmem:[%s13356_s10 + $0x1d8c] ss:$16 sps:$4 sm:$0xff]  }
 0x464   : > { %9166 = vmatpush2.bf16.msra.mxu1 %v12713_v7  ;;  %9184 = vmatprep.subr.bf16.mxu0 %v12721_v16  ;;  %v12787_v7 = vld [vmem:[%s13356_s10 + $0x1b0c] ss:$16 sps:$4 sm:$0xff]   ;;  %v12785_v16 = vld [vmem:[%s13356_s10 + $0x1b08] ss:$16 sps:$4 sm:$0xff]  }
 0x465   : > { %9217 = vmatprep.subr.bf16.mxu1 %v12724_v3  ;;  %v12788_v3 = vld [vmem:[%s13356_s10 + $0x1d88] ss:$16 sps:$4 sm:$0xff]  }
 0x467   : > { %v8923_v23 = vpop.f32.mrf.mxu1  ;;  %9168 = vmatmul.mubr.bf16.vlgmr.msra.gmra.mxu1 %v14022_v49  ;;  %9185 = vmatpush1.bf16.msra.mxu0 %v12719_v13  ;;  %v12793_v13 = vld [vmem:[%s13356_s10 + $0x1d6c] ss:$16 sps:$4 sm:$0xff]  }
 0x468   : > { %v14768_v58 = vadd.f32 %v8923_v23, %v8883_v4  ;;  %9218 = vmatpush1.bf16.msra.mxu1 %v12722_v24  ;;  %9186 = vmatprep.subr.bf16.mxu0 %v12727_v17  ;;  %v12764_v4 = vld [vmem:[%s13356_s10 + $0x1c08] ss:$16 sps:$4 sm:$0xff]   ;;  %v12796_v24 = vld [vmem:[%s13356_s10 + $0x1eec] ss:$16 sps:$4 sm:$0xff]  }
 0x469   : > { %v8925_v52 = vpop.f32.mrf.mxu1  ;;  %9219 = vmatprep.subr.bf16.mxu1 %v12730_v55  ;;  %9249 = vmatprep.mubr.bf16.mxu1 %v14031_v62  ;;  %v12740_v62 = vld [vmem:[%s13356_s10 + $0x1c88] ss:$16 sps:$4 sm:$0xff]   ;;  %v12799_v23 = vld [vmem:[%s13356_s10 + $0x1d4c] ss:$16 sps:$4 sm:$0xff]  }
 0x46a   : > { %v14774_v61 = vadd.f32 %v8925_v52, %v8885_v35  ;;  %v12778_v35 = vld [vmem:[%s13356_s10 + $0x1dcc] ss:$16 sps:$4 sm:$0xff]   ;;  %v12791_v17 = vld [vmem:[%s13356_s10 + $0x1d68] ss:$16 sps:$4 sm:$0xff]  }
 0x46b   : > { %v8927_v49 = vpop.f32.mrf.mxu1  ;;  %9187 = vmatpush1.bf16.msra.mxu0 %v12725_v48  ;;  %v12794_v55 = vld [vmem:[%s13356_s10 + $0x1ee8] ss:$16 sps:$4 sm:$0xff]   ;;  %v12802_v48 = vld [vmem:[%s13356_s10 + $0x1ecc] ss:$16 sps:$4 sm:$0xff]  }
 0x46c   : > { %9220 = vmatpush1.bf16.msra.mxu1 %v12728_v26  ;;  %9188 = vmatprep.subr.bf16.mxu0 %v12733_v43  ;;  %v12797_v43 = vld [vmem:[%s13356_s10 + $0x1d48] ss:$16 sps:$4 sm:$0xff]  }
 0x46d   : > { %v8928_v18 = vpop.f32.mrf.mxu1  ;;  %9221 = vmatprep.subr.bf16.mxu1 %v12736_v39  ;;  %v12800_v39 = vld [vmem:[%s13356_s10 + $0x1ec8] ss:$16 sps:$4 sm:$0xff]  }
 0x46f   : > { %9189 = vmatpush1.bf16.msra.mxu0 %v12731_v5  ;;  %v12805_v5 = vld [vmem:[%s13356_s10 + $0x1d2c] ss:$16 sps:$4 sm:$0xff]  }
 0x470   : > { %9222 = vmatpush1.bf16.msra.mxu1 %v12734_v37  ;;  %9190 = vmatprep.subr.bf16.mxu0 %v12739_v47  ;;  %v12808_v37 = vld [vmem:[%s13356_s10 + $0x1eac] ss:$16 sps:$4 sm:$0xff]   ;;  %v12806_v47 = vld [vmem:[%s13356_s10 + $0x1ea8] ss:$16 sps:$4 sm:$0xff]  }
 0x471   : > { %9223 = vmatprep.subr.bf16.mxu1 %v12742_v57 }
 0x473   : > { %9191 = vmatpush1.bf16.msra.mxu0 %v12737_v1  ;;  %v12811_v1 = vld [vmem:[%s13356_s10 + $0x1d0c] ss:$16 sps:$4 sm:$0xff]  }
 0x474   : > { %9224 = vmatpush1.bf16.msra.mxu1 %v12740_v62  ;;  %9192 = vmatprep.subr.bf16.mxu0 %v12745_v14  ;;  %v12814_v62 = vld [vmem:[%s13356_s10 + $0x1e8c] ss:$16 sps:$4 sm:$0xff]  }
 0x475   : > { %9225 = vmatprep.subr.bf16.mxu1 %v12748_v34  ;;  %v12817_v14 = vld [vmem:[%s13356_s10 + $0x1e6c] ss:$16 sps:$4 sm:$0xff]  }
 0x476   : > { %v12820_v34 = vld [vmem:[%s13356_s10 + $0x20ec] ss:$16 sps:$4 sm:$0xff]  }
 0x477   : > { %9193 = vmatpush2.bf16.msra.mxu0 %v12743_v36  ;;  %v12815_v36 = vld [vmem:[%s13356_s10 + $0x1e68] ss:$16 sps:$4 sm:$0xff]  }
 0x478   : > { %9226 = vmatpush1.bf16.msra.mxu1 %v12746_v44  ;;  %9194 = vmatprep.subr.bf16.mxu0 %v12751_v9  ;;  %v12818_v44 = vld [vmem:[%s13356_s10 + $0x20e8] ss:$16 sps:$4 sm:$0xff]   ;;  %v12823_v9 = vld [vmem:[%s13356_s10 + $0x1e4c] ss:$16 sps:$4 sm:$0xff]  }
 0x479   : > { %9227 = vmatprep.subr.bf16.mxu1 %v12754_v59  ;;  %v12826_v59 = vld [vmem:[%s13356_s10 + $0x20cc] ss:$16 sps:$4 sm:$0xff]  }
 0x47b   : > { %9195 = vmatpush2.bf16.msra.mxu0 %v12749_v41 }
 0x47c   : > { %9228 = vmatpush1.bf16.msra.mxu1 %v12752_v46  ;;  %9196 = vmatprep.subr.bf16.mxu0 %v12757_v25  ;;  %v12821_v25 = vld [vmem:[%s13356_s10 + $0x1e48] ss:$16 sps:$4 sm:$0xff]  }
 0x47d   : > { %9229 = vmatprep.subr.bf16.mxu1 %v12760_v63  ;;  %v12824_v63 = vld [vmem:[%s13356_s10 + $0x20c8] ss:$16 sps:$4 sm:$0xff]  }
 0x47f   : > { %9197 = vmatpush2.bf16.msra.mxu0 %v12755_v2 }
 0x480   : > { %9230 = vmatpush1.bf16.msra.mxu1 %v12758_v27  ;;  %9198 = vmatprep.subr.bf16.mxu0 %v12763_v33  ;;  %v12829_v27 = vld [vmem:[%s13356_s10 + $0x1e2c] ss:$16 sps:$4 sm:$0xff]  }
 0x481   : > { %9231 = vmatprep.subr.bf16.mxu1 %v12766_v60  ;;  %v12832_v33 = vld [vmem:[%s13356_s10 + $0x20ac] ss:$16 sps:$4 sm:$0xff]  }
 0x483   : > { %9199 = vmatpush2.bf16.msra.mxu0 %v12761_v21  ;;  %v12827_v21 = vld [vmem:[%s13356_s10 + $0x1e28] ss:$16 sps:$4 sm:$0xff]  }
 0x484   : > { %9232 = vmatpush1.bf16.msra.mxu1 %v12764_v4  ;;  %9200 = vmatprep.subr.bf16.mxu0 %v12769_v15  ;;  %v12830_v4 = vld [vmem:[%s13356_s10 + $0x20a8] ss:$16 sps:$4 sm:$0xff]  }
 0x485   : > { %9233 = vmatprep.subr.bf16.mxu1 %v12772_v22  ;;  %v12835_v22 = vld [vmem:[%s13356_s10 + $0x1e0c] ss:$16 sps:$4 sm:$0xff]  }
 0x487   : > { %9201 = vmatpush2.bf16.msra.mxu0 %v12767_v20  ;;  %v12838_v20 = vld [vmem:[%s13356_s10 + $0x208c] ss:$16 sps:$4 sm:$0xff]  }
 0x488   : > { %9234 = vmatpush2.bf16.msra.mxu1 %v12770_v28  ;;  %9202 = vmatprep.subr.bf16.mxu0 %v12775_v32  ;;  %v12833_v28 = vld [vmem:[%s13356_s10 + $0x1e08] ss:$16 sps:$4 sm:$0xff]   ;;  %v12841_v32 = vld [vmem:[%s13356_s10 + $0x1fec] ss:$16 sps:$4 sm:$0xff]  }
 0x489   : > { %9235 = vmatprep.subr.bf16.mxu1 %v12778_v35  ;;  %v12844_v35 = vld [vmem:[%s13356_s10 + $0x206c] ss:$16 sps:$4 sm:$0xff]  }
 0x48b   : > { %9203 = vmatpush2.bf16.msra.mxu0 %v12773_v8  ;;  %v12839_v8 = vld [vmem:[%s13356_s10 + $0x1fe8] ss:$16 sps:$4 sm:$0xff]  }
 0x48c   : > { %9236 = vmatpush2.bf16.msra.mxu1 %v12776_v51  ;;  %9204 = vmatprep.subr.bf16.mxu0 %v12781_v42  ;;  %v12842_v51 = vld [vmem:[%s13356_s10 + $0x2068] ss:$16 sps:$4 sm:$0xff]   ;;  %v12847_v42 = vld [vmem:[%s13356_s10 + $0x1fcc] ss:$16 sps:$4 sm:$0xff]  }
 0x48d   : > { %9237 = vmatprep.subr.bf16.mxu1 %v12784_v11  ;;  %v12850_v11 = vld [vmem:[%s13356_s10 + $0x204c] ss:$16 sps:$4 sm:$0xff]  }
 0x48f   : > { %9205 = vmatpush2.bf16.msra.mxu0 %v12779_v19  ;;  %v12845_v19 = vld [vmem:[%s13356_s10 + $0x1fc8] ss:$16 sps:$4 sm:$0xff]  }
 0x490   : > { %9238 = vmatpush2.bf16.msra.mxu1 %v12782_v50  ;;  %9206 = vmatprep.subr.bf16.mxu0 %v12787_v7  ;;  %v12848_v50 = vld [vmem:[%s13356_s10 + $0x2048] ss:$16 sps:$4 sm:$0xff]   ;;  %v12853_v7 = vld [vmem:[%s13356_s10 + $0x1fac] ss:$16 sps:$4 sm:$0xff]  }
 0x491   : > { %9239 = vmatprep.subr.bf16.mxu1 %v12790_v45  ;;  %v12856_v45 = vld [vmem:[%s13356_s10 + $0x202c] ss:$16 sps:$4 sm:$0xff]  }
 0x493   : > { %9207 = vmatpush2.bf16.msra.mxu0 %v12785_v16  ;;  %v12851_v16 = vld [vmem:[%s13356_s10 + $0x1fa8] ss:$16 sps:$4 sm:$0xff]  }
 0x494   : > { %9240 = vmatpush2.bf16.msra.mxu1 %v12788_v3  ;;  %9258 = vmatprep.subr.bf16.mxu0 %v12796_v24  ;;  %v12854_v3 = vld [vmem:[%s13356_s10 + $0x2028] ss:$16 sps:$4 sm:$0xff]   ;;  %v12862_v24 = vld [vmem:[%s13356_s10 + $0x200c] ss:$16 sps:$4 sm:$0xff]  }
 0x495   : > { %9241 = vmatprep.subr.bf16.mxu1 %v12793_v13  ;;  %v12859_v13 = vld [vmem:[%s13356_s10 + $0x1f8c] ss:$16 sps:$4 sm:$0xff]  }
 0x496   : > { %v8964_v26 = vpop.f32.mrf.mxu0  ;;  %9209 = vmatmul.mubr.bf16.vlgmr.msra.gmra.mxu0 %v14035_v10 }
 0x497   : > { %v8965_v52 = vadd.f32 %v8964_v26, %v14768_v58  ;;  %9259 = vmatpush1.bf16.msra.mxu0 %v12794_v55  ;;  %9290 = vmatprep.mubr.bf16.mxu0 %v14043_v54  ;;  %v12803_v58 = vld [vmem:[%s13356_s10 + $0x1d28] ss:$16 sps:$4 sm:$0xff]  }
 0x498   : > { %9242 = vmatpush2.bf16.msra.mxu1 %v12791_v17  ;;  %v8966_v49 = vpop.f32.mrf.mxu0  ;;  %9260 = vmatprep.subr.bf16.mxu0 %v12802_v48  ;;  %v12812_v54 = vld [vmem:[%s13356_s10 + $0x1e88] ss:$16 sps:$4 sm:$0xff]   ;;  %v12868_v48 = vld [vmem:[%s13356_s10 + $0x21ec] ss:$16 sps:$4 sm:$0xff]  }
 0x499   : > { %9243 = vmatprep.subr.bf16.mxu1 %v12799_v23  ;;  %v8967_v18 = vadd.f32 %v8966_v49, %v14774_v61  ;;  %v12809_v61 = vld [vmem:[%s13356_s10 + $0x1d08] ss:$16 sps:$4 sm:$0xff]   ;;  %v12865_v23 = vld [vmem:[%s13356_s10 + $0x1f6c] ss:$16 sps:$4 sm:$0xff]  }
 0x49a   : > { %v8968_v10 = vpop.f32.mrf.mxu0  ;;  %v12857_v17 = vld [vmem:[%s13356_s10 + $0x1f88] ss:$16 sps:$4 sm:$0xff]  }
 0x49b   : > { %9261 = vmatpush1.bf16.msra.mxu0 %v12800_v39  ;;  %v12860_v55 = vld [vmem:[%s13356_s10 + $0x2008] ss:$16 sps:$4 sm:$0xff]   ;;  %v12874_v39 = vld [vmem:[%s13356_s10 + $0x21cc] ss:$16 sps:$4 sm:$0xff]  }
 0x49c   : > { %9244 = vmatpush2.bf16.msra.mxu1 %v12797_v43  ;;  %v8969_v57 = vpop.f32.mrf.mxu0  ;;  %9262 = vmatprep.subr.bf16.mxu0 %v12808_v37  ;;  %v12863_v26 = vld [vmem:[%s13356_s10 + $0x1f68] ss:$16 sps:$4 sm:$0xff]   ;;  %v12871_v43 = vld [vmem:[%s13356_s10 + $0x1f4c] ss:$16 sps:$4 sm:$0xff]  }
 0x49d   : > { %9245 = vmatprep.subr.bf16.mxu1 %v12805_v5  ;;  %v12869_v49 = vld [vmem:[%s13356_s10 + $0x1f48] ss:$16 sps:$4 sm:$0xff]   ;;  %v12877_v37 = vld [vmem:[%s13356_s10 + $0x1f2c] ss:$16 sps:$4 sm:$0xff]  }
 0x49e   : > { %v12872_v5 = vld [vmem:[%s13356_s10 + $0x21c8] ss:$16 sps:$4 sm:$0xff]   ;;  %v12886_v57 = vld [vmem:[%s13356_s10 + $0x218c] ss:$16 sps:$4 sm:$0xff]  }
 0x49f   : > { %9263 = vmatpush1.bf16.msra.mxu0 %v12806_v47  ;;  %v12875_v10 = vld [vmem:[%s13356_s10 + $0x1f28] ss:$16 sps:$4 sm:$0xff]   ;;  %v12883_v47 = vld [vmem:[%s13356_s10 + $0x1f0c] ss:$16 sps:$4 sm:$0xff]  }
 0x4a0   : > { %9246 = vmatpush2.bf16.msra.mxu1 %v12803_v58  ;;  %9264 = vmatprep.subr.bf16.mxu0 %v12814_v62  ;;  %v12878_v58 = vld [vmem:[%s13356_s10 + $0x21a8] ss:$16 sps:$4 sm:$0xff]  }
 0x4a1   : > { %9247 = vmatprep.subr.bf16.mxu1 %v12811_v1  ;;  %v12881_v1 = vld [vmem:[%s13356_s10 + $0x1f08] ss:$16 sps:$4 sm:$0xff]  }
 0x4a2   : > { %v12884_v62 = vld [vmem:[%s13356_s10 + $0x2188] ss:$16 sps:$4 sm:$0xff]  }
 0x4a3   : > { %9265 = vmatpush1.bf16.msra.mxu0 %v12812_v54  ;;  %v12892_v54 = vld [vmem:[%s13356_s10 + $0x22ec] ss:$16 sps:$4 sm:$0xff]  }
 0x4a4   : > { %9248 = vmatpush2.bf16.msra.mxu1 %v12809_v61  ;;  %9266 = vmatprep.subr.bf16.mxu0 %v12817_v14  ;;  %v12889_v61 = vld [vmem:[%s13356_s10 + $0x216c] ss:$16 sps:$4 sm:$0xff]   ;;  %v12887_v14 = vld [vmem:[%s13356_s10 + $0x2168] ss:$16 sps:$4 sm:$0xff]  }
 0x4a5   : > { %9299 = vmatprep.subr.bf16.mxu1 %v12820_v34  ;;  %v12890_v34 = vld [vmem:[%s13356_s10 + $0x22e8] ss:$16 sps:$4 sm:$0xff]  }
 0x4a7   : > { %v9005_v41 = vpop.f32.mrf.mxu1  ;;  %9250 = vmatmul.mubr.bf16.vlgmr.msra.gmra.mxu1 %v14119_v29  ;;  %9267 = vmatpush1.bf16.msra.mxu0 %v12815_v36  ;;  %v12895_v36 = vld [vmem:[%s13356_s10 + $0x214c] ss:$16 sps:$4 sm:$0xff]  }
 0x4a8   : > { %v14842_v46 = vadd.f32 %v9005_v41, %v8965_v52  ;;  %9300 = vmatpush1.bf16.msra.mxu1 %v12818_v44  ;;  %9268 = vmatprep.subr.bf16.mxu0 %v12823_v9  ;;  %v12866_v52 = vld [vmem:[%s13356_s10 + $0x21e8] ss:$16 sps:$4 sm:$0xff]   ;;  %v12898_v44 = vld [vmem:[%s13356_s10 + $0x22cc] ss:$16 sps:$4 sm:$0xff]  }
 0x4a9   : > { %v9007_v2 = vpop.f32.mrf.mxu1  ;;  %9301 = vmatprep.subr.bf16.mxu1 %v12826_v59  ;;  %9331 = vmatprep.mubr.bf16.mxu1 %v14128_v40  ;;  %v12836_v40 = vld [vmem:[%s13356_s10 + $0x2088] ss:$16 sps:$4 sm:$0xff]  }
 0x4aa   : > { %v14848_v60 = vadd.f32 %v9007_v2, %v8967_v18  ;;  %v12880_v18 = vld [vmem:[%s13356_s10 + $0x21ac] ss:$16 sps:$4 sm:$0xff]   ;;  %v12893_v41 = vld [vmem:[%s13356_s10 + $0x2148] ss:$16 sps:$4 sm:$0xff]  }
 0x4ab   : > { %v9009_v29 = vpop.f32.mrf.mxu1  ;;  %9269 = vmatpush1.bf16.msra.mxu0 %v12821_v25  ;;  %v12896_v25 = vld [vmem:[%s13356_s10 + $0x22c8] ss:$16 sps:$4 sm:$0xff]   ;;  %v12901_v2 = vld [vmem:[%s13356_s10 + $0x212c] ss:$16 sps:$4 sm:$0xff]  }
 0x4ac   : > { %9302 = vmatpush1.bf16.msra.mxu1 %v12824_v63  ;;  %9270 = vmatprep.subr.bf16.mxu0 %v12829_v27  ;;  %v12904_v27 = vld [vmem:[%s13356_s10 + $0x22ac] ss:$16 sps:$4 sm:$0xff]   ;;  %v12902_v29 = vld [vmem:[%s13356_s10 + $0x22a8] ss:$16 sps:$4 sm:$0xff]  }
 0x4ad   : > { %v9010_v15 = vpop.f32.mrf.mxu1  ;;  %9303 = vmatprep.subr.bf16.mxu1 %v12832_v33 }
 0x4ae   : > { %v12910_v15 = vld [vmem:[%s13356_s10 + $0x228c] ss:$16 sps:$4 sm:$0xff]  }
 0x4af   : > { %9271 = vmatpush1.bf16.msra.mxu0 %v12827_v21 }
 0x4b0   : > { %9304 = vmatpush1.bf16.msra.mxu1 %v12830_v4  ;;  %9272 = vmatprep.subr.bf16.mxu0 %v12835_v22  ;;  %v12907_v4 = vld [vmem:[%s13356_s10 + $0x210c] ss:$16 sps:$4 sm:$0xff]  }
 0x4b1   : > { %9305 = vmatprep.subr.bf16.mxu1 %v12838_v20  ;;  %v12913_v22 = vld [vmem:[%s13356_s10 + $0x226c] ss:$16 sps:$4 sm:$0xff]  }
 0x4b2   : > { %v12916_v20 = vld [vmem:[%s13356_s10 + $0x24ec] ss:$16 sps:$4 sm:$0xff]  }
 0x4b3   : > { %9273 = vmatpush1.bf16.msra.mxu0 %v12833_v28  ;;  %v12911_v28 = vld [vmem:[%s13356_s10 + $0x2268] ss:$16 sps:$4 sm:$0xff]  }
 0x4b4   : > { %9306 = vmatpush1.bf16.msra.mxu1 %v12836_v40  ;;  %9274 = vmatprep.subr.bf16.mxu0 %v12841_v32  ;;  %v12914_v40 = vld [vmem:[%s13356_s10 + $0x24e8] ss:$16 sps:$4 sm:$0xff]   ;;  %v12919_v32 = vld [vmem:[%s13356_s10 + $0x224c] ss:$16 sps:$4 sm:$0xff]  }
 0x4b5   : > { %9307 = vmatprep.subr.bf16.mxu1 %v12844_v35  ;;  %v12922_v35 = vld [vmem:[%s13356_s10 + $0x24cc] ss:$16 sps:$4 sm:$0xff]  }
 0x4b7   : > { %9275 = vmatpush2.bf16.msra.mxu0 %v12839_v8 }
 0x4b8   : > { %9308 = vmatpush1.bf16.msra.mxu1 %v12842_v51  ;;  %9276 = vmatprep.subr.bf16.mxu0 %v12847_v42  ;;  %v12917_v42 = vld [vmem:[%s13356_s10 + $0x2248] ss:$16 sps:$4 sm:$0xff]  }
 0x4b9   : > { %9309 = vmatprep.subr.bf16.mxu1 %v12850_v11  ;;  %v12920_v11 = vld [vmem:[%s13356_s10 + $0x24c8] ss:$16 sps:$4 sm:$0xff]  }
 0x4bb   : > { %9277 = vmatpush2.bf16.msra.mxu0 %v12845_v19 }
 0x4bc   : > { %9310 = vmatpush1.bf16.msra.mxu1 %v12848_v50  ;;  %9278 = vmatprep.subr.bf16.mxu0 %v12853_v7  ;;  %v12925_v50 = vld [vmem:[%s13356_s10 + $0x222c] ss:$16 sps:$4 sm:$0xff]  }
 0x4bd   : > { %9311 = vmatprep.subr.bf16.mxu1 %v12856_v45  ;;  %v12928_v7 = vld [vmem:[%s13356_s10 + $0x24ac] ss:$16 sps:$4 sm:$0xff]  }
 0x4bf   : > { %9279 = vmatpush2.bf16.msra.mxu0 %v12851_v16  ;;  %v12923_v16 = vld [vmem:[%s13356_s10 + $0x2228] ss:$16 sps:$4 sm:$0xff]  }
 0x4c0   : > { %9312 = vmatpush1.bf16.msra.mxu1 %v12854_v3  ;;  %9280 = vmatprep.subr.bf16.mxu0 %v12859_v13  ;;  %v12926_v3 = vld [vmem:[%s13356_s10 + $0x24a8] ss:$16 sps:$4 sm:$0xff]  }
 0x4c1   : > { %9313 = vmatprep.subr.bf16.mxu1 %v12862_v24  ;;  %v12931_v24 = vld [vmem:[%s13356_s10 + $0x220c] ss:$16 sps:$4 sm:$0xff]  }
 0x4c3   : > { %9281 = vmatpush2.bf16.msra.mxu0 %v12857_v17  ;;  %v12934_v17 = vld [vmem:[%s13356_s10 + $0x248c] ss:$16 sps:$4 sm:$0xff]  }
 0x4c4   : > { %9314 = vmatpush1.bf16.msra.mxu1 %v12860_v55  ;;  %9282 = vmatprep.subr.bf16.mxu0 %v12865_v23  ;;  %v12929_v55 = vld [vmem:[%s13356_s10 + $0x2208] ss:$16 sps:$4 sm:$0xff]   ;;  %v12937_v23 = vld [vmem:[%s13356_s10 + $0x23ec] ss:$16 sps:$4 sm:$0xff]  }
 0x4c5   : > { %9315 = vmatprep.subr.bf16.mxu1 %v12868_v48  ;;  %v12940_v48 = vld [vmem:[%s13356_s10 + $0x246c] ss:$16 sps:$4 sm:$0xff]  }
 0x4c7   : > { %9283 = vmatpush2.bf16.msra.mxu0 %v12863_v26  ;;  %v12935_v26 = vld [vmem:[%s13356_s10 + $0x23e8] ss:$16 sps:$4 sm:$0xff]  }
 0x4c8   : > { %9316 = vmatpush2.bf16.msra.mxu1 %v12866_v52  ;;  %9284 = vmatprep.subr.bf16.mxu0 %v12871_v43  ;;  %v12938_v52 = vld [vmem:[%s13356_s10 + $0x2468] ss:$16 sps:$4 sm:$0xff]   ;;  %v12943_v43 = vld [vmem:[%s13356_s10 + $0x23cc] ss:$16 sps:$4 sm:$0xff]  }
 0x4c9   : > { %9317 = vmatprep.subr.bf16.mxu1 %v12874_v39  ;;  %v12946_v39 = vld [vmem:[%s13356_s10 + $0x244c] ss:$16 sps:$4 sm:$0xff]  }
 0x4cb   : > { %9285 = vmatpush2.bf16.msra.mxu0 %v12869_v49  ;;  %v12941_v49 = vld [vmem:[%s13356_s10 + $0x23c8] ss:$16 sps:$4 sm:$0xff]  }
 0x4cc   : > { %9318 = vmatpush2.bf16.msra.mxu1 %v12872_v5  ;;  %9286 = vmatprep.subr.bf16.mxu0 %v12877_v37  ;;  %v12944_v5 = vld [vmem:[%s13356_s10 + $0x2448] ss:$16 sps:$4 sm:$0xff]   ;;  %v12949_v37 = vld [vmem:[%s13356_s10 + $0x23ac] ss:$16 sps:$4 sm:$0xff]  }
 0x4cd   : > { %9319 = vmatprep.subr.bf16.mxu1 %v12880_v18  ;;  %v12952_v18 = vld [vmem:[%s13356_s10 + $0x242c] ss:$16 sps:$4 sm:$0xff]  }
 0x4cf   : > { %9287 = vmatpush2.bf16.msra.mxu0 %v12875_v10  ;;  %v12947_v10 = vld [vmem:[%s13356_s10 + $0x23a8] ss:$16 sps:$4 sm:$0xff]  }
 0x4d0   : > { %9320 = vmatpush2.bf16.msra.mxu1 %v12878_v58  ;;  %9288 = vmatprep.subr.bf16.mxu0 %v12883_v47  ;;  %v12950_v58 = vld [vmem:[%s13356_s10 + $0x2428] ss:$16 sps:$4 sm:$0xff]   ;;  %v12955_v47 = vld [vmem:[%s13356_s10 + $0x238c] ss:$16 sps:$4 sm:$0xff]  }
 0x4d1   : > { %9321 = vmatprep.subr.bf16.mxu1 %v12886_v57  ;;  %v12958_v57 = vld [vmem:[%s13356_s10 + $0x240c] ss:$16 sps:$4 sm:$0xff]  }
 0x4d3   : > { %9289 = vmatpush2.bf16.msra.mxu0 %v12881_v1  ;;  %v12953_v1 = vld [vmem:[%s13356_s10 + $0x2388] ss:$16 sps:$4 sm:$0xff]  }
 0x4d4   : > { %9322 = vmatpush2.bf16.msra.mxu1 %v12884_v62  ;;  %9340 = vmatprep.subr.bf16.mxu0 %v12892_v54  ;;  %v12956_v62 = vld [vmem:[%s13356_s10 + $0x2408] ss:$16 sps:$4 sm:$0xff]   ;;  %v12964_v54 = vld [vmem:[%s13356_s10 + $0x256c] ss:$16 sps:$4 sm:$0xff]  }
 0x4d5   : > { %9323 = vmatprep.subr.bf16.mxu1 %v12889_v61  ;;  %v12961_v61 = vld [vmem:[%s13356_s10 + $0x236c] ss:$16 sps:$4 sm:$0xff]  }
 0x4d6   : > { %v9046_v9 = vpop.f32.mrf.mxu0  ;;  %9291 = vmatmul.mubr.bf16.vlgmr.msra.gmra.mxu0 %v14132_v38 }
 0x4d7   : > { %v9047_v59 = vadd.f32 %v9046_v9, %v14842_v46  ;;  %9341 = vmatpush1.bf16.msra.mxu0 %v12890_v34  ;;  %9372 = vmatprep.mubr.bf16.mxu0 %v14140_v53  ;;  %v12899_v46 = vld [vmem:[%s13356_s10 + $0x2128] ss:$16 sps:$4 sm:$0xff]  }
 0x4d8   : > { %9324 = vmatpush2.bf16.msra.mxu1 %v12887_v14  ;;  %v9048_v63 = vpop.f32.mrf.mxu0  ;;  %9342 = vmatprep.subr.bf16.mxu0 %v12898_v44  ;;  %v12908_v53 = vld [vmem:[%s13356_s10 + $0x2288] ss:$16 sps:$4 sm:$0xff]   ;;  %v12970_v44 = vld [vmem:[%s13356_s10 + $0x254c] ss:$16 sps:$4 sm:$0xff]  }
 0x4d9   : > { %9325 = vmatprep.subr.bf16.mxu1 %v12895_v36  ;;  %v9049_v33 = vadd.f32 %v9048_v63, %v14848_v60  ;;  %v12905_v60 = vld [vmem:[%s13356_s10 + $0x2108] ss:$16 sps:$4 sm:$0xff]   ;;  %v12967_v36 = vld [vmem:[%s13356_s10 + $0x234c] ss:$16 sps:$4 sm:$0xff]  }
 0x4da   : > { %v9050_v38 = vpop.f32.mrf.mxu0  ;;  %v12959_v14 = vld [vmem:[%s13356_s10 + $0x2368] ss:$16 sps:$4 sm:$0xff]  }
 0x4db   : > { %9343 = vmatpush1.bf16.msra.mxu0 %v12896_v25  ;;  %v12962_v34 = vld [vmem:[%s13356_s10 + $0x2568] ss:$16 sps:$4 sm:$0xff]   ;;  %v12976_v25 = vld [vmem:[%s13356_s10 + $0x252c] ss:$16 sps:$4 sm:$0xff]  }
 0x4dc   : > { %9326 = vmatpush2.bf16.msra.mxu1 %v12893_v41  ;;  %v9051_v21 = vpop.f32.mrf.mxu0  ;;  %9344 = vmatprep.subr.bf16.mxu0 %v12904_v27  ;;  %v12965_v9 = vld [vmem:[%s13356_s10 + $0x2348] ss:$16 sps:$4 sm:$0xff]   ;;  %v12973_v41 = vld [vmem:[%s13356_s10 + $0x232c] ss:$16 sps:$4 sm:$0xff]  }
 0x4dd   : > { %9327 = vmatprep.subr.bf16.mxu1 %v12901_v2  ;;  %v12971_v63 = vld [vmem:[%s13356_s10 + $0x2328] ss:$16 sps:$4 sm:$0xff]   ;;  %v12979_v27 = vld [vmem:[%s13356_s10 + $0x230c] ss:$16 sps:$4 sm:$0xff]  }
 0x4de   : > { %v12974_v2 = vld [vmem:[%s13356_s10 + $0x2528] ss:$16 sps:$4 sm:$0xff]  }
 0x4df   : > { %9345 = vmatpush1.bf16.msra.mxu0 %v12902_v29  ;;  %v12977_v38 = vld [vmem:[%s13356_s10 + $0x2308] ss:$16 sps:$4 sm:$0xff]  }
 0x4e0   : > { %9328 = vmatpush2.bf16.msra.mxu1 %v12899_v46  ;;  %9346 = vmatprep.subr.bf16.mxu0 %v12910_v15  ;;  %v12980_v46 = vld [vmem:[%s13356_s10 + $0x2508] ss:$16 sps:$4 sm:$0xff]  }
 0x4e1   : > { %9329 = vmatprep.subr.bf16.mxu1 %v12907_v4  ;;  %v9458_v29 = vld [vmem:[%s13373_s6 + $0xf8] sm:$0xff]  ;;  %v9423_v4 = vmax.f32 %v14526_v56, 0.0  ;;  %v9457_v15 = vld [vmem:[%s13373_s6 + $0xf0] sm:$0xff]  ;;  %v9440_v56 = vld [vmem:[%s13373_s6 + $0x68] sm:$0xff] }
 0x4e2   : > { %v9442_v21 = vld [vmem:[%s13373_s6 + $0x78] sm:$0xff] }
 0x4e3   : > { %9347 = vmatpush1.bf16.msra.mxu0 %v12908_v53  ;;  %v9441_v53 = vld [vmem:[%s13373_s6 + $0x70] sm:$0xff] }
 0x4e4   : > { %9330 = vmatpush2.bf16.msra.mxu1 %v12905_v60  ;;  %9348 = vmatprep.subr.bf16.mxu0 %v12913_v22 }
 0x4e5   : > { %9381 = vmatprep.subr.bf16.mxu1 %v12916_v20  ;;  %v9456_v20 = vld [vmem:[%s13373_s6 + $0xe8] sm:$0xff] }
 0x4e7   : > { %v9087_v8 = vpop.f32.mrf.mxu1  ;;  %9332 = vmatmul.mubr.bf16.vlgmr.msra.gmra.mxu1 %v14213_v0  ;;  %9349 = vmatpush1.bf16.msra.mxu0 %v12911_v28 }
 0x4e8   : > { %v14916_v51 = vadd.f32 %v9087_v8, %v9047_v59  ;;  %9382 = vmatpush1.bf16.msra.mxu1 %v12914_v40  ;;  %9350 = vmatprep.subr.bf16.mxu0 %v12919_v32  ;;  %v12968_v59 = vld [vmem:[%s13356_s10 + $0x2548] ss:$16 sps:$4 sm:$0xff]  }
 0x4e9   : > { %v9089_v19 = vpop.f32.mrf.mxu1  ;;  %9383 = vmatprep.subr.bf16.mxu1 %v12922_v35  ;;  %11004 = vmatprep.mubr.msk.bf16.mxu1 %vm7860_vm1, %v14232_v6  ;;  %v12932_v6 = vld [vmem:[%s13356_s10 + $0x2488] ss:$16 sps:$4 sm:$0xff]  }
 0x4ea   : > { %v14922_v45 = vadd.f32 %v9089_v19, %v9049_v33  ;;  %v12982_v33 = vld [vmem:[%s13356_s10 + $0x250c] ss:$16 sps:$4 sm:$0xff]   ;;  %v9454_v35 = vld [vmem:[%s13373_s6 + $0xd8] sm:$0xff]  ;;  %v9452_v19 = vld [vmem:[%s13373_s6 + $0xc8] sm:$0xff] }
 0x4eb   : > { %v9091_v0 = vpop.f32.mrf.mxu1  ;;  %9351 = vmatpush1.bf16.msra.mxu0 %v12917_v42  ;;  %v9439_v32 = vld [vmem:[%s13373_s6 + $0x60] sm:$0xff]  ;;  %v9453_v42 = vld [vmem:[%s13373_s6 + $0xd0] sm:$0xff] }
 0x4ec   : > { %9384 = vmatpush1.bf16.msra.mxu1 %v12920_v11  ;;  %9352 = vmatprep.subr.bf16.mxu0 %v12925_v50  ;;  %v9437_v11 = vld [vmem:[%s13373_s6 + $0x50] sm:$0xff]  ;;  %v9436_v50 = vld [vmem:[%s13373_s6 + $0x48] sm:$0xff]  ;;  %v9450_v0 = vld [vmem:[%s13373_s6 + $0xb8] sm:$0xff] }
 0x4ed   : > { %v9092_v13 = vpop.f32.mrf.mxu1  ;;  %9385 = vmatprep.subr.bf16.mxu1 %v12928_v7  ;;  %v9451_v7 = vld [vmem:[%s13373_s6 + $0xc0] sm:$0xff] }
 0x4ef   : > { %9353 = vmatpush1.bf16.msra.mxu0 %v12923_v16  ;;  %v9434_v16 = vld [vmem:[%s13373_s6 + $0x38] sm:$0xff] }
 0x4f0   : > { %9386 = vmatpush1.bf16.msra.mxu1 %v12926_v3  ;;  %9354 = vmatprep.subr.bf16.mxu0 %v12931_v24  ;;  %v9449_v3 = vld [vmem:[%s13373_s6 + $0xb0] sm:$0xff] }
 0x4f1   : > { %9387 = vmatprep.subr.bf16.mxu1 %v12934_v17  ;;  %v9433_v24 = vld [vmem:[%s13373_s6 + $0x30] sm:$0xff] }
 0x4f3   : > { %9355 = vmatpush1.bf16.msra.mxu0 %v12929_v55  ;;  %v9448_v55 = vld [vmem:[%s13373_s6 + $0xa8] sm:$0xff] }
 0x4f4   : > { %9388 = vmatpush1.bf16.msra.mxu1 %v12932_v6  ;;  %9356 = vmatprep.subr.bf16.mxu0 %v12937_v23  ;;  %v9432_v23 = vld [vmem:[%s13373_s6 + $0x28] sm:$0xff] }
 0x4f5   : > { %9389 = vmatprep.subr.bf16.mxu1 %v12940_v48 }
 0x4f7   : > { %9357 = vmatpush2.bf16.msra.mxu0 %v12935_v26  ;;  %v9447_v26 = vld [vmem:[%s13373_s6 + $0xa0] sm:$0xff] }
 0x4f8   : > { %9390 = vmatpush1.bf16.msra.mxu1 %v12938_v52  ;;  %9358 = vmatprep.subr.bf16.mxu0 %v12943_v43  ;;  %v9431_v43 = vld [vmem:[%s13373_s6 + $0x20] sm:$0xff] }
 0x4f9   : > { %9391 = vmatprep.subr.bf16.mxu1 %v12946_v39  ;;  %v9446_v39 = vld [vmem:[%s13373_s6 + $0x98] sm:$0xff] }
 0x4fb   : > { %9359 = vmatpush2.bf16.msra.mxu0 %v12941_v49  ;;  %v9430_v49 = vld [vmem:[%s13373_s6 + $0x18] sm:$0xff] }
 0x4fc   : > { %9392 = vmatpush1.bf16.msra.mxu1 %v12944_v5  ;;  %9360 = vmatprep.subr.bf16.mxu0 %v12949_v37  ;;  %v9490_v37 = vld [vmem:[%s13373_s6 + $0x1f8] sm:$0xff] }
 0x4fd   : > { %9393 = vmatprep.subr.bf16.mxu1 %v12952_v18  ;;  %v9474_v18 = vld [vmem:[%s13373_s6 + $0x178] sm:$0xff] }
 0x4ff   : > { %9361 = vmatpush2.bf16.msra.mxu0 %v12947_v10  ;;  %v9489_v10 = vld [vmem:[%s13373_s6 + $0x1f0] sm:$0xff] }
 0x500   : > { %9394 = vmatpush1.bf16.msra.mxu1 %v12950_v58  ;;  %9362 = vmatprep.subr.bf16.mxu0 %v12955_v47  ;;  %v9445_v58 = vld [vmem:[%s13373_s6 + $0x90] sm:$0xff] }
 0x501   : > { %9395 = vmatprep.subr.bf16.mxu1 %v12958_v57  ;;  %v9473_v47 = vld [vmem:[%s13373_s6 + $0x170] sm:$0xff] }
 0x502   : > { %v9429_v57 = vld [vmem:[%s13373_s6 + $0x10] sm:$0xff] }
 0x503   : > { %9363 = vmatpush2.bf16.msra.mxu0 %v12953_v1  ;;  %v9488_v1 = vld [vmem:[%s13373_s6 + $0x1e8] sm:$0xff] }
 0x504   : > { %9396 = vmatpush1.bf16.msra.mxu1 %v12956_v62  ;;  %9364 = vmatprep.subr.bf16.mxu0 %v12961_v61  ;;  %v9444_v62 = vld [vmem:[%s13373_s6 + $0x88] sm:$0xff] }
 0x505   : > { %9405 = vmatprep.subr.bf16.mxu1 %v12964_v54  ;;  %v9472_v61 = vld [vmem:[%s13373_s6 + $0x168] sm:$0xff] }
 0x506   : > { %v9428_v54 = vld [vmem:[%s13373_s6 + $0x8] sm:$0xff] }
 0x507   : > { %9365 = vmatpush2.bf16.msra.mxu0 %v12959_v14  ;;  %v9487_v14 = vld [vmem:[%s13373_s6 + $0x1e0] sm:$0xff] }
 0x508   : > { %9406 = vmatpush2.bf16.msra.mxu1 %v12962_v34  ;;  %9366 = vmatprep.subr.bf16.mxu0 %v12967_v36  ;;  %v9443_v34 = vld [vmem:[%s13373_s6 + $0x80] sm:$0xff] }
 0x509   : > { %9407 = vmatprep.subr.bf16.mxu1 %v12970_v44  ;;  %v9471_v36 = vld [vmem:[%s13373_s6 + $0x160] sm:$0xff] }
 0x50a   : > { %v9427_v44 = vld [vmem:[%s13373_s6] sm:$0xff] }
 0x50b   : > { %9367 = vmatpush2.bf16.msra.mxu0 %v12965_v9  ;;  %v9486_v9 = vld [vmem:[%s13373_s6 + $0x1d8] sm:$0xff] }
 0x50c   : > { %9408 = vmatpush2.bf16.msra.mxu1 %v12968_v59  ;;  %9368 = vmatprep.subr.bf16.mxu0 %v12973_v41  ;;  %v9470_v59 = vld [vmem:[%s13373_s6 + $0x158] sm:$0xff]  ;;  %v9422_v41 = vmax.f32 %v14519_v31, 0.0  ;;  %v9467_v31 = vld [vmem:[%s13373_s6 + $0x140] sm:$0xff] }
 0x50d   : > { %9409 = vmatprep.subr.bf16.mxu1 %v12976_v25  ;;  %v9485_v25 = vld [vmem:[%s13373_s6 + $0x1d0] sm:$0xff] }
 0x50f   : > { %9369 = vmatpush2.bf16.msra.mxu0 %v12971_v63  ;;  %v9469_v63 = vld [vmem:[%s13373_s6 + $0x150] sm:$0xff] }
 0x510   : > { %9410 = vmatpush2.bf16.msra.mxu1 %v12974_v2  ;;  %9370 = vmatprep.subr.bf16.mxu0 %v12979_v27  ;;  %v9484_v2 = vld [vmem:[%s13373_s6 + $0x1c8] sm:$0xff] }
 0x511   : > { %9411 = vmatprep.subr.bf16.mxu1 %v12982_v33  ;;  %v9468_v27 = vld [vmem:[%s13373_s6 + $0x148] sm:$0xff]  ;;  %v9483_v33 = vld [vmem:[%s13373_s6 + $0x1c0] sm:$0xff] }
 0x513   : > { %9371 = vmatpush2.bf16.msra.mxu0 %v12977_v38  ;;  %v9482_v38 = vld [vmem:[%s13373_s6 + $0x1b8] sm:$0xff] }
 0x514   : > { %9412 = vmatpush2.bf16.msra.mxu1 %v12980_v46  ;;  %11013 = vmatprep.subr.mxu0 %v9458_v29  ;;  %v9466_v46 = vld [vmem:[%s13373_s6 + $0x138] sm:$0xff]  ;;  %v9481_v29 = vld [vmem:[%s13373_s6 + $0x1b0] sm:$0xff] }
 0x515   : > { %11048 = vmatprep.subr.mxu1 %v9490_v37 }
 0x516   : > { %v9128_v60 = vpop.f32.mrf.mxu0  ;;  %9373 = vmatmul.mubr.bf16.vlgmr.msra.gmra.mxu0 %v14225_v12  ;;  %v9455_v12 = vld [vmem:[%s13373_s6 + $0xe0] sm:$0xff] }
 0x517   : > { %9414 = vmatmul.mubr.bf16.vlgmr.msra.gmra.mxu1 %v14291_v30  ;;  %v9129_v22 = vadd.f32 %v9128_v60, %v14916_v51  ;;  %11014 = vmatpush3.msra.mxu0 %v9442_v21  ;;  %v9438_v51 = vld [vmem:[%s13373_s6 + $0x58] sm:$0xff]  ;;  %v9465_v21 = vld [vmem:[%s13373_s6 + $0x130] sm:$0xff]  ;;  %v9479_v60 = vld [vmem:[%s13373_s6 + $0x1a0] sm:$0xff] }
 0x518   : > { %9555 = vmatprep.mubr.f32.mxu0 %v9423_v4  ;;  %v9130_v28 = vpop.f32.mrf.mxu0  ;;  %11015 = vmatprep.subr.mxu0 %v9457_v15  ;;  %v9480_v4 = vld [vmem:[%s13373_s6 + $0x1a8] sm:$0xff] }
 0x519   : > { %v9131_v40 = vadd.f32 %v9130_v28, %v14922_v45  ;;  %11016 = vmatpush3.msra.mxu0 %v9441_v53  ;;  %v9435_v45 = vld [vmem:[%s13373_s6 + $0x40] sm:$0xff]  ;;  %11049 = vmatpush3.msra.mxu1 %v9474_v18  ;;  %v9464_v15 = vld [vmem:[%s13373_s6 + $0x128] sm:$0xff]  ;;  %v9478_v28 = vld [vmem:[%s13373_s6 + $0x198] sm:$0xff] }
 0x51a   : > { %v9132_v30 = vpop.f32.mrf.mxu0  ;;  %11017 = vmatprep.subr.mxu0 %v9456_v20  ;;  %11050 = vmatprep.subr.mxu1 %v9489_v10 }
 0x51b   : > { %11018 = vmatpush3.msra.mxu0 %v9440_v56  ;;  %11051 = vmatpush3.msra.mxu1 %v9473_v47  ;;  %v9477_v30 = vld [vmem:[%s13373_s6 + $0x190] sm:$0xff] }
 0x51c   : > { %v9133_v8 = vpop.f32.mrf.mxu0  ;;  %11019 = vmatprep.subr.mxu0 %v9455_v12  ;;  %11052 = vmatprep.subr.mxu1 %v9488_v1 }
 0x51d   : > { %11020 = vmatpush3.msra.mxu0 %v9439_v32  ;;  %11053 = vmatpush3.msra.mxu1 %v9472_v61  ;;  %v9476_v8 = vld [vmem:[%s13373_s6 + $0x188] sm:$0xff] }
 0x51e   : > { %11021 = vmatprep.subr.mxu0 %v9454_v35  ;;  %11054 = vmatprep.subr.mxu1 %v9487_v14  ;;  %v9461_v35 = vld [vmem:[%s13373_s6 + $0x110] sm:$0xff] }
 0x51f   : > { %11022 = vmatpush3.msra.mxu0 %v9438_v51  ;;  %11055 = vmatpush3.msra.mxu1 %v9471_v36 }
 0x520   : > { %11023 = vmatprep.subr.mxu0 %v9453_v42  ;;  %11056 = vmatprep.subr.mxu1 %v9486_v9  ;;  %v9460_v42 = vld [vmem:[%s13373_s6 + $0x108] sm:$0xff] }
 0x521   : > { %11024 = vmatpush3.msra.mxu0 %v9437_v11  ;;  %11057 = vmatpush3.msra.mxu1 %v9470_v59  ;;  %v9475_v11 = vld [vmem:[%s13373_s6 + $0x180] sm:$0xff] }
 0x522   : > { %11025 = vmatprep.subr.mxu0 %v9452_v19  ;;  %11058 = vmatprep.subr.mxu1 %v9485_v25  ;;  %v9459_v19 = vld [vmem:[%s13373_s6 + $0x100] sm:$0xff] }
 0x523   : > { %11026 = vmatpush3.msra.mxu0 %v9436_v50  ;;  %11059 = vmatpush3.msra.mxu1 %v9469_v63 }
 0x524   : > { %11027 = vmatprep.subr.mxu0 %v9451_v7  ;;  %11060 = vmatprep.subr.mxu1 %v9484_v2  ;;  %v9426_v2 = vld [vmem:[#allocation10] sm:$0x3] }
 0x525   : > { %11028 = vmatpush3.msra.mxu0 %v9435_v45  ;;  %11061 = vmatpush3.msra.mxu1 %v9468_v27 }
 0x526   : > { %11029 = vmatprep.subr.mxu0 %v9450_v0  ;;  %11062 = vmatprep.subr.mxu1 %v9483_v33 }
 0x527   : > { %v9169_v13 = vpop.f32.mrf.mxu1  ;;  %11030 = vmatpush3.msra.mxu0 %v9434_v16  ;;  %11063 = vmatpush3.msra.mxu1 %v9467_v31 }
 0x528   : > { %v14989_v17 = vadd.f32 %v9169_v13, %v9129_v22  ;;  %11031 = vmatprep.subr.mxu0 %v9449_v3  ;;  %11064 = vmatprep.subr.mxu1 %v9482_v38  ;;  %v9463_v22 = vld [vmem:[%s13373_s6 + $0x120] sm:$0xff] }
 0x529   : > { %v9171_v6 = vpop.f32.mrf.mxu1  ;;  %11032 = vmatpush3.msra.mxu0 %v9433_v24  ;;  %11065 = vmatpush3.msra.mxu1 %v9466_v46 }
 0x52a   : > { %v14993_v48 = vadd.f32 %v9171_v6, %v9131_v40  ;;  %11033 = vmatprep.subr.mxu0 %v9448_v55  ;;  %11066 = vmatprep.subr.mxu1 %v9481_v29  ;;  %v9462_v40 = vld [vmem:[%s13373_s6 + $0x118] sm:$0xff] }
 0x52b   : > { %v9173_v52 = vpop.f32.mrf.mxu1  ;;  %11034 = vmatpush3.msra.mxu0 %v9432_v23  ;;  %11067 = vmatpush3.msra.mxu1 %v9465_v21 }
 0x52c   : > { %11035 = vmatprep.subr.mxu0 %v9447_v26  ;;  %11068 = vmatprep.subr.mxu1 %v9480_v4 }
 0x52d   : > { %v9174_v5 = vpop.f32.mrf.mxu1  ;;  %11036 = vmatpush3.msra.mxu0 %v9431_v43  ;;  %11069 = vmatpush3.msra.mxu1 %v9464_v15 }
 0x52e   : > { %11037 = vmatprep.subr.mxu0 %v9446_v39  ;;  %11070 = vmatprep.subr.mxu1 %v9479_v60 }
 0x52f   : > { %11038 = vmatpush3.msra.mxu0 %v9430_v49  ;;  %11071 = vmatpush3.msra.mxu1 %v9463_v22 }
 0x530   : > { %11039 = vmatprep.subr.mxu0 %v9445_v58  ;;  %11072 = vmatprep.subr.mxu1 %v9478_v28 }
 0x531   : > { %11040 = vmatpush3.msra.mxu0 %v9429_v57  ;;  %11073 = vmatpush3.msra.mxu1 %v9462_v40 }
 0x532   : > { %11041 = vmatprep.subr.mxu0 %v9444_v62  ;;  %11074 = vmatprep.subr.mxu1 %v9477_v30 }
 0x533   : > { %11042 = vmatpush3.msra.mxu0 %v9428_v54  ;;  %11075 = vmatpush3.msra.mxu1 %v9461_v35 }
 0x534   : > { %11043 = vmatprep.subr.mxu0 %v9443_v34  ;;  %11076 = vmatprep.subr.mxu1 %v9476_v8 }
 0x535   : > { %11044 = vmatpush3.msra.mxu0 %v9427_v44  ;;  %11077 = vmatpush3.msra.mxu1 %v9460_v42 }
 0x536   : > { %9556 = vmatmul.mubr.f32.vlgmr.msra.gmra.mxu0 %v9422_v41  ;;  %11078 = vmatprep.subr.mxu1 %v9475_v11 }
 0x537   : > { %11079 = vmatpush3.msra.mxu1 %v9459_v19 }
 0x556   : > { %v9210_v53 = vpop.f32.mrf.mxu0 }
 0x557   : > { %v9211_v20 = vadd.f32 %v9210_v53, %v14989_v17 }
 0x558   : > { %v9212_v56 = vpop.f32.mrf.mxu0 }
 0x559   : > { %v9213_v12 = vadd.f32 %v9212_v56, %v14993_v48 }
 0x55a   : > { %v9214_v32 = vpop.f32.mrf.mxu0 }
 0x55c   : > { %v9215_v51 = vpop.f32.mrf.mxu0 }
 0x567   : > { %v9251_v50 = vpop.f32.mrf.mxu1 }
 0x568   : > { %v9252_v7 = vadd.f32 %v9251_v50, %v9211_v20 }
 0x569   : > { %v9253_v45 = vpop.f32.mrf.mxu1 }
 0x56a   : > { %v9254_v0 = vadd.f32 %v9253_v45, %v9213_v12 }
 0x56b   : > { %v9255_v16 = vpop.f32.mrf.mxu1 }
 0x56d   : > { %v9256_v3 = vpop.f32.mrf.mxu1 }
 0x596   : > { %v9292_v13 = vpop.f32.mrf.mxu0 }
 0x597   : > { %v9293_v52 = vadd.f32 %v9292_v13, %v9252_v7 }
 0x598   : > { %v9294_v24 = vpop.f32.mrf.mxu0 }
 0x599   : > { %v9295_v43 = vadd.f32 %v9294_v24, %v9254_v0 }
 0x59a   : > { %v9296_v17 = vpop.f32.mrf.mxu0 }
 0x59c   : > { %v9297_v55 = vpop.f32.mrf.mxu0 }
 0x5a7   : > { %v9333_v6 = vpop.f32.mrf.mxu1 }
 0x5a8   : > { %v9334_v39 = vadd.f32 %v9333_v6, %v9293_v52 }
 0x5a9   : > { %v9335_v23 = vpop.f32.mrf.mxu1 }
 0x5aa   : > { %v9336_v37 = vadd.f32 %v9335_v23, %v9295_v43 }
 0x5ab   : > { %v9337_v48 = vpop.f32.mrf.mxu1 }
 0x5ad   : > { %v9338_v26 = vpop.f32.mrf.mxu1 }
 0x5d6   : > { %v9374_v49 = vpop.f32.mrf.mxu0 }
 0x5d7   : > { %v9415_v5 = vpop.f32.mrf.mxu1  ;;  %v9375_v18 = vadd.f32 %v9374_v49, %v9334_v39 }
 0x5d8   : > { %v9376_v10 = vpop.f32.mrf.mxu0 }
 0x5d9   : > { %v9417_v58 = vpop.f32.mrf.mxu1  ;;  %v9377_v47 = vadd.f32 %v9376_v10, %v9336_v37  ;;  %v9416_v57 = vadd.f32 %v9415_v5, %v9375_v18 }
 0x5da   : > { %v9378_v1 = vpop.f32.mrf.mxu0 }
 0x5db   : > { %v9419_v62 = vpop.f32.mrf.mxu1  ;;  %v9418_v61 = vadd.f32 %v9417_v58, %v9377_v47  ;;  %v9424_v36 = vmax.f32 %v9416_v57, 0.0 }
 0x5dc   : > { %v9379_v54 = vpop.f32.mrf.mxu0 }
 0x5dd   : > { %v9420_v14 = vpop.f32.mrf.mxu1  ;;  %v9425_v34 = vmax.f32 %v9418_v61, 0.0 }
 0x5df   : > { %9625 = vmatprep.mubr.f32.mxu1 %v9425_v34 }
 0x5e0   : > { %9626 = vmatmul.mubr.f32.vlgmr.msra.gmra.mxu1 %v9424_v36 }
 0x5f6   : > { %v11045_v44 = vpop.f32.mrf.mxu0 }
 0x5f8   : > { %v11046_v9 = vpop.f32.mrf.mxu0 }
 0x5f9   : > { %v11047_v25 = vadd.f32 %v11046_v9, %v11045_v44 }
 0x6a0   : > { %v11080_v59 = vpop.f32.mrf.mxu1 }
 0x6a2   : > { %v11081_v41 = vpop.f32.mrf.mxu1 }
 0x6a3   : > { %v11082_v63 = vadd.f32 %v11081_v41, %v11080_v59 }
 0x6a5   : > { %v9628_v27 = vadd.f32 %v11082_v63, %v11047_v25  ;;  %9637 = sbr.rel (%p11005_p2) target bundleno = 2030 (0x7ee), region = 64 }
 0x6a7   : > { %v9631_v33 = vadd.f32 %v9628_v27, %v9426_v2 }
 0x6a9   : > { %9633 = vst.msk [vmem:[#allocation10] sm:$0x3] %vm9632_vm2, %v9631_v33 }
 0x6aa   : > { %v11006_v38 = vld [vmem:[#allocation8] ss:$0 sm:$0xff] }
 0x6b0   : > { %v9638_v31 = vld [vmem:[#allocation10] sm:$0x3] }
 0x6b1   : > { %v9646_v46 = vadd.f32 %v11006_v38, %v9638_v31 }
 0x6b3   : > { %v9647_v29 = vsel %vm9632_vm2, %v9646_v46, -inf }
 0x6b4   : > { %9648 = vmax.xlane.f32.xlu0 %v9647_v29 }
 0x73d   : > { %v9649_v21 = vpop.xlane.xlu0 %9648 }
 0x73e   : > { %v9650_v4 = vsub.f32 %v9646_v46, %v9649_v21 }
 0x740   : > { %v9651_v15 = vmul.f32 1.442695, %v9650_v4 }
 0x742   : > { %12984 = vpow2.f32 %v9651_v15 }
 0x74f   : > { %v12985_v60 = vpop.eup %12984 }
 0x750   : > { %v9653_v53 = vsel %vm9632_vm2, %v12985_v60, 0.0 }
 0x751   : > { %9654 = vadd.xlane.f32.xlu0 %v9653_v53 }
 0x7da   : > { %v9655_v22 = vpop.xlane.xlu0 %9654 }
 0x7db   : > { %12986 = vlog2.f32 %v9655_v22 }
 0x7e8   : > { %v12987_v20 = vpop.eup %12986 }
 0x7e9   : > { %v9657_v28 = vmul.f32 0.6931472, %v12987_v20 }
 0x7eb   : > { %v9658_v56 = vsub.f32 %v9650_v4, %v9657_v28 }
 0x7ed   : > { %9659 = vst.msk [vmem:[#allocation10] sm:$0x3] %vm9632_vm2, %v9658_v56 }
 0x7ee PF: > { %p11120_p7 = scmp.eq.s32.totalorder %s13290_s29, 1  ;;  %s13193_s21 = smov [#allocation10]  }
 0x7ef   : > { %s9669_s25 = sshll.u32 %s13193_s21, 4  ;;  %s9670_s25 = int_to_ptr.vmem [resolvable:$true] %s9669_s25 }
 0x7f0   : > { %s13096_s9 = scalar_lea.vmem %s9670_s25, 32  ;;  %p13103_p4 = scmp.lt.s32.totalorder %s9670_s25, %s9670_s25 }
 0x7f1   : > { %p13097_p5 = scmp.ne.s32.totalorder %s9670_s25, %s13096_s9  ;;  %p13104_p10 = scmp.lt.s32.totalorder %s13096_s9, %s13096_s9 }
 0x7f3   : > { %p13098_p8 = pnand %p13097_p5, %p11120_p7  ;;  %p13105_p9 = por %p13104_p10, %p13103_p4 }
 0x7f5   : > { %p13099_p11 = pneg %p13098_p8 }
 0x7f7   : > { %p13106_p12 = pnand %p13105_p9, %p13099_p11 }
 0x7f9   : > { %13109 = shalt.err (!%p13106_p12)
}
 0x7fa   : > { %11098 = dma.vmem_to_hbm [thread:$0]  (%p11120_p7), %s9670_s25, 32, %s15080_s5, [#allocation4]  }
 0x7fb   : > { %13157 = dma.done.wait (%p11120_p7), [#allocation4], 32  }
 0x7fc   : > { %13159 = vsyncadd (%p11120_p7), [#allocation4], 4294967264 }
 0x7fd PF: > { %s21_s23 = sadd.s32 1, %s13182_s23   ;;  %s15096_s18 = smov %s13166_s19 }
 0x7fe   : > { %p18_p13 = scmp.ge.s32.totalorder %s21_s23, 4   ;;  %s15097_s19 = smov %s13170_s20 }
 0x7ff   : > { %s15098_s20 = smov %s13268_s30  ;;  %s15099_s21 = smov %s13178_s22 }
 0x800   : > { %s15100_s22 = smov %s15102_s24  ;;  %20 = sbr.rel (!%p18_p13) target bundleno = 7 (0x7), region = 110 }
 0x805   :  { %9682 = vsyncpa [#allocation3], 1 }
 0x806   :  { %9684 = vsyncpa [#allocation3 + $0x1], 1 }
 0x807   :  { %9685 = vsyncpa [#allocation6], 1 }
 0x808   :  { %9687 = vsyncpa [#allocation6 + $0x1], 1 }
 0x809   :  { %9688 = vsyncpa [#allocation9], 1 }
 0x80a   :  { %9689 = vsyncpa [#allocation4], 1 }
 0x80b   :  { %9691 = vsyncpa [#allocation4 + $0x1], 1 }

</bundles_post_ra>
